<compile_context>
chip_gen: v7x
topology: tpu7x:2x2x1
jax: 0.10.0
libtpu: 0.0.40
codegen_flags: <defaults>
</compile_context>

<pallas_src>
import functools
import numpy as np
import jax
import jax.numpy as jnp
from jax.experimental import pallas as pl
from jax.experimental.pallas import tpu as pltpu

SQRT2 = float(np.sqrt(2.0))
SQRT_HALF = float(np.sqrt(0.5))


# ---------------------------------------------------------------------------
# Pallas kernels
# ---------------------------------------------------------------------------
def _mm_bias_act_kernel(w_ref, x_ref, b_ref, o_ref, *, act, gain, clamp):
    """One (Cout, K) @ (K, tile_M) tile: matmul + bias + lrelu + gain + clamp."""
    y = jnp.dot(w_ref[...], x_ref[...], preferred_element_type=jnp.float32)
    y = y + b_ref[...]                                  # (Cout, 1) broadcast over lanes
    if act == "lrelu":
        y = jnp.where(y >= 0.0, y, 0.2 * y)
    if gain != 1.0:
        y = y * gain
    if clamp is not None:
        y = jnp.clip(y, -clamp, clamp)
    o_ref[...] = y


def matmul_bias_act(wm, cols, b, *, act, gain, clamp, tile_m=512):
    """wm: (G, Cout, K), cols: (G, K, M), b: (G, Cout) -> (G, Cout, M) f32.

    Grid = (G, M / tile_m); both axes "parallel" (megacore / v7x dual-TC friendly).
    Weight / bias block indices are constant along the M axis so they stay resident.
    """
    G, Cout, K = wm.shape
    M = cols.shape[2]
    tm = tile_m if M > tile_m else M
    Mp = pl.cdiv(M, tm) * tm
    if Mp != M:
        cols = jnp.pad(cols, ((0, 0), (0, 0), (0, Mp - M)))
    b2 = b.reshape(G, Cout, 1).astype(jnp.float32)

    kern = functools.partial(
        _mm_bias_act_kernel, act=act, gain=float(gain),
        clamp=None if clamp is None else float(clamp))

    bpe = jnp.dtype(cols.dtype).itemsize
    cost = pl.CostEstimate(
        flops=int(2 * G * Cout * K * Mp),
        transcendentals=0,
        bytes_accessed=int((G * Cout * K + G * K * Mp) * bpe + G * Cout * Mp * 4))

    out = pl.pallas_call(
        kern,
        out_shape=jax.ShapeDtypeStruct((G, Cout, Mp), jnp.float32),
        grid=(G, Mp // tm),
        in_specs=[
            pl.BlockSpec((None, Cout, K), lambda g, i: (g, 0, 0)),
            pl.BlockSpec((None, K, tm), lambda g, i: (g, 0, i)),
            pl.BlockSpec((None, Cout, 1), lambda g, i: (g, 0, 0)),
        ],
        out_specs=pl.BlockSpec((None, Cout, tm), lambda g, i: (g, 0, i)),
        compiler_params=pltpu.CompilerParams(
            dimension_semantics=("parallel", "parallel")),
        cost_estimate=cost,
    )(wm, cols, b2)
    if Mp != M:
        out = out[:, :, :M]
    return out


def _mapping_kernel(*refs, n_layers):
    """Fused conditioning mapping: embed (linear) -> pixelnorm -> n_layers x (FC+lrelu)."""
    c_ref, we_ref, be_ref = refs[0], refs[1], refs[2]
    o_ref = refs[-1]
    x = jnp.dot(c_ref[...], we_ref[...], preferred_element_type=jnp.float32) + be_ref[...]
    x = x * jax.lax.rsqrt(jnp.mean(jnp.square(x), axis=1, keepdims=True) + 1e-8)
    for i in range(n_layers):
        w_ref = refs[3 + 2 * i]
        b_ref = refs[4 + 2 * i]
        x = jnp.dot(x, w_ref[...], preferred_element_type=jnp.float32) + b_ref[...]
        x = jnp.where(x >= 0.0, x, 0.2 * x) * SQRT2
    o_ref[...] = x


def mapping_fused(c, mp):
    n_layers = len(mp["fcs"])
    args = [c, mp["embed"]["w"], mp["embed"]["b"]]
    for fp in mp["fcs"]:
        args += [fp["w"], fp["b"]]
    out_dim = mp["fcs"][-1]["w"].shape[1] if n_layers else mp["embed"]["w"].shape[1]
    kern = functools.partial(_mapping_kernel, n_layers=n_layers)
    return pl.pallas_call(
        kern,
        out_shape=jax.ShapeDtypeStruct((c.shape[0], out_dim), jnp.float32),
        in_specs=[pl.BlockSpec(memory_space=pltpu.MemorySpace.VMEM)] * len(args),
        out_specs=pl.BlockSpec(memory_space=pltpu.MemorySpace.VMEM),
    )(*args)


def _epilogue_fc_kernel(*refs, cmap_dim):
    """Fused epilogue tail: fc (lrelu) -> out (linear) -> optional cmap projection."""
    if cmap_dim > 0:
        x_ref, wfc_ref, bfc_ref, wout_ref, bout_ref, cmap_ref, o_ref = refs
    else:
        x_ref, wfc_ref, bfc_ref, wout_ref, bout_ref, o_ref = refs
    h = jnp.dot(x_ref[...], wfc_ref[...], preferred_element_type=jnp.float32) + bfc_ref[...]
    h = jnp.where(h >= 0.0, h, 0.2 * h) * SQRT2
    y = jnp.dot(h, wout_ref[...], preferred_element_type=jnp.float32) + bout_ref[...]
    if cmap_dim > 0:
        y = jnp.sum(y * cmap_ref[...], axis=1, keepdims=True) * (1.0 / np.sqrt(cmap_dim))
    o_ref[...] = y


def epilogue_fc_fused(xf, cmap, ep, cmap_dim):
    args = [xf, ep["fc"]["w"], ep["fc"]["b"], ep["out"]["w"], ep["out"]["b"]]
    out_cols = 1 if cmap_dim > 0 else ep["out"]["w"].shape[1]
    if cmap_dim > 0:
        args.append(cmap)
    kern = functools.partial(_epilogue_fc_kernel, cmap_dim=cmap_dim)
    return pl.pallas_call(
        kern,
        out_shape=jax.ShapeDtypeStruct((xf.shape[0], out_cols), jnp.float32),
        in_specs=[pl.BlockSpec(memory_space=pltpu.MemorySpace.VMEM)] * len(args),
        out_specs=pl.BlockSpec(memory_space=pltpu.MemorySpace.VMEM),
    )(*args)


# ---------------------------------------------------------------------------
# JAX glue on the channel-major internal layout (C, N, H, W); a leading G axis
# batches the two discriminator branches through the same pallas_call.
# TODO(synk): im2col / blur remain XLA-side data movement; pulling them into the
# Pallas kernel (windowed pl.ds loads from a padded VMEM block) is a further step.
# ---------------------------------------------------------------------------
def _im2col_grouped(x, k, stride, pad):
    """x: (G, C, N, H, W) -> cols (G, k*k*C, N*Ho*Wo), K ordered (ky, kx, c)."""
    G, C, N, H, W = x.shape
    xp = jnp.pad(x, ((0, 0), (0, 0), (0, 0), (pad, pad), (pad, pad))) if pad else x
    Ho = (H + 2 * pad - k) // stride + 1
    Wo = (W + 2 * pad - k) // stride + 1
    taps = []
    for ky in range(k):
        for kx in range(k):
            taps.append(xp[:, :, :, ky:ky + stride * Ho:stride, kx:kx + stride * Wo:stride])
    if k == 1:
        cols = taps[0].reshape(G, C, N * Ho * Wo)
    else:
        cols = jnp.stack(taps, axis=1).reshape(G, k * k * C, N * Ho * Wo)
    return cols, Ho, Wo


def _blur_grouped(x, f1n, pad, down):
    """Separable upfirdn2d blur (up=1): pad, 1-D conv along H then W, then ::down."""
    px0, px1, py0, py1 = pad
    taps = [float(v) for v in f1n[::-1]]           # flip -> true convolution
    t = len(taps)
    nb = x.ndim - 2
    xp = jnp.pad(x, ((0, 0),) * nb + ((py0, py1), (0, 0)))
    hc = xp.shape[-2] - t + 1
    acc = taps[0] * xp[..., 0:hc, :]
    for i in range(1, t):
        acc = acc + taps[i] * xp[..., i:i + hc, :]
    xp = jnp.pad(acc, ((0, 0),) * nb + ((0, 0), (px0, px1)))
    wc = xp.shape[-1] - t + 1
    out = taps[0] * xp[..., :, 0:wc]
    for i in range(1, t):
        out = out + taps[i] * xp[..., :, i:i + wc]
    if down > 1:
        out = out[..., ::down, ::down]
    return out


def conv2d_grouped(xg, cw, *, down=1, activation="lrelu", gain=1.0,
                   conv_clamp=None, f1n=None, tile_m=512):
    """Conv2dLayer forward for G stacked branches sharing one pallas_call.

    xg: (G, C, N, H, W); cw["w"]: (G, Cout, k, k, Cin) pre-gain-scaled; cw["b"]: (G, Cout).
    """
    wm5 = cw["w"]
    G, Cout, k, _, Cin = wm5.shape
    wdt = wm5.dtype
    pad = k // 2
    N = xg.shape[2]
    if down == 1:
        cols, Ho, Wo = _im2col_grouped(xg.astype(wdt), k, 1, pad)
    else:
        fw = f1n.shape[0]
        px0 = pad + (fw - down + 1) // 2
        px1 = pad + (fw - down) // 2
        if k == 1:
            xb = _blur_grouped(xg, f1n, (px0, px1, px0, px1), down)
            cols, Ho, Wo = _im2col_grouped(xb.astype(wdt), 1, 1, 0)
        else:
            xb = _blur_grouped(xg, f1n, (px0, px1, px0, px1), 1)
            cols, Ho, Wo = _im2col_grouped(xb.astype(wdt), k, down, 0)
    def_gain = SQRT2 if activation == "lrelu" else 1.0
    act_gain = def_gain * gain
    clamp = conv_clamp * gain if conv_clamp is not None else None
    y = matmul_bias_act(wm5.reshape(G, Cout, k * k * Cin), cols, cw["b"],
                        act=activation, gain=act_gain, clamp=clamp, tile_m=tile_m)
    return y.reshape(G, Cout, N, Ho, Wo)


def conv2d_single(x, cw, **kw):
    cws = {"w": cw["w"][None], "b": cw["b"][None]}
    return conv2d_grouped(x[None], cws, **kw)[0]


def minibatch_std_cnhw(x, group_size=4, num_channels=1):
    """MinibatchStdLayer on the (C, N, H, W) layout; appends num_channels stat channels."""
    C, N, H, W = x.shape
    G = min(group_size, N)
    F = num_channels
    c = C // F
    y = x.reshape(F, c, G, N // G, H, W)
    y = y - jnp.mean(y, axis=2, keepdims=True)
    y = jnp.mean(jnp.square(y), axis=2)
    y = jnp.sqrt(y + 1e-8)
    y = jnp.mean(y, axis=(1, 3, 4))                  # (F, N//G)
    y = jnp.tile(y, (1, G))                          # sample n = r*(N//G)+m -> stat[m]
    y = jnp.broadcast_to(y[:, :, None, None], (F, N, H, W))
    return jnp.concatenate([x, y.astype(x.dtype)], axis=0)


def filtered_resizing(x, size_h, size_w):
    # 'antialiased' mode; identity at the chosen toy shapes.
    if x.shape[2] == size_h and x.shape[3] == size_w:
        return x
    # TODO(synk): exact parity with PyTorch's antialiased bilinear kernel not verified here.
    return jax.image.resize(x, (x.shape[0], x.shape[1], size_h, size_w),
                            method="linear", antialias=True)


# ---------------------------------------------------------------------------
# Blocks / forward
# ---------------------------------------------------------------------------
def _stack_cw(cw_list):
    if len(cw_list) == 1:
        return {"w": cw_list[0]["w"][None], "b": cw_list[0]["b"][None]}
    return {"w": jnp.stack([c["w"] for c in cw_list], axis=0),
            "b": jnp.stack([c["b"] for c in cw_list], axis=0)}


def resnet_part_grouped(xg, blk_list, f1n, conv_clamp):
    """resnet tail of DiscriminatorBlock (skip / conv0 / conv1) for G stacked branches."""
    skip = _stack_cw([b["skip"] for b in blk_list])
    conv0 = _stack_cw([b["conv0"] for b in blk_list])
    conv1 = _stack_cw([b["conv1"] for b in blk_list])
    y = conv2d_grouped(xg, skip, down=2, activation="linear", gain=SQRT_HALF,
                       conv_clamp=None, f1n=f1n)
    x = conv2d_grouped(xg, conv0, down=1, activation="lrelu", gain=1.0,
                       conv_clamp=conv_clamp, f1n=f1n)
    x = conv2d_grouped(x, conv1, down=2, activation="lrelu", gain=SQRT_HALF,
                       conv_clamp=conv_clamp, f1n=f1n)
    return y + x


def run_branch(img, blk_list, f1n, conv_clamp):
    """General (unfused) path: one branch, sequential blocks."""
    x = None
    for blk in blk_list:
        if "fromrgb" in blk:
            y = conv2d_single(img, blk["fromrgb"], down=1, activation="lrelu",
                              gain=1.0, conv_clamp=conv_clamp, f1n=f1n)
            x = x + y if x is not None else y
            img = None
        x = resnet_part_grouped(x[None], [blk], f1n, conv_clamp)[0]
    return x


def run_dual(img, seg, blk_img, blk_seg, f1n, conv_clamp):
    """Both pyramids aligned: run image & seg branches through shared grouped kernels."""
    y0 = conv2d_single(img, blk_img[0]["fromrgb"], down=1, activation="lrelu",
                       gain=1.0, conv_clamp=conv_clamp, f1n=f1n)
    y1 = conv2d_single(seg, blk_seg[0]["fromrgb"], down=1, activation="lrelu",
                       gain=1.0, conv_clamp=conv_clamp, f1n=f1n)
    xg = jnp.stack([y0, y1], axis=0)                 # (2, C, N, H, W)
    for bi, bs in zip(blk_img, blk_seg):
        xg = resnet_part_grouped(xg, [bi, bs], f1n, conv_clamp)
    return xg[0] + xg[1]                             # x = x + x_


def epilogue_forward(x, cmap, ep, f1n, cmap_dim, conv_clamp):
    x = minibatch_std_cnhw(x, group_size=4, num_channels=1)
    x = conv2d_single(x, ep["conv"], down=1, activation="lrelu", gain=1.0,
                      conv_clamp=conv_clamp, f1n=f1n)
    C, N, H, W = x.shape
    xf = jnp.transpose(x, (1, 0, 2, 3)).reshape(N, C * H * W)   # torch flatten(1) order
    return epilogue_fc_fused(xf, cmap, ep, cmap_dim)


def _forward(weights, img_dict, c, cfg):
    H, W = cfg["img_resolution"]
    conv_clamp = cfg["conv_clamp"]
    f1n = cfg["f1n"]
    res_list = cfg["block_resolutions"]
    seg_list = cfg["seg_block_resolutions"]

    image_raw = filtered_resizing(img_dict["image_raw"], H, W)
    seg = filtered_resizing(img_dict["image_mask"], H, W)
    seg = 2.0 * seg - 1.0
    img = jnp.concatenate([img_dict["image"], image_raw], axis=1)

    # channel-major internal layout: (C, N, H, W)
    img = jnp.transpose(img, (1, 0, 2, 3)).astype(jnp.float32)
    seg = jnp.transpose(seg, (1, 0, 2, 3)).astype(jnp.float32)

    blk_img = [weights["blocks"][f"b{r}"] for r in res_list]
    blk_seg = [weights["blocks"][f"sb{r}"] for r in seg_list]

    if res_list == seg_list:
        x = run_dual(img, seg, blk_img, blk_seg, f1n, conv_clamp)
    else:
        x = run_branch(img, blk_img, f1n, conv_clamp)
        x = x + run_branch(seg, blk_seg, f1n, conv_clamp)

    cmap = None
    if cfg["cmap_dim"] > 0:
        cmap = mapping_fused(c.astype(jnp.float32), weights["mapping"])

    return epilogue_forward(x, cmap, weights["b4"], f1n, cfg["cmap_dim"], conv_clamp)


# ---------------------------------------------------------------------------
# Parameter construction: matmul-ready weights (gain folded once, (Cout,k,k,Cin)
# layout, bf16 for the conv matmuls), matching the module's __init__ shapes.
# ---------------------------------------------------------------------------
def _prep_conv(key, cout, cin, k):
    w = jax.random.normal(key, (cout, cin, k, k), jnp.float32)
    wg = 1.0 / np.sqrt(cin * k * k)
    dt = jnp.bfloat16 if cin * k * k >= 16 else jnp.float32   # keep tiny-K convs in f32
    wp = jnp.transpose(w * wg, (0, 2, 3, 1)).astype(dt)       # (Cout, ky, kx, Cin)
    return {"w": wp, "b": jnp.zeros((cout,), jnp.float32)}


def _prep_fc(key, out_f, in_f, lr_multiplier=1.0, bias_init=0.0):
    w = jax.random.normal(key, (out_f, in_f), jnp.float32) / lr_multiplier
    wp = (w * (lr_multiplier / np.sqrt(in_f))).T.astype(jnp.float32)   # (in, out)
    b = jnp.full((1, out_f), float(bias_init) * lr_multiplier, jnp.float32)
    return {"w": wp, "b": b}


def _prep_block(key, in_channels, tmp, out, img_channels):
    k0, k1, k2, k3 = jax.random.split(key, 4)
    p = {}
    if in_channels == 0:
        p["fromrgb"] = _prep_conv(k0, tmp, img_channels, 1)
    p["conv0"] = _prep_conv(k1, tmp, tmp, 3)
    p["conv1"] = _prep_conv(k2, out, tmp, 3)
    p["skip"] = _prep_conv(k3, out, tmp, 1)        # bias=False -> zero bias is equivalent
    return p


def build_discriminator(key, *, c_dim=4, img_resolution=(16, 8), img_channels=3,
                        seg_resolution=(16, 8), seg_channels=1,
                        channel_base=256, channel_max=64, conv_clamp=256,
                        mapping_num_layers=2):
    img_channels = img_channels * 2                # image + image_raw concat
    res_h = img_resolution[0]
    log2 = int(np.log2(res_h))
    block_resolutions = [2 ** i for i in range(log2, 2, -1)]
    seg_log2 = int(np.log2(seg_resolution[0]))
    seg_block_resolutions = [2 ** i for i in range(seg_log2, 2, -1)]
    channels = {r: min(channel_base // r, channel_max) for r in block_resolutions + [4]}
    cmap_dim = channels[4] if c_dim > 0 else 0

    keys = iter(jax.random.split(key, 64))
    weights = {"blocks": {}}

    for res in block_resolutions:
        in_ch = channels[res] if res < res_h else 0
        tmp, out = channels[res], channels[res // 2]
        weights["blocks"][f"b{res}"] = _prep_block(next(keys), in_ch, tmp, out, img_channels)
        if res <= seg_resolution[0]:
            in_ch_s = channels[res] if res < seg_resolution[0] else 0
            weights["blocks"][f"sb{res}"] = _prep_block(next(keys), in_ch_s, tmp, out,
                                                        seg_channels)

    if c_dim > 0:
        feats = [cmap_dim] + [cmap_dim] * (mapping_num_layers - 1) + [cmap_dim]
        mp = {"embed": _prep_fc(next(keys), cmap_dim, c_dim, 1.0), "fcs": []}
        for i in range(mapping_num_layers):
            mp["fcs"].append(_prep_fc(next(keys), feats[i + 1], feats[i], 0.01))
        weights["mapping"] = mp

    in_c = channels[4]
    weights["b4"] = {
        "conv": _prep_conv(next(keys), in_c, in_c + 1, 3),
        "fc": _prep_fc(next(keys), in_c, in_c * 4 * 2),
        "out": _prep_fc(next(keys), cmap_dim if cmap_dim > 0 else 1, in_c),
    }

    cfg = {
        "block_resolutions": block_resolutions,
        "seg_block_resolutions": seg_block_resolutions,
        "cmap_dim": cmap_dim,
        "conv_clamp": conv_clamp,
        "img_resolution": img_resolution,
        "f1n": np.array([1.0, 3.0, 3.0, 1.0], np.float32) / 8.0,  # separable [1,3,3,1]
    }
    forward = jax.jit(functools.partial(_forward, cfg=cfg))
    return weights, forward


# ---------------------------------------------------------------------------
if __name__ == "__main__":
    key = jax.random.PRNGKey(0)
    kp, ki1, ki2, ki3, kc = jax.random.split(key, 5)

    weights, forward = build_discriminator(kp)

    img = {
        "image":      jax.random.normal(ki1, (2, 3, 16, 8), jnp.float32),
        "image_raw":  jax.random.normal(ki2, (2, 3, 16, 8), jnp.float32),
        "image_mask": jax.random.uniform(ki3, (2, 1, 16, 8), jnp.float32),
    }
    c = jax.random.normal(kc, (2, 4), jnp.float32)

    out = forward(weights, img, c)
    out = jax.block_until_ready(out)
    assert out.shape == (2, 1) and out.dtype == jnp.float32
    print("KERNEL_OK")
</pallas_src>

<mosaic_0001>
module attributes {stable_mosaic.version = 11 : i64} {
  func.func @_mm_bias_act_kernel(%arg0: i32, %arg1: i32, %arg2: memref<1x16x1xf32, #tpu.memory_space<vmem>>, %arg3: memref<1x1x256xf32, #tpu.memory_space<vmem>>, %arg4: memref<1x16x1xf32, #tpu.memory_space<vmem>>, %arg5: memref<1x16x256xf32, #tpu.memory_space<vmem>>) attributes {dimension_semantics = [#tpu.dimension_semantics<parallel>, #tpu.dimension_semantics<parallel>], iteration_bounds = array<i64: 1, 1>, scalar_prefetch = 0 : i64, scratch_operands = 0 : i64, tpu.core_type = #tpu.core_type<tc>, window_params = [{transform_indices = @transform_0, window_bounds = array<i64: 1, 16, 1>}, {transform_indices = @transform_1, window_bounds = array<i64: 1, 1, 256>}, {transform_indices = @transform_2, window_bounds = array<i64: 1, 16, 1>}, {transform_indices = @transform_3, window_bounds = array<i64: 1, 16, 256>}]} {
    %c0 = arith.constant 0 : index
    %c0_0 = arith.constant 0 : index
    %c0_1 = arith.constant 0 : index
    %0 = vector.load %arg2[%c0, %c0_0, %c0_1] : memref<1x16x1xf32, #tpu.memory_space<vmem>>, vector<1x16x1xf32>
    %1 = vector.shape_cast %0 : vector<1x16x1xf32> to vector<16x1xf32>
    %c0_2 = arith.constant 0 : index
    %c0_3 = arith.constant 0 : index
    %c0_4 = arith.constant 0 : index
    %2 = vector.load %arg3[%c0_2, %c0_3, %c0_4] : memref<1x1x256xf32, #tpu.memory_space<vmem>>, vector<1x1x256xf32>
    %3 = vector.shape_cast %2 : vector<1x1x256xf32> to vector<1x256xf32>
    %cst = arith.constant dense<0.000000e+00> : vector<16x256xf32>
    %4 = tpu.matmul %1, %3, %cst {dimension_numbers = #tpu.dot_dimension_numbers<[1], [0], [0], [1], [0, 0, 1, 1], [], []>} : vector<16x1xf32>, vector<1x256xf32>, vector<16x256xf32> -> vector<16x256xf32>
    %c0_5 = arith.constant 0 : index
    %c0_6 = arith.constant 0 : index
    %c0_7 = arith.constant 0 : index
    %5 = vector.load %arg4[%c0_5, %c0_6, %c0_7] : memref<1x16x1xf32, #tpu.memory_space<vmem>>, vector<1x16x1xf32>
    %6 = vector.shape_cast %5 : vector<1x16x1xf32> to vector<16x1xf32>
    %7 = vector.broadcast %6 : vector<16x1xf32> to vector<16x256xf32>
    %8 = arith.addf %4, %7 : vector<16x256xf32>
    %cst_8 = arith.constant 0.000000e+00 : f32
    %9 = vector.broadcast %cst_8 : f32 to vector<16x256xf32>
    %10 = arith.cmpf oge, %8, %9 : vector<16x256xf32>
    %cst_9 = arith.constant 2.000000e-01 : f32
    %11 = vector.broadcast %cst_9 : f32 to vector<16x256xf32>
    %12 = arith.mulf %11, %8 : vector<16x256xf32>
    %13 = arith.select %10, %8, %12 : vector<16x256xi1>, vector<16x256xf32>
    %cst_10 = arith.constant 1.41421354 : f32
    %14 = vector.broadcast %cst_10 : f32 to vector<16x256xf32>
    %15 = arith.mulf %13, %14 : vector<16x256xf32>
    %cst_11 = arith.constant -2.560000e+02 : f32
    %cst_12 = arith.constant 2.560000e+02 : f32
    %16 = vector.broadcast %cst_11 : f32 to vector<16x256xf32>
    %17 = arith.maximumf %16, %15 : vector<16x256xf32>
    %18 = vector.broadcast %cst_12 : f32 to vector<16x256xf32>
    %19 = arith.minimumf %18, %17 : vector<16x256xf32>
    %c0_13 = arith.constant 0 : index
    %c0_14 = arith.constant 0 : index
    %c0_15 = arith.constant 0 : index
    %20 = vector.load %arg5[%c0_13, %c0_14, %c0_15] : memref<1x16x256xf32, #tpu.memory_space<vmem>>, vector<1x16x256xf32>
    %21 = vector.shape_cast %20 : vector<1x16x256xf32> to vector<16x256xf32>
    %22 = vector.shape_cast %19 : vector<16x256xf32> to vector<1x16x256xf32>
    tpu.vector_store %arg5[%c0_13, %c0_14, %c0_15], %22 {strides = array<i32>} : memref<1x16x256xf32, #tpu.memory_space<vmem>>, vector<1x16x256xf32>,
    return
  }
  func.func @transform_0(%arg0: i32, %arg1: i32) -> (i32, i32, i32) {
    %c0_i32 = arith.constant 0 : i32
    %c0_i32_0 = arith.constant 0 : i32
    %c0_i32_1 = arith.constant 0 : i32
    return %arg0, %c0_i32, %c0_i32_0 : i32, i32, i32
  }
  func.func @transform_1(%arg0: i32, %arg1: i32) -> (i32, i32, i32) {
    %c0_i32 = arith.constant 0 : i32
    %c0_i32_0 = arith.constant 0 : i32
    return %arg0, %c0_i32, %arg1 : i32, i32, i32
  }
  func.func @transform_2(%arg0: i32, %arg1: i32) -> (i32, i32, i32) {
    %c0_i32 = arith.constant 0 : i32
    %c0_i32_0 = arith.constant 0 : i32
    %c0_i32_1 = arith.constant 0 : i32
    return %arg0, %c0_i32, %c0_i32_0 : i32, i32, i32
  }
  func.func @transform_3(%arg0: i32, %arg1: i32) -> (i32, i32, i32) {
    %c0_i32 = arith.constant 0 : i32
    %c0_i32_0 = arith.constant 0 : i32
    return %arg0, %c0_i32, %arg1 : i32, i32, i32
  }
}

module attributes {stable_mosaic.version = 11 : i64} {
  func.func @_mm_bias_act_kernel(%arg0: i32, %arg1: i32, %arg2: memref<1x16x6xf32, #tpu.memory_space<vmem>>, %arg3: memref<1x6x256xf32, #tpu.memory_space<vmem>>, %arg4: memref<1x16x1xf32, #tpu.memory_space<vmem>>, %arg5: memref<1x16x256xf32, #tpu.memory_space<vmem>>) attributes {dimension_semantics = [#tpu.dimension_semantics<parallel>, #tpu.dimension_semantics<parallel>], iteration_bounds = array<i64: 1, 1>, scalar_prefetch = 0 : i64, scratch_operands = 0 : i64, tpu.core_type = #tpu.core_type<tc>, window_params = [{transform_indices = @transform_0, window_bounds = array<i64: 1, 16, 6>}, {transform_indices = @transform_1, window_bounds = array<i64: 1, 6, 256>}, {transform_indices = @transform_2, window_bounds = array<i64: 1, 16, 1>}, {transform_indices = @transform_3, window_bounds = array<i64: 1, 16, 256>}]} {
    %c0 = arith.constant 0 : index
    %c0_0 = arith.constant 0 : index
    %c0_1 = arith.constant 0 : index
    %0 = vector.load %arg2[%c0, %c0_0, %c0_1] : memref<1x16x6xf32, #tpu.memory_space<vmem>>, vector<1x16x6xf32>
    %1 = vector.shape_cast %0 : vector<1x16x6xf32> to vector<16x6xf32>
    %c0_2 = arith.constant 0 : index
    %c0_3 = arith.constant 0 : index
    %c0_4 = arith.constant 0 : index
    %2 = vector.load %arg3[%c0_2, %c0_3, %c0_4] : memref<1x6x256xf32, #tpu.memory_space<vmem>>, vector<1x6x256xf32>
    %3 = vector.shape_cast %2 : vector<1x6x256xf32> to vector<6x256xf32>
    %cst = arith.constant dense<0.000000e+00> : vector<16x256xf32>
    %4 = tpu.matmul %1, %3, %cst {dimension_numbers = #tpu.dot_dimension_numbers<[1], [0], [0], [1], [0, 0, 1, 1], [], []>} : vector<16x6xf32>, vector<6x256xf32>, vector<16x256xf32> -> vector<16x256xf32>
    %c0_5 = arith.constant 0 : index
    %c0_6 = arith.constant 0 : index
    %c0_7 = arith.constant 0 : index
    %5 = vector.load %arg4[%c0_5, %c0_6, %c0_7] : memref<1x16x1xf32, #tpu.memory_space<vmem>>, vector<1x16x1xf32>
    %6 = vector.shape_cast %5 : vector<1x16x1xf32> to vector<16x1xf32>
    %7 = vector.broadcast %6 : vector<16x1xf32> to vector<16x256xf32>
    %8 = arith.addf %4, %7 : vector<16x256xf32>
    %cst_8 = arith.constant 0.000000e+00 : f32
    %9 = vector.broadcast %cst_8 : f32 to vector<16x256xf32>
    %10 = arith.cmpf oge, %8, %9 : vector<16x256xf32>
    %cst_9 = arith.constant 2.000000e-01 : f32
    %11 = vector.broadcast %cst_9 : f32 to vector<16x256xf32>
    %12 = arith.mulf %11, %8 : vector<16x256xf32>
    %13 = arith.select %10, %8, %12 : vector<16x256xi1>, vector<16x256xf32>
    %cst_10 = arith.constant 1.41421354 : f32
    %14 = vector.broadcast %cst_10 : f32 to vector<16x256xf32>
    %15 = arith.mulf %13, %14 : vector<16x256xf32>
    %cst_11 = arith.constant -2.560000e+02 : f32
    %cst_12 = arith.constant 2.560000e+02 : f32
    %16 = vector.broadcast %cst_11 : f32 to vector<16x256xf32>
    %17 = arith.maximumf %16, %15 : vector<16x256xf32>
    %18 = vector.broadcast %cst_12 : f32 to vector<16x256xf32>
    %19 = arith.minimumf %18, %17 : vector<16x256xf32>
    %c0_13 = arith.constant 0 : index
    %c0_14 = arith.constant 0 : index
    %c0_15 = arith.constant 0 : index
    %20 = vector.load %arg5[%c0_13, %c0_14, %c0_15] : memref<1x16x256xf32, #tpu.memory_space<vmem>>, vector<1x16x256xf32>
    %21 = vector.shape_cast %20 : vector<1x16x256xf32> to vector<16x256xf32>
    %22 = vector.shape_cast %19 : vector<16x256xf32> to vector<1x16x256xf32>
    tpu.vector_store %arg5[%c0_13, %c0_14, %c0_15], %22 {strides = array<i32>} : memref<1x16x256xf32, #tpu.memory_space<vmem>>, vector<1x16x256xf32>,
    return
  }
  func.func @transform_0(%arg0: i32, %arg1: i32) -> (i32, i32, i32) {
    %c0_i32 = arith.constant 0 : i32
    %c0_i32_0 = arith.constant 0 : i32
    %c0_i32_1 = arith.constant 0 : i32
    return %arg0, %c0_i32, %c0_i32_0 : i32, i32, i32
  }
  func.func @transform_1(%arg0: i32, %arg1: i32) -> (i32, i32, i32) {
    %c0_i32 = arith.constant 0 : i32
    %c0_i32_0 = arith.constant 0 : i32
    return %arg0, %c0_i32, %arg1 : i32, i32, i32
  }
  func.func @transform_2(%arg0: i32, %arg1: i32) -> (i32, i32, i32) {
    %c0_i32 = arith.constant 0 : i32
    %c0_i32_0 = arith.constant 0 : i32
    %c0_i32_1 = arith.constant 0 : i32
    return %arg0, %c0_i32, %c0_i32_0 : i32, i32, i32
  }
  func.func @transform_3(%arg0: i32, %arg1: i32) -> (i32, i32, i32) {
    %c0_i32 = arith.constant 0 : i32
    %c0_i32_0 = arith.constant 0 : i32
    return %arg0, %c0_i32, %arg1 : i32, i32, i32
  }
}

module attributes {stable_mosaic.version = 11 : i64} {
  func.func @_mm_bias_act_kernel(%arg0: i32, %arg1: i32, %arg2: memref<1x32x16xbf16, #tpu.memory_space<vmem>>, %arg3: memref<1x16x64xbf16, #tpu.memory_space<vmem>>, %arg4: memref<1x32x1xf32, #tpu.memory_space<vmem>>, %arg5: memref<1x32x64xf32, #tpu.memory_space<vmem>>) attributes {dimension_semantics = [#tpu.dimension_semantics<parallel>, #tpu.dimension_semantics<parallel>], iteration_bounds = array<i64: 2, 1>, scalar_prefetch = 0 : i64, scratch_operands = 0 : i64, tpu.core_type = #tpu.core_type<tc>, window_params = [{transform_indices = @transform_0, window_bounds = array<i64: 1, 32, 16>}, {transform_indices = @transform_1, window_bounds = array<i64: 1, 16, 64>}, {transform_indices = @transform_2, window_bounds = array<i64: 1, 32, 1>}, {transform_indices = @transform_3, window_bounds = array<i64: 1, 32, 64>}]} {
    %c0 = arith.constant 0 : index
    %c0_0 = arith.constant 0 : index
    %c0_1 = arith.constant 0 : index
    %0 = vector.load %arg2[%c0, %c0_0, %c0_1] : memref<1x32x16xbf16, #tpu.memory_space<vmem>>, vector<1x32x16xbf16>
    %1 = vector.shape_cast %0 : vector<1x32x16xbf16> to vector<32x16xbf16>
    %c0_2 = arith.constant 0 : index
    %c0_3 = arith.constant 0 : index
    %c0_4 = arith.constant 0 : index
    %2 = vector.load %arg3[%c0_2, %c0_3, %c0_4] : memref<1x16x64xbf16, #tpu.memory_space<vmem>>, vector<1x16x64xbf16>
    %3 = vector.shape_cast %2 : vector<1x16x64xbf16> to vector<16x64xbf16>
    %cst = arith.constant dense<0.000000e+00> : vector<32x64xf32>
    %4 = tpu.matmul %1, %3, %cst {dimension_numbers = #tpu.dot_dimension_numbers<[1], [0], [0], [1], [0, 0, 1, 1], [], []>} : vector<32x16xbf16>, vector<16x64xbf16>, vector<32x64xf32> -> vector<32x64xf32>
    %c0_5 = arith.constant 0 : index
    %c0_6 = arith.constant 0 : index
    %c0_7 = arith.constant 0 : index
    %5 = vector.load %arg4[%c0_5, %c0_6, %c0_7] : memref<1x32x1xf32, #tpu.memory_space<vmem>>, vector<1x32x1xf32>
    %6 = vector.shape_cast %5 : vector<1x32x1xf32> to vector<32x1xf32>
    %7 = vector.broadcast %6 : vector<32x1xf32> to vector<32x64xf32>
    %8 = arith.addf %4, %7 : vector<32x64xf32>
    %cst_8 = arith.constant 0.707106769 : f32
    %9 = vector.broadcast %cst_8 : f32 to vector<32x64xf32>
    %10 = arith.mulf %8, %9 : vector<32x64xf32>
    %c0_9 = arith.constant 0 : index
    %c0_10 = arith.constant 0 : index
    %c0_11 = arith.constant 0 : index
    %11 = vector.load %arg5[%c0_9, %c0_10, %c0_11] : memref<1x32x64xf32, #tpu.memory_space<vmem>>, vector<1x32x64xf32>
    %12 = vector.shape_cast %11 : vector<1x32x64xf32> to vector<32x64xf32>
    %13 = vector.shape_cast %10 : vector<32x64xf32> to vector<1x32x64xf32>
    tpu.vector_store %arg5[%c0_9, %c0_10, %c0_11], %13 {strides = array<i32>} : memref<1x32x64xf32, #tpu.memory_space<vmem>>, vector<1x32x64xf32>,
    return
  }
  func.func @transform_0(%arg0: i32, %arg1: i32) -> (i32, i32, i32) {
    %c0_i32 = arith.constant 0 : i32
    %c0_i32_0 = arith.constant 0 : i32
    %c0_i32_1 = arith.constant 0 : i32
    return %arg0, %c0_i32, %c0_i32_0 : i32, i32, i32
  }
  func.func @transform_1(%arg0: i32, %arg1: i32) -> (i32, i32, i32) {
    %c0_i32 = arith.constant 0 : i32
    %c0_i32_0 = arith.constant 0 : i32
    return %arg0, %c0_i32, %arg1 : i32, i32, i32
  }
  func.func @transform_2(%arg0: i32, %arg1: i32) -> (i32, i32, i32) {
    %c0_i32 = arith.constant 0 : i32
    %c0_i32_0 = arith.constant 0 : i32
    %c0_i32_1 = arith.constant 0 : i32
    return %arg0, %c0_i32, %c0_i32_0 : i32, i32, i32
  }
  func.func @transform_3(%arg0: i32, %arg1: i32) -> (i32, i32, i32) {
    %c0_i32 = arith.constant 0 : i32
    %c0_i32_0 = arith.constant 0 : i32
    return %arg0, %c0_i32, %arg1 : i32, i32, i32
  }
}

module attributes {stable_mosaic.version = 11 : i64} {
  func.func @_mm_bias_act_kernel(%arg0: i32, %arg1: i32, %arg2: memref<1x16x144xbf16, #tpu.memory_space<vmem>>, %arg3: memref<1x144x256xbf16, #tpu.memory_space<vmem>>, %arg4: memref<1x16x1xf32, #tpu.memory_space<vmem>>, %arg5: memref<1x16x256xf32, #tpu.memory_space<vmem>>) attributes {dimension_semantics = [#tpu.dimension_semantics<parallel>, #tpu.dimension_semantics<parallel>], iteration_bounds = array<i64: 2, 1>, scalar_prefetch = 0 : i64, scratch_operands = 0 : i64, tpu.core_type = #tpu.core_type<tc>, window_params = [{transform_indices = @transform_0, window_bounds = array<i64: 1, 16, 144>}, {transform_indices = @transform_1, window_bounds = array<i64: 1, 144, 256>}, {transform_indices = @transform_2, window_bounds = array<i64: 1, 16, 1>}, {transform_indices = @transform_3, window_bounds = array<i64: 1, 16, 256>}]} {
    %c0 = arith.constant 0 : index
    %c0_0 = arith.constant 0 : index
    %c0_1 = arith.constant 0 : index
    %0 = vector.load %arg2[%c0, %c0_0, %c0_1] : memref<1x16x144xbf16, #tpu.memory_space<vmem>>, vector<1x16x144xbf16>
    %1 = vector.shape_cast %0 : vector<1x16x144xbf16> to vector<16x144xbf16>
    %c0_2 = arith.constant 0 : index
    %c0_3 = arith.constant 0 : index
    %c0_4 = arith.constant 0 : index
    %2 = vector.load %arg3[%c0_2, %c0_3, %c0_4] : memref<1x144x256xbf16, #tpu.memory_space<vmem>>, vector<1x144x256xbf16>
    %3 = vector.shape_cast %2 : vector<1x144x256xbf16> to vector<144x256xbf16>
    %cst = arith.constant dense<0.000000e+00> : vector<16x256xf32>
    %4 = tpu.matmul %1, %3, %cst {dimension_numbers = #tpu.dot_dimension_numbers<[1], [0], [0], [1], [0, 0, 1, 1], [], []>} : vector<16x144xbf16>, vector<144x256xbf16>, vector<16x256xf32> -> vector<16x256xf32>
    %c0_5 = arith.constant 0 : index
    %c0_6 = arith.constant 0 : index
    %c0_7 = arith.constant 0 : index
    %5 = vector.load %arg4[%c0_5, %c0_6, %c0_7] : memref<1x16x1xf32, #tpu.memory_space<vmem>>, vector<1x16x1xf32>
    %6 = vector.shape_cast %5 : vector<1x16x1xf32> to vector<16x1xf32>
    %7 = vector.broadcast %6 : vector<16x1xf32> to vector<16x256xf32>
    %8 = arith.addf %4, %7 : vector<16x256xf32>
    %cst_8 = arith.constant 0.000000e+00 : f32
    %9 = vector.broadcast %cst_8 : f32 to vector<16x256xf32>
    %10 = arith.cmpf oge, %8, %9 : vector<16x256xf32>
    %cst_9 = arith.constant 2.000000e-01 : f32
    %11 = vector.broadcast %cst_9 : f32 to vector<16x256xf32>
    %12 = arith.mulf %11, %8 : vector<16x256xf32>
    %13 = arith.select %10, %8, %12 : vector<16x256xi1>, vector<16x256xf32>
    %cst_10 = arith.constant 1.41421354 : f32
    %14 = vector.broadcast %cst_10 : f32 to vector<16x256xf32>
    %15 = arith.mulf %13, %14 : vector<16x256xf32>
    %cst_11 = arith.constant -2.560000e+02 : f32
    %cst_12 = arith.constant 2.560000e+02 : f32
    %16 = vector.broadcast %cst_11 : f32 to vector<16x256xf32>
    %17 = arith.maximumf %16, %15 : vector<16x256xf32>
    %18 = vector.broadcast %cst_12 : f32 to vector<16x256xf32>
    %19 = arith.minimumf %18, %17 : vector<16x256xf32>
    %c0_13 = arith.constant 0 : index
    %c0_14 = arith.constant 0 : index
    %c0_15 = arith.constant 0 : index
    %20 = vector.load %arg5[%c0_13, %c0_14, %c0_15] : memref<1x16x256xf32, #tpu.memory_space<vmem>>, vector<1x16x256xf32>
    %21 = vector.shape_cast %20 : vector<1x16x256xf32> to vector<16x256xf32>
    %22 = vector.shape_cast %19 : vector<16x256xf32> to vector<1x16x256xf32>
    tpu.vector_store %arg5[%c0_13, %c0_14, %c0_15], %22 {strides = array<i32>} : memref<1x16x256xf32, #tpu.memory_space<vmem>>, vector<1x16x256xf32>,
    return
  }
  func.func @transform_0(%arg0: i32, %arg1: i32) -> (i32, i32, i32) {
    %c0_i32 = arith.constant 0 : i32
    %c0_i32_0 = arith.constant 0 : i32
    %c0_i32_1 = arith.constant 0 : i32
    return %arg0, %c0_i32, %c0_i32_0 : i32, i32, i32
  }
  func.func @transform_1(%arg0: i32, %arg1: i32) -> (i32, i32, i32) {
    %c0_i32 = arith.constant 0 : i32
    %c0_i32_0 = arith.constant 0 : i32
    return %arg0, %c0_i32, %arg1 : i32, i32, i32
  }
  func.func @transform_2(%arg0: i32, %arg1: i32) -> (i32, i32, i32) {
    %c0_i32 = arith.constant 0 : i32
    %c0_i32_0 = arith.constant 0 : i32
    %c0_i32_1 = arith.constant 0 : i32
    return %arg0, %c0_i32, %c0_i32_0 : i32, i32, i32
  }
  func.func @transform_3(%arg0: i32, %arg1: i32) -> (i32, i32, i32) {
    %c0_i32 = arith.constant 0 : i32
    %c0_i32_0 = arith.constant 0 : i32
    return %arg0, %c0_i32, %arg1 : i32, i32, i32
  }
}

module attributes {stable_mosaic.version = 11 : i64} {
  func.func @_mm_bias_act_kernel(%arg0: i32, %arg1: i32, %arg2: memref<1x32x144xbf16, #tpu.memory_space<vmem>>, %arg3: memref<1x144x64xbf16, #tpu.memory_space<vmem>>, %arg4: memref<1x32x1xf32, #tpu.memory_space<vmem>>, %arg5: memref<1x32x64xf32, #tpu.memory_space<vmem>>) attributes {dimension_semantics = [#tpu.dimension_semantics<parallel>, #tpu.dimension_semantics<parallel>], iteration_bounds = array<i64: 2, 1>, scalar_prefetch = 0 : i64, scratch_operands = 0 : i64, tpu.core_type = #tpu.core_type<tc>, window_params = [{transform_indices = @transform_0, window_bounds = array<i64: 1, 32, 144>}, {transform_indices = @transform_1, window_bounds = array<i64: 1, 144, 64>}, {transform_indices = @transform_2, window_bounds = array<i64: 1, 32, 1>}, {transform_indices = @transform_3, window_bounds = array<i64: 1, 32, 64>}]} {
    %c0 = arith.constant 0 : index
    %c0_0 = arith.constant 0 : index
    %c0_1 = arith.constant 0 : index
    %0 = vector.load %arg2[%c0, %c0_0, %c0_1] : memref<1x32x144xbf16, #tpu.memory_space<vmem>>, vector<1x32x144xbf16>
    %1 = vector.shape_cast %0 : vector<1x32x144xbf16> to vector<32x144xbf16>
    %c0_2 = arith.constant 0 : index
    %c0_3 = arith.constant 0 : index
    %c0_4 = arith.constant 0 : index
    %2 = vector.load %arg3[%c0_2, %c0_3, %c0_4] : memref<1x144x64xbf16, #tpu.memory_space<vmem>>, vector<1x144x64xbf16>
    %3 = vector.shape_cast %2 : vector<1x144x64xbf16> to vector<144x64xbf16>
    %cst = arith.constant dense<0.000000e+00> : vector<32x64xf32>
    %4 = tpu.matmul %1, %3, %cst {dimension_numbers = #tpu.dot_dimension_numbers<[1], [0], [0], [1], [0, 0, 1, 1], [], []>} : vector<32x144xbf16>, vector<144x64xbf16>, vector<32x64xf32> -> vector<32x64xf32>
    %c0_5 = arith.constant 0 : index
    %c0_6 = arith.constant 0 : index
    %c0_7 = arith.constant 0 : index
    %5 = vector.load %arg4[%c0_5, %c0_6, %c0_7] : memref<1x32x1xf32, #tpu.memory_space<vmem>>, vector<1x32x1xf32>
    %6 = vector.shape_cast %5 : vector<1x32x1xf32> to vector<32x1xf32>
    %7 = vector.broadcast %6 : vector<32x1xf32> to vector<32x64xf32>
    %8 = arith.addf %4, %7 : vector<32x64xf32>
    %cst_8 = arith.constant 0.000000e+00 : f32
    %9 = vector.broadcast %cst_8 : f32 to vector<32x64xf32>
    %10 = arith.cmpf oge, %8, %9 : vector<32x64xf32>
    %cst_9 = arith.constant 2.000000e-01 : f32
    %11 = vector.broadcast %cst_9 : f32 to vector<32x64xf32>
    %12 = arith.mulf %11, %8 : vector<32x64xf32>
    %13 = arith.select %10, %8, %12 : vector<32x64xi1>, vector<32x64xf32>
    %cst_10 = arith.constant 1.000000e+00 : f32
    %14 = vector.broadcast %cst_10 : f32 to vector<32x64xf32>
    %15 = arith.mulf %13, %14 : vector<32x64xf32>
    %cst_11 = arith.constant -181.019333 : f32
    %cst_12 = arith.constant 181.019333 : f32
    %16 = vector.broadcast %cst_11 : f32 to vector<32x64xf32>
    %17 = arith.maximumf %16, %15 : vector<32x64xf32>
    %18 = vector.broadcast %cst_12 : f32 to vector<32x64xf32>
    %19 = arith.minimumf %18, %17 : vector<32x64xf32>
    %c0_13 = arith.constant 0 : index
    %c0_14 = arith.constant 0 : index
    %c0_15 = arith.constant 0 : index
    %20 = vector.load %arg5[%c0_13, %c0_14, %c0_15] : memref<1x32x64xf32, #tpu.memory_space<vmem>>, vector<1x32x64xf32>
    %21 = vector.shape_cast %20 : vector<1x32x64xf32> to vector<32x64xf32>
    %22 = vector.shape_cast %19 : vector<32x64xf32> to vector<1x32x64xf32>
    tpu.vector_store %arg5[%c0_13, %c0_14, %c0_15], %22 {strides = array<i32>} : memref<1x32x64xf32, #tpu.memory_space<vmem>>, vector<1x32x64xf32>,
    return
  }
  func.func @transform_0(%arg0: i32, %arg1: i32) -> (i32, i32, i32) {
    %c0_i32 = arith.constant 0 : i32
    %c0_i32_0 = arith.constant 0 : i32
    %c0_i32_1 = arith.constant 0 : i32
    return %arg0, %c0_i32, %c0_i32_0 : i32, i32, i32
  }
  func.func @transform_1(%arg0: i32, %arg1: i32) -> (i32, i32, i32) {
    %c0_i32 = arith.constant 0 : i32
    %c0_i32_0 = arith.constant 0 : i32
    return %arg0, %c0_i32, %arg1 : i32, i32, i32
  }
  func.func @transform_2(%arg0: i32, %arg1: i32) -> (i32, i32, i32) {
    %c0_i32 = arith.constant 0 : i32
    %c0_i32_0 = arith.constant 0 : i32
    %c0_i32_1 = arith.constant 0 : i32
    return %arg0, %c0_i32, %c0_i32_0 : i32, i32, i32
  }
  func.func @transform_3(%arg0: i32, %arg1: i32) -> (i32, i32, i32) {
    %c0_i32 = arith.constant 0 : i32
    %c0_i32_0 = arith.constant 0 : i32
    return %arg0, %c0_i32, %arg1 : i32, i32, i32
  }
}

module attributes {stable_mosaic.version = 11 : i64} {
  func.func @_mm_bias_act_kernel(%arg0: i32, %arg1: i32, %arg2: memref<1x64x32xbf16, #tpu.memory_space<vmem>>, %arg3: memref<1x32x16xbf16, #tpu.memory_space<vmem>>, %arg4: memref<1x64x1xf32, #tpu.memory_space<vmem>>, %arg5: memref<1x64x16xf32, #tpu.memory_space<vmem>>) attributes {dimension_semantics = [#tpu.dimension_semantics<parallel>, #tpu.dimension_semantics<parallel>], iteration_bounds = array<i64: 2, 1>, scalar_prefetch = 0 : i64, scratch_operands = 0 : i64, tpu.core_type = #tpu.core_type<tc>, window_params = [{transform_indices = @transform_0, window_bounds = array<i64: 1, 64, 32>}, {transform_indices = @transform_1, window_bounds = array<i64: 1, 32, 16>}, {transform_indices = @transform_2, window_bounds = array<i64: 1, 64, 1>}, {transform_indices = @transform_3, window_bounds = array<i64: 1, 64, 16>}]} {
    %c0 = arith.constant 0 : index
    %c0_0 = arith.constant 0 : index
    %c0_1 = arith.constant 0 : index
    %0 = vector.load %arg2[%c0, %c0_0, %c0_1] : memref<1x64x32xbf16, #tpu.memory_space<vmem>>, vector<1x64x32xbf16>
    %1 = vector.shape_cast %0 : vector<1x64x32xbf16> to vector<64x32xbf16>
    %c0_2 = arith.constant 0 : index
    %c0_3 = arith.constant 0 : index
    %c0_4 = arith.constant 0 : index
    %2 = vector.load %arg3[%c0_2, %c0_3, %c0_4] : memref<1x32x16xbf16, #tpu.memory_space<vmem>>, vector<1x32x16xbf16>
    %3 = vector.shape_cast %2 : vector<1x32x16xbf16> to vector<32x16xbf16>
    %cst = arith.constant dense<0.000000e+00> : vector<64x16xf32>
    %4 = tpu.matmul %1, %3, %cst {dimension_numbers = #tpu.dot_dimension_numbers<[1], [0], [0], [1], [0, 0, 1, 1], [], []>} : vector<64x32xbf16>, vector<32x16xbf16>, vector<64x16xf32> -> vector<64x16xf32>
    %c0_5 = arith.constant 0 : index
    %c0_6 = arith.constant 0 : index
    %c0_7 = arith.constant 0 : index
    %5 = vector.load %arg4[%c0_5, %c0_6, %c0_7] : memref<1x64x1xf32, #tpu.memory_space<vmem>>, vector<1x64x1xf32>
    %6 = vector.shape_cast %5 : vector<1x64x1xf32> to vector<64x1xf32>
    %7 = vector.broadcast %6 : vector<64x1xf32> to vector<64x16xf32>
    %8 = arith.addf %4, %7 : vector<64x16xf32>
    %cst_8 = arith.constant 0.707106769 : f32
    %9 = vector.broadcast %cst_8 : f32 to vector<64x16xf32>
    %10 = arith.mulf %8, %9 : vector<64x16xf32>
    %c0_9 = arith.constant 0 : index
    %c0_10 = arith.constant 0 : index
    %c0_11 = arith.constant 0 : index
    %11 = vector.load %arg5[%c0_9, %c0_10, %c0_11] : memref<1x64x16xf32, #tpu.memory_space<vmem>>, vector<1x64x16xf32>
    %12 = vector.shape_cast %11 : vector<1x64x16xf32> to vector<64x16xf32>
    %13 = vector.shape_cast %10 : vector<64x16xf32> to vector<1x64x16xf32>
    tpu.vector_store %arg5[%c0_9, %c0_10, %c0_11], %13 {strides = array<i32>} : memref<1x64x16xf32, #tpu.memory_space<vmem>>, vector<1x64x16xf32>,
    return
  }
  func.func @transform_0(%arg0: i32, %arg1: i32) -> (i32, i32, i32) {
    %c0_i32 = arith.constant 0 : i32
    %c0_i32_0 = arith.constant 0 : i32
    %c0_i32_1 = arith.constant 0 : i32
    return %arg0, %c0_i32, %c0_i32_0 : i32, i32, i32
  }
  func.func @transform_1(%arg0: i32, %arg1: i32) -> (i32, i32, i32) {
    %c0_i32 = arith.constant 0 : i32
    %c0_i32_0 = arith.constant 0 : i32
    return %arg0, %c0_i32, %arg1 : i32, i32, i32
  }
  func.func @transform_2(%arg0: i32, %arg1: i32) -> (i32, i32, i32) {
    %c0_i32 = arith.constant 0 : i32
    %c0_i32_0 = arith.constant 0 : i32
    %c0_i32_1 = arith.constant 0 : i32
    return %arg0, %c0_i32, %c0_i32_0 : i32, i32, i32
  }
  func.func @transform_3(%arg0: i32, %arg1: i32) -> (i32, i32, i32) {
    %c0_i32 = arith.constant 0 : i32
    %c0_i32_0 = arith.constant 0 : i32
    return %arg0, %c0_i32, %arg1 : i32, i32, i32
  }
}

module attributes {stable_mosaic.version = 11 : i64} {
  func.func @_mm_bias_act_kernel(%arg0: i32, %arg1: i32, %arg2: memref<1x32x288xbf16, #tpu.memory_space<vmem>>, %arg3: memref<1x288x64xbf16, #tpu.memory_space<vmem>>, %arg4: memref<1x32x1xf32, #tpu.memory_space<vmem>>, %arg5: memref<1x32x64xf32, #tpu.memory_space<vmem>>) attributes {dimension_semantics = [#tpu.dimension_semantics<parallel>, #tpu.dimension_semantics<parallel>], iteration_bounds = array<i64: 2, 1>, scalar_prefetch = 0 : i64, scratch_operands = 0 : i64, tpu.core_type = #tpu.core_type<tc>, window_params = [{transform_indices = @transform_0, window_bounds = array<i64: 1, 32, 288>}, {transform_indices = @transform_1, window_bounds = array<i64: 1, 288, 64>}, {transform_indices = @transform_2, window_bounds = array<i64: 1, 32, 1>}, {transform_indices = @transform_3, window_bounds = array<i64: 1, 32, 64>}]} {
    %c0 = arith.constant 0 : index
    %c0_0 = arith.constant 0 : index
    %c0_1 = arith.constant 0 : index
    %0 = vector.load %arg2[%c0, %c0_0, %c0_1] : memref<1x32x288xbf16, #tpu.memory_space<vmem>>, vector<1x32x288xbf16>
    %1 = vector.shape_cast %0 : vector<1x32x288xbf16> to vector<32x288xbf16>
    %c0_2 = arith.constant 0 : index
    %c0_3 = arith.constant 0 : index
    %c0_4 = arith.constant 0 : index
    %2 = vector.load %arg3[%c0_2, %c0_3, %c0_4] : memref<1x288x64xbf16, #tpu.memory_space<vmem>>, vector<1x288x64xbf16>
    %3 = vector.shape_cast %2 : vector<1x288x64xbf16> to vector<288x64xbf16>
    %cst = arith.constant dense<0.000000e+00> : vector<32x64xf32>
    %4 = tpu.matmul %1, %3, %cst {dimension_numbers = #tpu.dot_dimension_numbers<[1], [0], [0], [1], [0, 0, 1, 1], [], []>} : vector<32x288xbf16>, vector<288x64xbf16>, vector<32x64xf32> -> vector<32x64xf32>
    %c0_5 = arith.constant 0 : index
    %c0_6 = arith.constant 0 : index
    %c0_7 = arith.constant 0 : index
    %5 = vector.load %arg4[%c0_5, %c0_6, %c0_7] : memref<1x32x1xf32, #tpu.memory_space<vmem>>, vector<1x32x1xf32>
    %6 = vector.shape_cast %5 : vector<1x32x1xf32> to vector<32x1xf32>
    %7 = vector.broadcast %6 : vector<32x1xf32> to vector<32x64xf32>
    %8 = arith.addf %4, %7 : vector<32x64xf32>
    %cst_8 = arith.constant 0.000000e+00 : f32
    %9 = vector.broadcast %cst_8 : f32 to vector<32x64xf32>
    %10 = arith.cmpf oge, %8, %9 : vector<32x64xf32>
    %cst_9 = arith.constant 2.000000e-01 : f32
    %11 = vector.broadcast %cst_9 : f32 to vector<32x64xf32>
    %12 = arith.mulf %11, %8 : vector<32x64xf32>
    %13 = arith.select %10, %8, %12 : vector<32x64xi1>, vector<32x64xf32>
    %cst_10 = arith.constant 1.41421354 : f32
    %14 = vector.broadcast %cst_10 : f32 to vector<32x64xf32>
    %15 = arith.mulf %13, %14 : vector<32x64xf32>
    %cst_11 = arith.constant -2.560000e+02 : f32
    %cst_12 = arith.constant 2.560000e+02 : f32
    %16 = vector.broadcast %cst_11 : f32 to vector<32x64xf32>
    %17 = arith.maximumf %16, %15 : vector<32x64xf32>
    %18 = vector.broadcast %cst_12 : f32 to vector<32x64xf32>
    %19 = arith.minimumf %18, %17 : vector<32x64xf32>
    %c0_13 = arith.constant 0 : index
    %c0_14 = arith.constant 0 : index
    %c0_15 = arith.constant 0 : index
    %20 = vector.load %arg5[%c0_13, %c0_14, %c0_15] : memref<1x32x64xf32, #tpu.memory_space<vmem>>, vector<1x32x64xf32>
    %21 = vector.shape_cast %20 : vector<1x32x64xf32> to vector<32x64xf32>
    %22 = vector.shape_cast %19 : vector<32x64xf32> to vector<1x32x64xf32>
    tpu.vector_store %arg5[%c0_13, %c0_14, %c0_15], %22 {strides = array<i32>} : memref<1x32x64xf32, #tpu.memory_space<vmem>>, vector<1x32x64xf32>,
    return
  }
  func.func @transform_0(%arg0: i32, %arg1: i32) -> (i32, i32, i32) {
    %c0_i32 = arith.constant 0 : i32
    %c0_i32_0 = arith.constant 0 : i32
    %c0_i32_1 = arith.constant 0 : i32
    return %arg0, %c0_i32, %c0_i32_0 : i32, i32, i32
  }
  func.func @transform_1(%arg0: i32, %arg1: i32) -> (i32, i32, i32) {
    %c0_i32 = arith.constant 0 : i32
    %c0_i32_0 = arith.constant 0 : i32
    return %arg0, %c0_i32, %arg1 : i32, i32, i32
  }
  func.func @transform_2(%arg0: i32, %arg1: i32) -> (i32, i32, i32) {
    %c0_i32 = arith.constant 0 : i32
    %c0_i32_0 = arith.constant 0 : i32
    %c0_i32_1 = arith.constant 0 : i32
    return %arg0, %c0_i32, %c0_i32_0 : i32, i32, i32
  }
  func.func @transform_3(%arg0: i32, %arg1: i32) -> (i32, i32, i32) {
    %c0_i32 = arith.constant 0 : i32
    %c0_i32_0 = arith.constant 0 : i32
    return %arg0, %c0_i32, %arg1 : i32, i32, i32
  }
}

module attributes {stable_mosaic.version = 11 : i64} {
  func.func @_mm_bias_act_kernel(%arg0: i32, %arg1: i32, %arg2: memref<1x64x288xbf16, #tpu.memory_space<vmem>>, %arg3: memref<1x288x16xbf16, #tpu.memory_space<vmem>>, %arg4: memref<1x64x1xf32, #tpu.memory_space<vmem>>, %arg5: memref<1x64x16xf32, #tpu.memory_space<vmem>>) attributes {dimension_semantics = [#tpu.dimension_semantics<parallel>, #tpu.dimension_semantics<parallel>], iteration_bounds = array<i64: 2, 1>, scalar_prefetch = 0 : i64, scratch_operands = 0 : i64, tpu.core_type = #tpu.core_type<tc>, window_params = [{transform_indices = @transform_0, window_bounds = array<i64: 1, 64, 288>}, {transform_indices = @transform_1, window_bounds = array<i64: 1, 288, 16>}, {transform_indices = @transform_2, window_bounds = array<i64: 1, 64, 1>}, {transform_indices = @transform_3, window_bounds = array<i64: 1, 64, 16>}]} {
    %c0 = arith.constant 0 : index
    %c0_0 = arith.constant 0 : index
    %c0_1 = arith.constant 0 : index
    %0 = vector.load %arg2[%c0, %c0_0, %c0_1] : memref<1x64x288xbf16, #tpu.memory_space<vmem>>, vector<1x64x288xbf16>
    %1 = vector.shape_cast %0 : vector<1x64x288xbf16> to vector<64x288xbf16>
    %c0_2 = arith.constant 0 : index
    %c0_3 = arith.constant 0 : index
    %c0_4 = arith.constant 0 : index
    %2 = vector.load %arg3[%c0_2, %c0_3, %c0_4] : memref<1x288x16xbf16, #tpu.memory_space<vmem>>, vector<1x288x16xbf16>
    %3 = vector.shape_cast %2 : vector<1x288x16xbf16> to vector<288x16xbf16>
    %cst = arith.constant dense<0.000000e+00> : vector<64x16xf32>
    %4 = tpu.matmul %1, %3, %cst {dimension_numbers = #tpu.dot_dimension_numbers<[1], [0], [0], [1], [0, 0, 1, 1], [], []>} : vector<64x288xbf16>, vector<288x16xbf16>, vector<64x16xf32> -> vector<64x16xf32>
    %c0_5 = arith.constant 0 : index
    %c0_6 = arith.constant 0 : index
    %c0_7 = arith.constant 0 : index
    %5 = vector.load %arg4[%c0_5, %c0_6, %c0_7] : memref<1x64x1xf32, #tpu.memory_space<vmem>>, vector<1x64x1xf32>
    %6 = vector.shape_cast %5 : vector<1x64x1xf32> to vector<64x1xf32>
    %7 = vector.broadcast %6 : vector<64x1xf32> to vector<64x16xf32>
    %8 = arith.addf %4, %7 : vector<64x16xf32>
    %cst_8 = arith.constant 0.000000e+00 : f32
    %9 = vector.broadcast %cst_8 : f32 to vector<64x16xf32>
    %10 = arith.cmpf oge, %8, %9 : vector<64x16xf32>
    %cst_9 = arith.constant 2.000000e-01 : f32
    %11 = vector.broadcast %cst_9 : f32 to vector<64x16xf32>
    %12 = arith.mulf %11, %8 : vector<64x16xf32>
    %13 = arith.select %10, %8, %12 : vector<64x16xi1>, vector<64x16xf32>
    %cst_10 = arith.constant 1.000000e+00 : f32
    %14 = vector.broadcast %cst_10 : f32 to vector<64x16xf32>
    %15 = arith.mulf %13, %14 : vector<64x16xf32>
    %cst_11 = arith.constant -181.019333 : f32
    %cst_12 = arith.constant 181.019333 : f32
    %16 = vector.broadcast %cst_11 : f32 to vector<64x16xf32>
    %17 = arith.maximumf %16, %15 : vector<64x16xf32>
    %18 = vector.broadcast %cst_12 : f32 to vector<64x16xf32>
    %19 = arith.minimumf %18, %17 : vector<64x16xf32>
    %c0_13 = arith.constant 0 : index
    %c0_14 = arith.constant 0 : index
    %c0_15 = arith.constant 0 : index
    %20 = vector.load %arg5[%c0_13, %c0_14, %c0_15] : memref<1x64x16xf32, #tpu.memory_space<vmem>>, vector<1x64x16xf32>
    %21 = vector.shape_cast %20 : vector<1x64x16xf32> to vector<64x16xf32>
    %22 = vector.shape_cast %19 : vector<64x16xf32> to vector<1x64x16xf32>
    tpu.vector_store %arg5[%c0_13, %c0_14, %c0_15], %22 {strides = array<i32>} : memref<1x64x16xf32, #tpu.memory_space<vmem>>, vector<1x64x16xf32>,
    return
  }
  func.func @transform_0(%arg0: i32, %arg1: i32) -> (i32, i32, i32) {
    %c0_i32 = arith.constant 0 : i32
    %c0_i32_0 = arith.constant 0 : i32
    %c0_i32_1 = arith.constant 0 : i32
    return %arg0, %c0_i32, %c0_i32_0 : i32, i32, i32
  }
  func.func @transform_1(%arg0: i32, %arg1: i32) -> (i32, i32, i32) {
    %c0_i32 = arith.constant 0 : i32
    %c0_i32_0 = arith.constant 0 : i32
    return %arg0, %c0_i32, %arg1 : i32, i32, i32
  }
  func.func @transform_2(%arg0: i32, %arg1: i32) -> (i32, i32, i32) {
    %c0_i32 = arith.constant 0 : i32
    %c0_i32_0 = arith.constant 0 : i32
    %c0_i32_1 = arith.constant 0 : i32
    return %arg0, %c0_i32, %c0_i32_0 : i32, i32, i32
  }
  func.func @transform_3(%arg0: i32, %arg1: i32) -> (i32, i32, i32) {
    %c0_i32 = arith.constant 0 : i32
    %c0_i32_0 = arith.constant 0 : i32
    return %arg0, %c0_i32, %arg1 : i32, i32, i32
  }
}

module attributes {stable_mosaic.version = 11 : i64} {
  func.func @_mm_bias_act_kernel(%arg0: i32, %arg1: i32, %arg2: memref<1x64x585xbf16, #tpu.memory_space<vmem>>, %arg3: memref<1x585x16xbf16, #tpu.memory_space<vmem>>, %arg4: memref<1x64x1xf32, #tpu.memory_space<vmem>>, %arg5: memref<1x64x16xf32, #tpu.memory_space<vmem>>) attributes {dimension_semantics = [#tpu.dimension_semantics<parallel>, #tpu.dimension_semantics<parallel>], iteration_bounds = array<i64: 1, 1>, scalar_prefetch = 0 : i64, scratch_operands = 0 : i64, tpu.core_type = #tpu.core_type<tc>, window_params = [{transform_indices = @transform_0, window_bounds = array<i64: 1, 64, 585>}, {transform_indices = @transform_1, window_bounds = array<i64: 1, 585, 16>}, {transform_indices = @transform_2, window_bounds = array<i64: 1, 64, 1>}, {transform_indices = @transform_3, window_bounds = array<i64: 1, 64, 16>}]} {
    %c0 = arith.constant 0 : index
    %c0_0 = arith.constant 0 : index
    %c0_1 = arith.constant 0 : index
    %0 = vector.load %arg2[%c0, %c0_0, %c0_1] : memref<1x64x585xbf16, #tpu.memory_space<vmem>>, vector<1x64x585xbf16>
    %1 = vector.shape_cast %0 : vector<1x64x585xbf16> to vector<64x585xbf16>
    %c0_2 = arith.constant 0 : index
    %c0_3 = arith.constant 0 : index
    %c0_4 = arith.constant 0 : index
    %2 = vector.load %arg3[%c0_2, %c0_3, %c0_4] : memref<1x585x16xbf16, #tpu.memory_space<vmem>>, vector<1x585x16xbf16>
    %3 = vector.shape_cast %2 : vector<1x585x16xbf16> to vector<585x16xbf16>
    %cst = arith.constant dense<0.000000e+00> : vector<64x16xf32>
    %4 = tpu.matmul %1, %3, %cst {dimension_numbers = #tpu.dot_dimension_numbers<[1], [0], [0], [1], [0, 0, 1, 1], [], []>} : vector<64x585xbf16>, vector<585x16xbf16>, vector<64x16xf32> -> vector<64x16xf32>
    %c0_5 = arith.constant 0 : index
    %c0_6 = arith.constant 0 : index
    %c0_7 = arith.constant 0 : index
    %5 = vector.load %arg4[%c0_5, %c0_6, %c0_7] : memref<1x64x1xf32, #tpu.memory_space<vmem>>, vector<1x64x1xf32>
    %6 = vector.shape_cast %5 : vector<1x64x1xf32> to vector<64x1xf32>
    %7 = vector.broadcast %6 : vector<64x1xf32> to vector<64x16xf32>
    %8 = arith.addf %4, %7 : vector<64x16xf32>
    %cst_8 = arith.constant 0.000000e+00 : f32
    %9 = vector.broadcast %cst_8 : f32 to vector<64x16xf32>
    %10 = arith.cmpf oge, %8, %9 : vector<64x16xf32>
    %cst_9 = arith.constant 2.000000e-01 : f32
    %11 = vector.broadcast %cst_9 : f32 to vector<64x16xf32>
    %12 = arith.mulf %11, %8 : vector<64x16xf32>
    %13 = arith.select %10, %8, %12 : vector<64x16xi1>, vector<64x16xf32>
    %cst_10 = arith.constant 1.41421354 : f32
    %14 = vector.broadcast %cst_10 : f32 to vector<64x16xf32>
    %15 = arith.mulf %13, %14 : vector<64x16xf32>
    %cst_11 = arith.constant -2.560000e+02 : f32
    %cst_12 = arith.constant 2.560000e+02 : f32
    %16 = vector.broadcast %cst_11 : f32 to vector<64x16xf32>
    %17 = arith.maximumf %16, %15 : vector<64x16xf32>
    %18 = vector.broadcast %cst_12 : f32 to vector<64x16xf32>
    %19 = arith.minimumf %18, %17 : vector<64x16xf32>
    %c0_13 = arith.constant 0 : index
    %c0_14 = arith.constant 0 : index
    %c0_15 = arith.constant 0 : index
    %20 = vector.load %arg5[%c0_13, %c0_14, %c0_15] : memref<1x64x16xf32, #tpu.memory_space<vmem>>, vector<1x64x16xf32>
    %21 = vector.shape_cast %20 : vector<1x64x16xf32> to vector<64x16xf32>
    %22 = vector.shape_cast %19 : vector<64x16xf32> to vector<1x64x16xf32>
    tpu.vector_store %arg5[%c0_13, %c0_14, %c0_15], %22 {strides = array<i32>} : memref<1x64x16xf32, #tpu.memory_space<vmem>>, vector<1x64x16xf32>,
    return
  }
  func.func @transform_0(%arg0: i32, %arg1: i32) -> (i32, i32, i32) {
    %c0_i32 = arith.constant 0 : i32
    %c0_i32_0 = arith.constant 0 : i32
    %c0_i32_1 = arith.constant 0 : i32
    return %arg0, %c0_i32, %c0_i32_0 : i32, i32, i32
  }
  func.func @transform_1(%arg0: i32, %arg1: i32) -> (i32, i32, i32) {
    %c0_i32 = arith.constant 0 : i32
    %c0_i32_0 = arith.constant 0 : i32
    return %arg0, %c0_i32, %arg1 : i32, i32, i32
  }
  func.func @transform_2(%arg0: i32, %arg1: i32) -> (i32, i32, i32) {
    %c0_i32 = arith.constant 0 : i32
    %c0_i32_0 = arith.constant 0 : i32
    %c0_i32_1 = arith.constant 0 : i32
    return %arg0, %c0_i32, %c0_i32_0 : i32, i32, i32
  }
  func.func @transform_3(%arg0: i32, %arg1: i32) -> (i32, i32, i32) {
    %c0_i32 = arith.constant 0 : i32
    %c0_i32_0 = arith.constant 0 : i32
    return %arg0, %c0_i32, %arg1 : i32, i32, i32
  }
}

module attributes {stable_mosaic.version = 11 : i64} {
  func.func @_mapping_kernel(%arg0: memref<2x4xf32, #tpu.memory_space<vmem>>, %arg1: memref<4x64xf32, #tpu.memory_space<vmem>>, %arg2: memref<1x64xf32, #tpu.memory_space<vmem>>, %arg3: memref<64x64xf32, #tpu.memory_space<vmem>>, %arg4: memref<1x64xf32, #tpu.memory_space<vmem>>, %arg5: memref<64x64xf32, #tpu.memory_space<vmem>>, %arg6: memref<1x64xf32, #tpu.memory_space<vmem>>, %arg7: memref<2x64xf32, #tpu.memory_space<vmem>>) attributes {dimension_semantics = [], scalar_prefetch = 0 : i64, scratch_operands = 0 : i64, tpu.core_type = #tpu.core_type<tc>} {
    %c0 = arith.constant 0 : index
    %c0_0 = arith.constant 0 : index
    %0 = vector.load %arg0[%c0, %c0_0] : memref<2x4xf32, #tpu.memory_space<vmem>>, vector<2x4xf32>
    %c0_1 = arith.constant 0 : index
    %c0_2 = arith.constant 0 : index
    %1 = vector.load %arg1[%c0_1, %c0_2] : memref<4x64xf32, #tpu.memory_space<vmem>>, vector<4x64xf32>
    %cst = arith.constant dense<0.000000e+00> : vector<2x64xf32>
    %2 = tpu.matmul %0, %1, %cst {dimension_numbers = #tpu.dot_dimension_numbers<[1], [0], [0], [1], [0, 0, 1, 1], [], []>} : vector<2x4xf32>, vector<4x64xf32>, vector<2x64xf32> -> vector<2x64xf32>
    %c0_3 = arith.constant 0 : index
    %c0_4 = arith.constant 0 : index
    %3 = vector.load %arg2[%c0_3, %c0_4] : memref<1x64xf32, #tpu.memory_space<vmem>>, vector<1x64xf32>
    %4 = vector.broadcast %3 : vector<1x64xf32> to vector<2x64xf32>
    %5 = arith.addf %2, %4 : vector<2x64xf32>
    %6 = arith.mulf %5, %5 : vector<2x64xf32>
    %cst_5 = arith.constant dense<0.000000e+00> : vector<2xf32>
    %7 = vector.multi_reduction <add>, %6, %cst_5 [1] : vector<2x64xf32> to vector<2xf32>
    %8 = vector.shape_cast %7 : vector<2xf32> to vector<2x1xf32>
    %cst_6 = arith.constant 6.400000e+01 : f32
    %9 = vector.broadcast %cst_6 : f32 to vector<2x1xf32>
    %10 = arith.divf %8, %9 : vector<2x1xf32>
    %cst_7 = arith.constant 9.99999993E-9 : f32
    %11 = vector.broadcast %cst_7 : f32 to vector<2x1xf32>
    %12 = arith.addf %10, %11 : vector<2x1xf32>
    %13 = math.rsqrt %12 : vector<2x1xf32>
    %14 = vector.broadcast %13 : vector<2x1xf32> to vector<2x64xf32>
    %15 = arith.mulf %5, %14 : vector<2x64xf32>
    %c0_8 = arith.constant 0 : index
    %c0_9 = arith.constant 0 : index
    %16 = vector.load %arg3[%c0_8, %c0_9] : memref<64x64xf32, #tpu.memory_space<vmem>>, vector<64x64xf32>
    %cst_10 = arith.constant dense<0.000000e+00> : vector<2x64xf32>
    %17 = tpu.matmul %15, %16, %cst_10 {dimension_numbers = #tpu.dot_dimension_numbers<[1], [0], [0], [1], [0, 0, 1, 1], [], []>} : vector<2x64xf32>, vector<64x64xf32>, vector<2x64xf32> -> vector<2x64xf32>
    %c0_11 = arith.constant 0 : index
    %c0_12 = arith.constant 0 : index
    %18 = vector.load %arg4[%c0_11, %c0_12] : memref<1x64xf32, #tpu.memory_space<vmem>>, vector<1x64xf32>
    %19 = vector.broadcast %18 : vector<1x64xf32> to vector<2x64xf32>
    %20 = arith.addf %17, %19 : vector<2x64xf32>
    %cst_13 = arith.constant 0.000000e+00 : f32
    %21 = vector.broadcast %cst_13 : f32 to vector<2x64xf32>
    %22 = arith.cmpf oge, %20, %21 : vector<2x64xf32>
    %cst_14 = arith.constant 2.000000e-01 : f32
    %23 = vector.broadcast %cst_14 : f32 to vector<2x64xf32>
    %24 = arith.mulf %23, %20 : vector<2x64xf32>
    %25 = arith.select %22, %20, %24 : vector<2x64xi1>, vector<2x64xf32>
    %cst_15 = arith.constant 1.41421354 : f32
    %26 = vector.broadcast %cst_15 : f32 to vector<2x64xf32>
    %27 = arith.mulf %25, %26 : vector<2x64xf32>
    %c0_16 = arith.constant 0 : index
    %c0_17 = arith.constant 0 : index
    %28 = vector.load %arg5[%c0_16, %c0_17] : memref<64x64xf32, #tpu.memory_space<vmem>>, vector<64x64xf32>
    %cst_18 = arith.constant dense<0.000000e+00> : vector<2x64xf32>
    %29 = tpu.matmul %27, %28, %cst_18 {dimension_numbers = #tpu.dot_dimension_numbers<[1], [0], [0], [1], [0, 0, 1, 1], [], []>} : vector<2x64xf32>, vector<64x64xf32>, vector<2x64xf32> -> vector<2x64xf32>
    %c0_19 = arith.constant 0 : index
    %c0_20 = arith.constant 0 : index
    %30 = vector.load %arg6[%c0_19, %c0_20] : memref<1x64xf32, #tpu.memory_space<vmem>>, vector<1x64xf32>
    %31 = vector.broadcast %30 : vector<1x64xf32> to vector<2x64xf32>
    %32 = arith.addf %29, %31 : vector<2x64xf32>
    %cst_21 = arith.constant 0.000000e+00 : f32
    %33 = vector.broadcast %cst_21 : f32 to vector<2x64xf32>
    %34 = arith.cmpf oge, %32, %33 : vector<2x64xf32>
    %cst_22 = arith.constant 2.000000e-01 : f32
    %35 = vector.broadcast %cst_22 : f32 to vector<2x64xf32>
    %36 = arith.mulf %35, %32 : vector<2x64xf32>
    %37 = arith.select %34, %32, %36 : vector<2x64xi1>, vector<2x64xf32>
    %cst_23 = arith.constant 1.41421354 : f32
    %38 = vector.broadcast %cst_23 : f32 to vector<2x64xf32>
    %39 = arith.mulf %37, %38 : vector<2x64xf32>
    %c0_24 = arith.constant 0 : index
    %c0_25 = arith.constant 0 : index
    %40 = vector.load %arg7[%c0_24, %c0_25] : memref<2x64xf32, #tpu.memory_space<vmem>>, vector<2x64xf32>
    tpu.vector_store %arg7[%c0_24, %c0_25], %39 {strides = array<i32>} : memref<2x64xf32, #tpu.memory_space<vmem>>, vector<2x64xf32>,
    return
  }
}

module attributes {stable_mosaic.version = 11 : i64} {
  func.func @_epilogue_fc_kernel(%arg0: memref<2x512xf32, #tpu.memory_space<vmem>>, %arg1: memref<512x64xf32, #tpu.memory_space<vmem>>, %arg2: memref<1x64xf32, #tpu.memory_space<vmem>>, %arg3: memref<64x64xf32, #tpu.memory_space<vmem>>, %arg4: memref<1x64xf32, #tpu.memory_space<vmem>>, %arg5: memref<2x64xf32, #tpu.memory_space<vmem>>, %arg6: memref<2x1xf32, #tpu.memory_space<vmem>>) attributes {dimension_semantics = [], scalar_prefetch = 0 : i64, scratch_operands = 0 : i64, tpu.core_type = #tpu.core_type<tc>} {
    %c0 = arith.constant 0 : index
    %c0_0 = arith.constant 0 : index
    %0 = vector.load %arg0[%c0, %c0_0] : memref<2x512xf32, #tpu.memory_space<vmem>>, vector<2x512xf32>
    %c0_1 = arith.constant 0 : index
    %c0_2 = arith.constant 0 : index
    %1 = vector.load %arg1[%c0_1, %c0_2] : memref<512x64xf32, #tpu.memory_space<vmem>>, vector<512x64xf32>
    %cst = arith.constant dense<0.000000e+00> : vector<2x64xf32>
    %2 = tpu.matmul %0, %1, %cst {dimension_numbers = #tpu.dot_dimension_numbers<[1], [0], [0], [1], [0, 0, 1, 1], [], []>} : vector<2x512xf32>, vector<512x64xf32>, vector<2x64xf32> -> vector<2x64xf32>
    %c0_3 = arith.constant 0 : index
    %c0_4 = arith.constant 0 : index
    %3 = vector.load %arg2[%c0_3, %c0_4] : memref<1x64xf32, #tpu.memory_space<vmem>>, vector<1x64xf32>
    %4 = vector.broadcast %3 : vector<1x64xf32> to vector<2x64xf32>
    %5 = arith.addf %2, %4 : vector<2x64xf32>
    %cst_5 = arith.constant 0.000000e+00 : f32
    %6 = vector.broadcast %cst_5 : f32 to vector<2x64xf32>
    %7 = arith.cmpf oge, %5, %6 : vector<2x64xf32>
    %cst_6 = arith.constant 2.000000e-01 : f32
    %8 = vector.broadcast %cst_6 : f32 to vector<2x64xf32>
    %9 = arith.mulf %8, %5 : vector<2x64xf32>
    %10 = arith.select %7, %5, %9 : vector<2x64xi1>, vector<2x64xf32>
    %cst_7 = arith.constant 1.41421354 : f32
    %11 = vector.broadcast %cst_7 : f32 to vector<2x64xf32>
    %12 = arith.mulf %10, %11 : vector<2x64xf32>
    %c0_8 = arith.constant 0 : index
    %c0_9 = arith.constant 0 : index
    %13 = vector.load %arg3[%c0_8, %c0_9] : memref<64x64xf32, #tpu.memory_space<vmem>>, vector<64x64xf32>
    %cst_10 = arith.constant dense<0.000000e+00> : vector<2x64xf32>
    %14 = tpu.matmul %12, %13, %cst_10 {dimension_numbers = #tpu.dot_dimension_numbers<[1], [0], [0], [1], [0, 0, 1, 1], [], []>} : vector<2x64xf32>, vector<64x64xf32>, vector<2x64xf32> -> vector<2x64xf32>
    %c0_11 = arith.constant 0 : index
    %c0_12 = arith.constant 0 : index
    %15 = vector.load %arg4[%c0_11, %c0_12] : memref<1x64xf32, #tpu.memory_space<vmem>>, vector<1x64xf32>
    %16 = vector.broadcast %15 : vector<1x64xf32> to vector<2x64xf32>
    %17 = arith.addf %14, %16 : vector<2x64xf32>
    %c0_13 = arith.constant 0 : index
    %c0_14 = arith.constant 0 : index
    %18 = vector.load %arg5[%c0_13, %c0_14] : memref<2x64xf32, #tpu.memory_space<vmem>>, vector<2x64xf32>
    %19 = arith.mulf %17, %18 : vector<2x64xf32>
    %cst_15 = arith.constant dense<0.000000e+00> : vector<2xf32>
    %20 = vector.multi_reduction <add>, %19, %cst_15 [1] : vector<2x64xf32> to vector<2xf32>
    %21 = vector.shape_cast %20 : vector<2xf32> to vector<2x1xf32>
    %cst_16 = arith.constant 1.250000e-01 : f32
    %22 = vector.broadcast %cst_16 : f32 to vector<2x1xf32>
    %23 = arith.mulf %21, %22 : vector<2x1xf32>
    %c0_17 = arith.constant 0 : index
    %c0_18 = arith.constant 0 : index
    %24 = vector.load %arg6[%c0_17, %c0_18] : memref<2x1xf32, #tpu.memory_space<vmem>>, vector<2x1xf32>
    tpu.vector_store %arg6[%c0_17, %c0_18], %23 {strides = array<i32>} : memref<2x1xf32, #tpu.memory_space<vmem>>, vector<2x1xf32>,
    return
  }
}

</mosaic_0001>

<bundles_post_ra>
// kernel: _forward.12
= control target key start
LH: loop header
LB: loop body
LE: loop exit
PB: predicated region body
PF: predicated region fallthrough
CT: control target
= control target key end

     0   :  { %v30_v0 = vlaneseq  ;;  %v172_v1 = vmov 0.0   ;;  %v173_v3 = vmov 0   ;;  %vm45_vm0 = vcmask 1040384   ;;  %s221_s1 = inlined_call_operand.vmem [shape: f32[1,1,256], index: 1, kind: input, shape index: {}]   ;;  %s222_s2 = inlined_call_operand.vmem [shape: f32[1,16,1], index: 2, kind: input, shape index: {}]   ;;  %s223_s0 = inlined_call_operand.vmem [shape: f32[1,16,1], index: 0, kind: input, shape index: {}]   ;;  %s224_s3 = inlined_call_operand.vmem [shape: f32[1,16,256], index: 3, kind: output, shape index: {}]  }
   0x1   :  { %114 = vmatprep.mubr.f32.mxu0 %v172_v1  ;;  %120 = vmatprep.mubr.f32.mxu1 %v172_v1  ;;  %v17_v4 = vld [vmem:[%s222_s2] sm:$0xff]  ;;  %v18_v8 = vld [vmem:[%s222_s2 + $0x8] sm:$0xff]  ;;  %vm38_vm1 = vcmask 7168  }
   0x2   :  { %v31_v2 = vshrl.u32 %v30_v0, 7  ;;  %171 = vset.pattern.permute.xlu0 %v173_v3  ;;  %v16_v5 = vld [vmem:[%s221_s1] sm:$0x3]  ;;  %v15_v12 = vld [vmem:[%s223_s0 + $0x8] sm:$0xff] }
   0x3   :  { %21 = vperm.xlu0 %171, %v17_v4   ;;  %v14_v11 = vld [vmem:[%s223_s0] sm:$0xff] }
   0x4   :  { %v32_v6 = vsub.s32 0, %v31_v2  ;;  %v36_v7 = vsub.s32 1, %v31_v2 }
   0x6   :  { %v33_v9 = vrot.slane %v16_v5, %v32_v6  ;;  %v37_v10 = vrot.slane %v16_v5, %v36_v7 }
   0x7   :  { %26 = vperm.xlu0 %171, %v18_v8  }
   0x8   :  { %159 = vmatprep.subr.msk.mxu0 %vm45_vm0, %v37_v10  ;;  %167 = vmatprep.subr.msk.mxu1 %vm45_vm0, %v37_v10 }
   0x9   :  { %160 = vmatpush1.msk.msra.mxu0 %vm45_vm0, %v33_v9  ;;  %168 = vmatpush1.msk.msra.mxu1 %vm45_vm0, %v33_v9 }
   0xa   :  { %161 = vmatmul.mubr.msk.f32.vlgmr.msra.gmra.mrb[0].mxu0 %vm38_vm1, %v14_v11  ;;  %162 = vmatmul.mubr.msk.f32.vlgmr.msra.gmra.mrb[0].mxu1 %vm38_vm1, %v15_v12 }
  0x82   :  { %v22_v13 = vpop.permute.xlu0 %21 }
  0x86   :  { %v27_v14 = vpop.permute.xlu0 %26 }
  0xdd   :  { %v116_v15 = vpop.f32.mrb[0].mxu0  ;;  %v122_v16 = vpop.f32.mrb[0].mxu1 }
  0xde   :  { %v117_v17 = vadd.f32 %v116_v15, %v22_v13  ;;  %v123_v18 = vadd.f32 %v122_v16, %v27_v14  ;;  %v118_v19 = vpop.f32.mrb[1].mxu0  ;;  %v124_v20 = vpop.f32.mrb[1].mxu1 }
  0xdf   :  { %v119_v21 = vadd.f32 %v118_v19, %v22_v13  ;;  %v125_v22 = vadd.f32 %v124_v20, %v27_v14 }
  0xe0   :  { %vm127_vm2 = vcmp.ge.f32.partialorder %v117_v17, 0.0  ;;  %v131_v23 = vmul.f32 0.2, %v117_v17  ;;  %vm129_vm3 = vcmp.ge.f32.partialorder %v123_v18, 0.0  ;;  %v133_v24 = vmul.f32 0.2, %v123_v18 }
  0xe1   :  { %vm128_vm4 = vcmp.ge.f32.partialorder %v119_v21, 0.0  ;;  %v132_v25 = vmul.f32 0.2, %v119_v21  ;;  %vm130_vm5 = vcmp.ge.f32.partialorder %v125_v22, 0.0  ;;  %v134_v26 = vmul.f32 0.2, %v125_v22 }
  0xe2   :  { %v135_v27 = vsel %vm127_vm2, %v117_v17, %v131_v23  ;;  %v137_v28 = vsel %vm129_vm3, %v123_v18, %v133_v24 }
  0xe3   :  { %v139_v29 = vmul.f32 1.4142135, %v135_v27  ;;  %v141_v30 = vmul.f32 1.4142135, %v137_v28  ;;  %v136_v31 = vsel %vm128_vm4, %v119_v21, %v132_v25  ;;  %v138_v32 = vsel %vm130_vm5, %v125_v22, %v134_v26 }
  0xe4   :  { %v140_v33 = vmul.f32 1.4142135, %v136_v31  ;;  %v142_v34 = vmul.f32 1.4142135, %v138_v32 }
  0xe5   :  { %v163_v35 = vclamps-f32 %v139_v29, 256.0  ;;  %v165_v36 = vclamps-f32 %v141_v30, 256.0 }
  0xe6   :  { %v164_v37 = vclamps-f32 %v140_v33, 256.0  ;;  %v166_v38 = vclamps-f32 %v142_v34, 256.0 }
  0xe7   :  { %151 = vst [vmem:[%s224_s3] sm:$0xff] %v163_v35  ;;  %153 = vst [vmem:[%s224_s3 + $0x10] sm:$0xff] %v165_v36 }
  0xe8   :  { %152 = vst [vmem:[%s224_s3 + $0x8] sm:$0xff] %v164_v37  ;;  %154 = vst [vmem:[%s224_s3 + $0x18] sm:$0xff] %v166_v38 }

// kernel: _forward.11
= control target key start
LH: loop header
LB: loop body
LE: loop exit
PB: predicated region body
PF: predicated region fallthrough
CT: control target
= control target key end

     0   :  { %vm37_vm0 = vcmask 1045504   ;;  %v166_v2 = vmov 0.0   ;;  %vm30_vm1 = vcmask 48128   ;;  %v167_v6 = vmov 0   ;;  %s218_s1 = inlined_call_operand.vmem [shape: f32[1,6,256], index: 1, kind: input, shape index: {}]   ;;  %s219_s0 = inlined_call_operand.vmem [shape: f32[1,16,6], index: 0, kind: input, shape index: {}]   ;;  %s220_s2 = inlined_call_operand.vmem [shape: f32[1,16,1], index: 2, kind: input, shape index: {}]   ;;  %s221_s3 = inlined_call_operand.vmem [shape: f32[1,16,256], index: 3, kind: output, shape index: {}]  }
   0x1   :  { %v17_v0 = vld [vmem:[%s218_s1 + $0x8] sm:$0x3f]  ;;  %v16_v1 = vld [vmem:[%s218_s1] sm:$0x3f]  ;;  %108 = vmatprep.mubr.f32.mxu0 %v166_v2  ;;  %114 = vmatprep.mubr.f32.mxu1 %v166_v2 }
   0x2   :  { %v14_v3 = vld [vmem:[%s219_s0] sm:$0xff]  ;;  %153 = vmatprep.subr.msk.mxu0 %vm37_vm0, %v17_v0  ;;  %161 = vmatprep.subr.msk.mxu1 %vm37_vm0, %v17_v0  ;;  %v15_v4 = vld [vmem:[%s219_s0 + $0x8] sm:$0xff] }
   0x3   :  { %154 = vmatpush1.msk.msra.mxu0 %vm37_vm0, %v16_v1  ;;  %162 = vmatpush1.msk.msra.mxu1 %vm37_vm0, %v16_v1  ;;  %v18_v5 = vld [vmem:[%s220_s2] sm:$0xff]  ;;  %v19_v7 = vld [vmem:[%s220_s2 + $0x8] sm:$0xff] }
   0x4   :  { %155 = vmatmul.mubr.msk.f32.vlgmr.msra.gmra.mrb[0].mxu0 %vm30_vm1, %v14_v3  ;;  %156 = vmatmul.mubr.msk.f32.vlgmr.msra.gmra.mrb[0].mxu1 %vm30_vm1, %v15_v4 }
   0x5   :  { %165 = vset.pattern.permute.xlu0 %v167_v6 }
   0x6   :  { %22 = vperm.xlu0 %165, %v18_v5  }
   0xa   :  { %27 = vperm.xlu0 %165, %v19_v7  }
  0x85   :  { %v23_v8 = vpop.permute.xlu0 %22 }
  0x89   :  { %v28_v9 = vpop.permute.xlu0 %27 }
  0xd7   :  { %v110_v10 = vpop.f32.mrb[0].mxu0  ;;  %v116_v11 = vpop.f32.mrb[0].mxu1 }
  0xd8   :  { %v111_v12 = vadd.f32 %v110_v10, %v23_v8  ;;  %v117_v13 = vadd.f32 %v116_v11, %v28_v9  ;;  %v112_v14 = vpop.f32.mrb[1].mxu0  ;;  %v118_v15 = vpop.f32.mrb[1].mxu1 }
  0xd9   :  { %v113_v16 = vadd.f32 %v112_v14, %v23_v8  ;;  %v119_v17 = vadd.f32 %v118_v15, %v28_v9 }
  0xda   :  { %vm121_vm2 = vcmp.ge.f32.partialorder %v111_v12, 0.0  ;;  %v125_v18 = vmul.f32 0.2, %v111_v12  ;;  %vm123_vm3 = vcmp.ge.f32.partialorder %v117_v13, 0.0  ;;  %v127_v19 = vmul.f32 0.2, %v117_v13 }
  0xdb   :  { %vm122_vm4 = vcmp.ge.f32.partialorder %v113_v16, 0.0  ;;  %v126_v20 = vmul.f32 0.2, %v113_v16  ;;  %vm124_vm5 = vcmp.ge.f32.partialorder %v119_v17, 0.0  ;;  %v128_v21 = vmul.f32 0.2, %v119_v17 }
  0xdc   :  { %v129_v22 = vsel %vm121_vm2, %v111_v12, %v125_v18  ;;  %v131_v23 = vsel %vm123_vm3, %v117_v13, %v127_v19 }
  0xdd   :  { %v133_v24 = vmul.f32 1.4142135, %v129_v22  ;;  %v135_v25 = vmul.f32 1.4142135, %v131_v23  ;;  %v130_v26 = vsel %vm122_vm4, %v113_v16, %v126_v20  ;;  %v132_v27 = vsel %vm124_vm5, %v119_v17, %v128_v21 }
  0xde   :  { %v134_v28 = vmul.f32 1.4142135, %v130_v26  ;;  %v136_v29 = vmul.f32 1.4142135, %v132_v27 }
  0xdf   :  { %v157_v30 = vclamps-f32 %v133_v24, 256.0  ;;  %v159_v31 = vclamps-f32 %v135_v25, 256.0 }
  0xe0   :  { %v158_v32 = vclamps-f32 %v134_v28, 256.0  ;;  %v160_v33 = vclamps-f32 %v136_v29, 256.0 }
  0xe1   :  { %145 = vst [vmem:[%s221_s3] sm:$0xff] %v157_v30  ;;  %147 = vst [vmem:[%s221_s3 + $0x10] sm:$0xff] %v159_v31 }
  0xe2   :  { %146 = vst [vmem:[%s221_s3 + $0x8] sm:$0xff] %v158_v32  ;;  %148 = vst [vmem:[%s221_s3 + $0x18] sm:$0xff] %v160_v33 }

// kernel: _forward.13
= control target key start
LH: loop header
LB: loop body
LE: loop exit
PB: predicated region body
PF: predicated region fallthrough
CT: control target
= control target key end

     0   :  { %s569_s12 = smov 0   ;;  %s571_s13 = smov 0   ;;  %s613_s0 = inlined_call_operand.vmem [shape: bf16[2,32,16], index: 0, kind: input, shape index: {}]   ;;  %s614_s1 = inlined_call_operand.vmem [shape: bf16[2,16,64], index: 1, kind: input, shape index: {}]   ;;  %s615_s2 = inlined_call_operand.vmem [shape: f32[2,32,1], index: 2, kind: input, shape index: {}]   ;;  %s616_s3 = inlined_call_operand.vmem [shape: f32[2,32,64], index: 3, kind: output, shape index: {}]  }
   0x1   :  { %s573_s14 = smov 0  }
   0x2 LB: > { %s25_s15 = sadd.s32 1, %s542_s13  ;;  %p465_p0 = scmp.ge.s32.totalorder %s546_s14, 1  ;;  %s546_s14 = sphi %s573_s14, %s13_s14   ;;  %s542_s13 = sphi %s571_s13, %s618_s13   ;;  %s538_s12 = sphi %s569_s12, %s617_s12  }
   0x3   : > { %p27_p1 = scmp.ge.s32.totalorder %s25_s15, 2  ;;  %p176_p2 = scmp.lt.s32.totalorder %s546_s14, 3 }
   0x5   : > { %s620_s15 = smov (%p27_p1, %s25_s15), 0  ;;  %p177_p3 = pnand %p465_p0, %p176_p2 }
   0x6   : > { %p216_p4 = scmp.lt.s32.totalorder (!%p177_p3), %s538_s12, 1  ;;  %v548_v0 = vmov (!%p177_p3), 0   ;;  %vm289_vm0 = vcmask (!%p177_p3), 130048   ;;  %vm349_vm1 = vcmask (!%p177_p3), 523264  }
   0x7   : > { %180 = sbr.rel (%p177_p3) target bundleno = 242 (0xf2), region = 32  ;;  %520 = vset.pattern.permute.xlu1 (!%p177_p3), %v548_v0  ;;  %519 = vset.pattern.permute.xlu0 (!%p177_p3), %v548_v0 }
   0xe   : > { %s622_s12 = smov (!%p216_p4, %s538_s12), 1 }
   0xf   : > { %s482_s16 = sshll.u32 %s622_s12, 3  ;;  %s481_s17 = sshll.u32 %s622_s12, 4 }
  0x10   : > { %s228_s20 = scalar_lea.vmem %s614_s1, %s482_s16  ;;  %s220_s23 = scalar_lea.vmem %s613_s0, %s481_s17 }
  0x11   : > { %v521_v1 = vld [vmem:[%s228_s20] sm:$0xff]   ;;  %s483_s24 = sshll.u32 %s622_s12, 5  ;;  %v523_v3 = vld [vmem:[%s220_s23 + $0x8] sm:$0xff]  }
  0x12   : > { %v522_v2 = vld [vmem:[%s220_s23] sm:$0xff]   ;;  %s233_s27 = scalar_lea.vmem %s615_s2, %s483_s24  ;;  %488 = vmatprep.subr.bf16.mxu0 %v521_v1  ;;  %s241_s30 = scalar_lea.vmem %s616_s3, %s483_s24 }
  0x13   : > { %489 = vmatpush3.bf16.msra.mxu0 %v521_v1  ;;  %490 = vmatprep.mubr.msk.bf16.mxu0 %vm289_vm0, %v522_v2  ;;  %v251_v4 = vld [vmem:[%s233_s27 + $0x10] sm:$0xff]  ;;  %v249_v5 = vld [vmem:[%s233_s27] sm:$0xff]  ;;  %v252_v6 = vld [vmem:[%s233_s27 + $0x18] sm:$0xff] }
  0x14   : > { %265 = vperm.xlu1 %520, %v251_v4   ;;  %255 = vperm.xlu0 %519, %v249_v5   ;;  %v250_v7 = vld [vmem:[%s233_s27 + $0x8] sm:$0xff] }
  0x16   : > { %491 = vmatmul.mubr.msk.bf16.vlgmr.msra.gmra.mrb[0].mxu0 %vm289_vm0, %v523_v3 }
  0x18   : > { %270 = vperm.xlu1 %520, %v252_v6   ;;  %260 = vperm.xlu0 %519, %v250_v7  }
  0x93   : > { %v266_v8 = vpop.permute.xlu1 %265  ;;  %v256_v9 = vpop.permute.xlu0 %255 }
  0x97   : > { %v271_v13 = vpop.permute.xlu1 %270  ;;  %v261_v16 = vpop.permute.xlu0 %260 }
  0xe9   : > { %v492_v10 = vpop.f32.mrb[0].mxu0 }
  0xea   : > { %v339_v11 = vadd.f32 %v492_v10, %v266_v8  ;;  %v330_v12 = vpop.f32.mrb[1].mxu0 }
  0xeb   : > { %v331_v14 = vadd.f32 %v330_v12, %v256_v9  ;;  %v493_v15 = vpop.f32.mrb[2].mxu0 }
  0xec   : > { %v347_v17 = vmul.f32 0.70710677, %v339_v11  ;;  %v342_v18 = vadd.f32 %v493_v15, %v271_v13  ;;  %v333_v19 = vpop.f32.mrb[3].mxu0 }
  0xed   : > { %v345_v20 = vmul.f32 0.70710677, %v331_v14  ;;  %v334_v21 = vadd.f32 %v333_v19, %v261_v16 }
  0xee   : > { %352 = vst.msk [vmem:[%s241_s30 + $0x10] sm:$0xff] %vm349_vm1, %v347_v17  ;;  %v348_v22 = vmul.f32 0.70710677, %v342_v18 }
  0xef   : > { %350 = vst.msk [vmem:[%s241_s30] sm:$0xff] %vm349_vm1, %v345_v20  ;;  %v346_v23 = vmul.f32 0.70710677, %v334_v21 }
  0xf0   : > { %353 = vst.msk [vmem:[%s241_s30 + $0x18] sm:$0xff] %vm349_vm1, %v348_v22 }
  0xf1   : > { %351 = vst.msk [vmem:[%s241_s30 + $0x8] sm:$0xff] %vm349_vm1, %v346_v23 }
  0xf2 PF: > { %s13_s14 = sadd.s32 1, %s546_s14   ;;  %s617_s12 = smov %s542_s13 }
  0xf3   : > { %p10_p5 = scmp.ge.s32.totalorder %s13_s14, 4   ;;  %s618_s13 = smov %s620_s15 }
  0xf5   :  { %12 = sbr.rel (!%p10_p5) target bundleno = 2 (0x2), region = 68 }

// kernel: _forward.14
= control target key start
LH: loop header
LB: loop body
LE: loop exit
PB: predicated region body
PF: predicated region fallthrough
CT: control target
= control target key end

     0   :  { %s712_s12 = smov 0   ;;  %s714_s13 = smov 0   ;;  %s780_s0 = inlined_call_operand.vmem [shape: bf16[2,16,144], index: 0, kind: input, shape index: {}]   ;;  %s781_s1 = inlined_call_operand.vmem [shape: bf16[2,144,256], index: 1, kind: input, shape index: {}]   ;;  %s782_s2 = inlined_call_operand.vmem [shape: f32[2,16,1], index: 2, kind: input, shape index: {}]   ;;  %s783_s3 = inlined_call_operand.vmem [shape: f32[2,16,256], index: 3, kind: output, shape index: {}]  }
   0x1   :  { %s716_s14 = smov 0  }
   0x2 LB: > { %s25_s15 = sadd.s32 1, %s685_s13  ;;  %p572_p0 = scmp.ge.s32.totalorder %s689_s14, 1  ;;  %s689_s14 = sphi %s716_s14, %s13_s14   ;;  %s685_s13 = sphi %s714_s13, %s785_s13   ;;  %s681_s12 = sphi %s712_s12, %s784_s12  }
   0x3   : > { %p27_p1 = scmp.ge.s32.totalorder %s25_s15, 2  ;;  %p178_p2 = scmp.lt.s32.totalorder %s689_s14, 3 }
   0x5   : > { %s787_s15 = smov (%p27_p1, %s25_s15), 0  ;;  %p179_p3 = pnand %p572_p0, %p178_p2 }
   0x6   : > { %p220_p4 = scmp.lt.s32.totalorder (!%p179_p3), %s681_s12, 1  ;;  %v691_v0 = vmov (!%p179_p3), 0   ;;  %vm382_vm0 = vcmask (!%p179_p3), 130048  }
   0x7   : > { %182 = sbr.rel (%p179_p3) target bundleno = 280 (0x118), region = 32  ;;  %636 = vset.pattern.permute.xlu0 (!%p179_p3), %v691_v0 }
   0xe   : > { %s789_s12 = smov (!%p220_p4, %s681_s12), 1 }
   0xf   : > { %s610_s16 = smul.u32 144, %s789_s12  ;;  %s607_s17 = sshll.u32 %s789_s12, 4 }
  0x10   : > { %s737_s20 = scalar_lea.vmem %s780_s0, %s607_s17  ;;  %s239_s26 = scalar_lea.vmem %s782_s2, %s607_s17 }
  0x11   : > { %s742_s23 = scalar_lea.vmem %s781_s1, %s610_s16  ;;  %v666_v10 = vld [vmem:[%s737_s20 + $0x4] ss:$8 sps:$4 sm:$0xff]   ;;  %v664_v22 = vld [vmem:[%s737_s20] ss:$8 sps:$4 sm:$0xff]   ;;  %s609_s27 = sshll.u32 %s789_s12, 5 }
  0x12   : > { %v637_v1 = vld [vmem:[%s742_s23 + $0x4] ss:$8 sps:$4 sm:$0xff]   ;;  %v639_v2 = vld [vmem:[%s742_s23] ss:$8 sps:$4 sm:$0xff]   ;;  %v640_v3 = vld [vmem:[%s742_s23 + $0x14] ss:$8 sps:$4 sm:$0xff]   ;;  %600 = vmatprep.mubr.msk.bf16.mxu0 %vm382_vm0, %v666_v10  ;;  %s248_s30 = scalar_lea.vmem %s783_s3, %s609_s27 }
  0x13   : > { %386 = vmatprep.subr.bf16.mxu0 %v637_v1  ;;  %v642_v4 = vld [vmem:[%s742_s23 + $0x10] ss:$8 sps:$4 sm:$0xff]   ;;  %v643_v5 = vld [vmem:[%s742_s23 + $0x24] ss:$8 sps:$4 sm:$0xff]   ;;  %v645_v6 = vld [vmem:[%s742_s23 + $0x20] ss:$8 sps:$4 sm:$0xff]  }
  0x14   : > { %387 = vmatpush1.bf16.msra.mxu0 %v639_v2  ;;  %v646_v7 = vld [vmem:[%s742_s23 + $0x34] ss:$8 sps:$4 sm:$0xff]   ;;  %v648_v8 = vld [vmem:[%s742_s23 + $0x30] ss:$8 sps:$4 sm:$0xff]   ;;  %v649_v9 = vld [vmem:[%s742_s23 + $0x44] ss:$8 sps:$4 sm:$0xff]  }
  0x15   : > { %388 = vmatprep.subr.bf16.mxu0 %v640_v3  ;;  %v271_v11 = vld [vmem:[%s239_s26] sm:$0xff]  ;;  %v272_v12 = vld [vmem:[%s239_s26 + $0x8] sm:$0xff]  ;;  %v652_v14 = vld [vmem:[%s742_s23 + $0x54] ss:$8 sps:$4 sm:$0xff]  }
  0x16   : > { %275 = vperm.xlu0 %636, %v271_v11   ;;  %v651_v13 = vld [vmem:[%s742_s23 + $0x40] ss:$8 sps:$4 sm:$0xff]   ;;  %v654_v15 = vld [vmem:[%s742_s23 + $0x50] ss:$8 sps:$4 sm:$0xff]   ;;  %v655_v16 = vld [vmem:[%s742_s23 + $0x64] ss:$8 sps:$4 sm:$0xff]  }
  0x17   : > { %v657_v17 = vld [vmem:[%s742_s23 + $0x60] ss:$8 sps:$4 sm:$0xff]   ;;  %v658_v18 = vld [vmem:[%s742_s23 + $0x74] ss:$8 sps:$4 sm:$0xff]   ;;  %v660_v19 = vld [vmem:[%s742_s23 + $0x70] ss:$8 sps:$4 sm:$0xff]  }
  0x18   : > { %389 = vmatpush1.bf16.msra.mxu0 %v642_v4  ;;  %v661_v20 = vld [vmem:[%s742_s23 + $0x84] ss:$8 sps:$4 sm:$0xff]   ;;  %v663_v21 = vld [vmem:[%s742_s23 + $0x80] ss:$8 sps:$4 sm:$0xff]  }
  0x19   : > { %390 = vmatprep.subr.bf16.mxu0 %v643_v5 }
  0x1a   : > { %280 = vperm.xlu0 %636, %v272_v12  }
  0x1c   : > { %391 = vmatpush1.bf16.msra.mxu0 %v645_v6 }
  0x1d   : > { %392 = vmatprep.subr.bf16.mxu0 %v646_v7 }
  0x20   : > { %393 = vmatpush1.bf16.msra.mxu0 %v648_v8 }
  0x21   : > { %394 = vmatprep.subr.bf16.mxu0 %v649_v9 }
  0x24   : > { %395 = vmatpush1.bf16.msra.mxu0 %v651_v13 }
  0x25   : > { %396 = vmatprep.subr.bf16.mxu0 %v652_v14 }
  0x28   : > { %397 = vmatpush1.bf16.msra.mxu0 %v654_v15 }
  0x29   : > { %398 = vmatprep.subr.bf16.mxu0 %v655_v16 }
  0x2c   : > { %399 = vmatpush1.bf16.msra.mxu0 %v657_v17 }
  0x2d   : > { %400 = vmatprep.subr.bf16.mxu0 %v658_v18 }
  0x30   : > { %401 = vmatpush1.bf16.msra.mxu0 %v660_v19 }
  0x31   : > { %402 = vmatprep.subr.bf16.mxu0 %v661_v20 }
  0x34   : > { %403 = vmatpush1.bf16.msra.mxu0 %v663_v21 }
  0x37   : > { %419 = vmatmul.mubr.bf16.vlgmr.msra.gmra.mrb[0].mxu0 %v664_v22 }
  0x95   : > { %v276_v23 = vpop.permute.xlu0 %275 }
  0x99   : > { %v281_v27 = vpop.permute.xlu0 %280 }
 0x10a   : > { %v420_v24 = vpop.f32.mrb[0].mxu0 }
 0x10b   : > { %v421_v25 = vadd.f32 %v420_v24, %v276_v23  ;;  %v422_v26 = vpop.f32.mrb[1].mxu0 }
 0x10c   : > { %v423_v28 = vadd.f32 %v422_v26, %v276_v23  ;;  %v424_v29 = vpop.f32.mrb[2].mxu0 }
 0x10d   : > { %vm429_vm1 = vcmp.ge.f32.partialorder %v421_v25, 0.0  ;;  %v433_v30 = vmul.f32 0.2, %v421_v25  ;;  %v425_v31 = vadd.f32 %v424_v29, %v281_v27  ;;  %v426_v32 = vpop.f32.mrb[3].mxu0 }
 0x10e   : > { %vm430_vm2 = vcmp.ge.f32.partialorder %v423_v28, 0.0  ;;  %v434_v33 = vmul.f32 0.2, %v423_v28  ;;  %v427_v34 = vadd.f32 %v426_v32, %v281_v27 }
 0x10f   : > { %v437_v35 = vsel %vm429_vm1, %v421_v25, %v433_v30  ;;  %vm431_vm3 = vcmp.ge.f32.partialorder %v425_v31, 0.0  ;;  %v435_v36 = vmul.f32 0.2, %v425_v31 }
 0x110   : > { %v441_v37 = vmul.f32 1.4142135, %v437_v35  ;;  %v438_v38 = vsel %vm430_vm2, %v423_v28, %v434_v33  ;;  %vm432_vm4 = vcmp.ge.f32.partialorder %v427_v34, 0.0  ;;  %v436_v39 = vmul.f32 0.2, %v427_v34 }
 0x111   : > { %v442_v40 = vmul.f32 1.4142135, %v438_v38  ;;  %v439_v41 = vsel %vm431_vm3, %v425_v31, %v435_v36 }
 0x112   : > { %v601_v42 = vclamps-f32 %v441_v37, 256.0  ;;  %v443_v43 = vmul.f32 1.4142135, %v439_v41  ;;  %v440_v44 = vsel %vm432_vm4, %v427_v34, %v436_v39 }
 0x113   : > { %v602_v45 = vclamps-f32 %v442_v40, 256.0  ;;  %v444_v46 = vmul.f32 1.4142135, %v440_v44 }
 0x114   : > { %453 = vst [vmem:[%s248_s30] sm:$0xff] %v601_v42  ;;  %v603_v47 = vclamps-f32 %v443_v43, 256.0 }
 0x115   : > { %454 = vst [vmem:[%s248_s30 + $0x8] sm:$0xff] %v602_v45  ;;  %v604_v48 = vclamps-f32 %v444_v46, 256.0 }
 0x116   : > { %455 = vst [vmem:[%s248_s30 + $0x10] sm:$0xff] %v603_v47 }
 0x117   : > { %456 = vst [vmem:[%s248_s30 + $0x18] sm:$0xff] %v604_v48 }
 0x118 PF: > { %s13_s14 = sadd.s32 1, %s689_s14   ;;  %s784_s12 = smov %s685_s13 }
 0x119   : > { %p10_p5 = scmp.ge.s32.totalorder %s13_s14, 4   ;;  %s785_s13 = smov %s787_s15 }
 0x11b   :  { %12 = sbr.rel (!%p10_p5) target bundleno = 2 (0x2), region = 68 }

// kernel: _forward.15
= control target key start
LH: loop header
LB: loop body
LE: loop exit
PB: predicated region body
PF: predicated region fallthrough
CT: control target
= control target key end

     0   :  { %s691_s12 = smov 0   ;;  %s693_s13 = smov 0   ;;  %s772_s0 = inlined_call_operand.vmem [shape: bf16[2,32,144], index: 0, kind: input, shape index: {}]   ;;  %s773_s1 = inlined_call_operand.vmem [shape: bf16[2,144,64], index: 1, kind: input, shape index: {}]   ;;  %s774_s2 = inlined_call_operand.vmem [shape: f32[2,32,1], index: 2, kind: input, shape index: {}]   ;;  %s775_s3 = inlined_call_operand.vmem [shape: f32[2,32,64], index: 3, kind: output, shape index: {}]  }
   0x1   :  { %s695_s14 = smov 0  }
   0x2 LB: > { %s25_s15 = sadd.s32 1, %s664_s13  ;;  %p553_p0 = scmp.ge.s32.totalorder %s668_s14, 1  ;;  %s668_s14 = sphi %s695_s14, %s13_s14   ;;  %s664_s13 = sphi %s693_s13, %s777_s13   ;;  %s660_s12 = sphi %s691_s12, %s776_s12  }
   0x3   : > { %p27_p1 = scmp.ge.s32.totalorder %s25_s15, 2  ;;  %p176_p2 = scmp.lt.s32.totalorder %s668_s14, 3 }
   0x5   : > { %s779_s15 = smov (%p27_p1, %s25_s15), 0  ;;  %p177_p3 = pnand %p553_p0, %p176_p2 }
   0x6   : > { %p216_p4 = scmp.lt.s32.totalorder (!%p177_p3), %s660_s12, 1  ;;  %v670_v0 = vmov (!%p177_p3), 0   ;;  %vm361_vm0 = vcmask (!%p177_p3), 130048   ;;  %vm437_vm3 = vcmask (!%p177_p3), 523264  }
   0x7   : > { %180 = sbr.rel (%p177_p3) target bundleno = 278 (0x116), region = 32  ;;  %368 = vmatprep.subr.bf16.mxu0 (!%p177_p3), %v670_v0  ;;  %585 = vmatprep.subr.bf16.mxu1 (!%p177_p3), %v670_v0 }
   0x8   : > { %630 = vset.pattern.permute.xlu1 (!%p177_p3), %v670_v0  ;;  %629 = vset.pattern.permute.xlu0 (!%p177_p3), %v670_v0 }
   0xe   : > { %s781_s12 = smov (!%p216_p4, %s660_s12), 1 }
   0xf   : > { %s603_s16 = smul.u32 72, %s781_s12  ;;  %s713_s17 = sshll.u32 %s781_s12, 5 }
  0x10   : > { %s719_s20 = scalar_lea.vmem %s772_s0, %s713_s17  ;;  %s233_s26 = scalar_lea.vmem %s774_s2, %s713_s17 }
  0x11   : > { %s724_s23 = scalar_lea.vmem %s773_s1, %s603_s16  ;;  %v642_v4 = vld [vmem:[%s719_s20 + $0x4] ss:$8 sps:$4 sm:$0xff]   ;;  %v645_v6 = vld [vmem:[%s719_s20 + $0x14] ss:$8 sps:$4 sm:$0xff]   ;;  %v640_v16 = vld [vmem:[%s719_s20] ss:$8 sps:$4 sm:$0xff]   ;;  %s241_s29 = scalar_lea.vmem %s775_s3, %s713_s17 }
  0x12   : > { %v631_v1 = vld [vmem:[%s724_s23] sm:$0xff]   ;;  %v632_v2 = vld [vmem:[%s724_s23 + $0x8] sm:$0xff]   ;;  %v633_v3 = vld [vmem:[%s724_s23 + $0x10] sm:$0xff]   ;;  %574 = vmatprep.mubr.msk.bf16.mxu0 %vm361_vm0, %v642_v4  ;;  %575 = vmatprep.mubr.msk.bf16.mxu1 %vm361_vm0, %v645_v6 }
  0x13   : > { %369 = vmatpush1.bf16.msra.mxu0 %v631_v1  ;;  %594 = vmatpush1.bf16.msra.mxu1 %v631_v1  ;;  %v634_v5 = vld [vmem:[%s724_s23 + $0x18] sm:$0xff]   ;;  %v267_v7 = vld [vmem:[%s233_s26 + $0x10] sm:$0xff]  ;;  %v265_v8 = vld [vmem:[%s233_s26] sm:$0xff] }
  0x14   : > { %370 = vmatprep.subr.bf16.mxu0 %v670_v0  ;;  %586 = vmatprep.subr.bf16.mxu1 %v670_v0  ;;  %v635_v9 = vld [vmem:[%s724_s23 + $0x20] sm:$0xff]   ;;  %v268_v10 = vld [vmem:[%s233_s26 + $0x18] sm:$0xff]  ;;  %v266_v11 = vld [vmem:[%s233_s26 + $0x8] sm:$0xff] }
  0x15   : > { %281 = vperm.xlu1 %630, %v267_v7   ;;  %271 = vperm.xlu0 %629, %v265_v8   ;;  %v636_v12 = vld [vmem:[%s724_s23 + $0x28] sm:$0xff]   ;;  %v637_v13 = vld [vmem:[%s724_s23 + $0x30] sm:$0xff]   ;;  %v638_v14 = vld [vmem:[%s724_s23 + $0x38] sm:$0xff]  }
  0x16   : > { %v639_v15 = vld [vmem:[%s724_s23 + $0x40] sm:$0xff]   ;;  %v643_v17 = vld [vmem:[%s719_s20 + $0x10] ss:$8 sps:$4 sm:$0xff]  }
  0x17   : > { %371 = vmatpush1.bf16.msra.mxu0 %v632_v2  ;;  %595 = vmatpush1.bf16.msra.mxu1 %v632_v2 }
  0x18   : > { %372 = vmatprep.subr.bf16.mxu0 %v670_v0  ;;  %587 = vmatprep.subr.bf16.mxu1 %v670_v0 }
  0x19   : > { %286 = vperm.xlu1 %630, %v268_v10   ;;  %276 = vperm.xlu0 %629, %v266_v11  }
  0x1b   : > { %373 = vmatpush1.bf16.msra.mxu0 %v633_v3  ;;  %596 = vmatpush1.bf16.msra.mxu1 %v633_v3 }
  0x1c   : > { %374 = vmatprep.subr.bf16.mxu0 %v670_v0  ;;  %588 = vmatprep.subr.bf16.mxu1 %v670_v0 }
  0x1f   : > { %375 = vmatpush1.bf16.msra.mxu0 %v634_v5  ;;  %597 = vmatpush1.bf16.msra.mxu1 %v634_v5 }
  0x20   : > { %376 = vmatprep.subr.bf16.mxu0 %v670_v0  ;;  %589 = vmatprep.subr.bf16.mxu1 %v670_v0 }
  0x23   : > { %377 = vmatpush1.bf16.msra.mxu0 %v635_v9  ;;  %598 = vmatpush1.bf16.msra.mxu1 %v635_v9 }
  0x24   : > { %378 = vmatprep.subr.bf16.mxu0 %v670_v0  ;;  %590 = vmatprep.subr.bf16.mxu1 %v670_v0 }
  0x27   : > { %379 = vmatpush1.bf16.msra.mxu0 %v636_v12  ;;  %599 = vmatpush1.bf16.msra.mxu1 %v636_v12 }
  0x28   : > { %380 = vmatprep.subr.bf16.mxu0 %v670_v0  ;;  %591 = vmatprep.subr.bf16.mxu1 %v670_v0 }
  0x2b   : > { %381 = vmatpush1.bf16.msra.mxu0 %v637_v13  ;;  %600 = vmatpush1.bf16.msra.mxu1 %v637_v13 }
  0x2c   : > { %382 = vmatprep.subr.bf16.mxu0 %v670_v0  ;;  %592 = vmatprep.subr.bf16.mxu1 %v670_v0 }
  0x2f   : > { %383 = vmatpush1.bf16.msra.mxu0 %v638_v14  ;;  %601 = vmatpush1.bf16.msra.mxu1 %v638_v14 }
  0x30   : > { %384 = vmatprep.subr.bf16.mxu0 %v670_v0  ;;  %593 = vmatprep.subr.bf16.mxu1 %v670_v0 }
  0x33   : > { %385 = vmatpush1.bf16.msra.mxu0 %v639_v15  ;;  %602 = vmatpush1.bf16.msra.mxu1 %v639_v15 }
  0x36   : > { %401 = vmatmul.mubr.bf16.vlgmr.msra.gmra.mrb[0].mxu0 %v640_v16  ;;  %409 = vmatmul.mubr.bf16.vlgmr.msra.gmra.mrb[0].mxu1 %v643_v17 }
  0x94   : > { %v282_v18 = vpop.permute.xlu1 %281  ;;  %v272_v19 = vpop.permute.xlu0 %271 }
  0x98   : > { %v287_v28 = vpop.permute.xlu1 %286  ;;  %v277_v29 = vpop.permute.xlu0 %276 }
 0x109   : > { %v402_v20 = vpop.f32.mrb[0].mxu0  ;;  %v410_v21 = vpop.f32.mrb[0].mxu1 }
 0x10a   : > { %v403_v22 = vadd.f32 %v402_v20, %v272_v19  ;;  %v411_v23 = vadd.f32 %v410_v21, %v282_v18  ;;  %v404_v24 = vpop.f32.mrb[1].mxu0  ;;  %v412_v25 = vpop.f32.mrb[1].mxu1 }
 0x10b   : > { %v405_v26 = vpop.f32.mrb[2].mxu0  ;;  %v413_v27 = vpop.f32.mrb[2].mxu1 }
 0x10c   : > { %vm417_vm1 = vcmp.ge.f32.partialorder %v403_v22, 0.0  ;;  %v421_v30 = vmul.f32 0.2, %v403_v22  ;;  %vm419_vm2 = vcmp.ge.f32.partialorder %v411_v23, 0.0  ;;  %v423_v31 = vmul.f32 0.2, %v411_v23 }
 0x10d   : > { %v406_v32 = vadd.f32 %v405_v26, %v277_v29  ;;  %v414_v33 = vadd.f32 %v413_v27, %v287_v28  ;;  %v407_v34 = vpop.f32.mrb[3].mxu0  ;;  %v415_v35 = vpop.f32.mrb[3].mxu1 }
 0x10e   : > { %v425_v36 = vsel %vm417_vm1, %v403_v22, %v421_v30  ;;  %v427_v37 = vsel %vm419_vm2, %v411_v23, %v423_v31 }
 0x10f   : > { %v576_v38 = vclamps-f32 %v425_v36, 181.01933  ;;  %v578_v39 = vclamps-f32 %v427_v37, 181.01933  ;;  %vm418_vm4 = vcmp.ge.f32.partialorder %v406_v32, 0.0  ;;  %vm420_vm5 = vcmp.ge.f32.partialorder %v414_v33, 0.0 }
 0x110   : > { %v422_v40 = vmul.f32 0.2, %v406_v32  ;;  %v424_v41 = vmul.f32 0.2, %v414_v33 }
 0x111   : > { %438 = vst.msk [vmem:[%s241_s29] sm:$0xff] %vm437_vm3, %v576_v38  ;;  %440 = vst.msk [vmem:[%s241_s29 + $0x10] sm:$0xff] %vm437_vm3, %v578_v39 }
 0x112   : > { %v426_v42 = vsel %vm418_vm4, %v406_v32, %v422_v40  ;;  %v428_v43 = vsel %vm420_vm5, %v414_v33, %v424_v41 }
 0x113   : > { %v577_v44 = vclamps-f32 %v426_v42, 181.01933  ;;  %v579_v45 = vclamps-f32 %v428_v43, 181.01933 }
 0x115   : > { %439 = vst.msk [vmem:[%s241_s29 + $0x8] sm:$0xff] %vm437_vm3, %v577_v44  ;;  %441 = vst.msk [vmem:[%s241_s29 + $0x18] sm:$0xff] %vm437_vm3, %v579_v45 }
 0x116 PF: > { %s13_s14 = sadd.s32 1, %s668_s14   ;;  %s776_s12 = smov %s664_s13 }
 0x117   : > { %p10_p5 = scmp.ge.s32.totalorder %s13_s14, 4   ;;  %s777_s13 = smov %s779_s15 }
 0x119   :  { %12 = sbr.rel (!%p10_p5) target bundleno = 2 (0x2), region = 68 }

// kernel: _forward.16
= control target key start
LH: loop header
LB: loop body
LE: loop exit
PB: predicated region body
PF: predicated region fallthrough
CT: control target
= control target key end

     0   :  { %s666_s12 = smov 0   ;;  %s668_s13 = smov 0   ;;  %s726_s0 = inlined_call_operand.vmem [shape: bf16[2,64,32], index: 0, kind: input, shape index: {}]   ;;  %s727_s1 = inlined_call_operand.vmem [shape: bf16[2,32,16], index: 1, kind: input, shape index: {}]   ;;  %s728_s2 = inlined_call_operand.vmem [shape: f32[2,64,1], index: 2, kind: input, shape index: {}]   ;;  %s729_s3 = inlined_call_operand.vmem [shape: f32[2,64,16], index: 3, kind: output, shape index: {}]  }
   0x1   :  { %s670_s14 = smov 0  }
   0x2 LB: > { %s25_s15 = sadd.s32 1, %s639_s13  ;;  %p541_p0 = scmp.ge.s32.totalorder %s643_s14, 1  ;;  %s643_s14 = sphi %s670_s14, %s13_s14   ;;  %s639_s13 = sphi %s668_s13, %s731_s13   ;;  %s635_s12 = sphi %s666_s12, %s730_s12  }
   0x3   : > { %p27_p1 = scmp.ge.s32.totalorder %s25_s15, 2  ;;  %p176_p2 = scmp.lt.s32.totalorder %s643_s14, 3 }
   0x5   : > { %s733_s15 = smov (%p27_p1, %s25_s15), 0  ;;  %p177_p3 = pnand %p541_p0, %p176_p2 }
   0x6   : > { %p216_p4 = scmp.lt.s32.totalorder (!%p177_p3), %s635_s12, 1  ;;  %v645_v0 = vmov (!%p177_p3), 0   ;;  %vm335_vm0 = vcmask (!%p177_p3), 261120   ;;  %vm421_vm1 = vcmask (!%p177_p3), 130048  }
   0x7   : > { %180 = sbr.rel (%p177_p3) target bundleno = 246 (0xf6), region = 32  ;;  %614 = vset.pattern.permute.xlu1 (!%p177_p3), %v645_v0  ;;  %613 = vset.pattern.permute.xlu0 (!%p177_p3), %v645_v0 }
   0xe   : > { %s735_s12 = smov (!%p216_p4, %s635_s12), 1 }
   0xf   : > { %s563_s16 = sshll.u32 %s735_s12, 4  ;;  %s562_s17 = sshll.u32 %s735_s12, 5 }
  0x10   : > { %s228_s20 = scalar_lea.vmem %s727_s1, %s563_s16  ;;  %s220_s23 = scalar_lea.vmem %s726_s0, %s562_s17 }
  0x11   : > { %v615_v1 = vld [vmem:[%s228_s20] sm:$0xff]   ;;  %s564_s24 = sshll.u32 %s735_s12, 6  ;;  %v616_v2 = vld [vmem:[%s228_s20 + $0x8] sm:$0xff]   ;;  %v618_v4 = vld [vmem:[%s220_s23 + $0x10] sm:$0xff]  }
  0x12   : > { %572 = vmatprep.subr.bf16.mxu0 %v615_v1  ;;  %584 = vmatprep.subr.bf16.mxu1 %v615_v1  ;;  %v617_v3 = vld [vmem:[%s220_s23] sm:$0xff]   ;;  %s233_s27 = scalar_lea.vmem %s728_s2, %s564_s24  ;;  %v619_v5 = vld [vmem:[%s220_s23 + $0x8] sm:$0xff]   ;;  %v620_v6 = vld [vmem:[%s220_s23 + $0x18] sm:$0xff]   ;;  %s241_s30 = scalar_lea.vmem %s729_s3, %s564_s24 }
  0x13   : > { %573 = vmatpush3.bf16.msra.mxu0 %v615_v1  ;;  %586 = vmatpush3.bf16.msra.mxu1 %v615_v1  ;;  %v257_v7 = vld [vmem:[%s233_s27 + $0x10] sm:$0xff]  ;;  %v255_v8 = vld [vmem:[%s233_s27] sm:$0xff]  ;;  %v258_v9 = vld [vmem:[%s233_s27 + $0x18] sm:$0xff] }
  0x14   : > { %574 = vmatprep.subr.bf16.mxu0 %v616_v2  ;;  %585 = vmatprep.subr.bf16.mxu1 %v616_v2  ;;  %v256_v10 = vld [vmem:[%s233_s27 + $0x8] sm:$0xff]  ;;  %v259_v12 = vld [vmem:[%s233_s27 + $0x20] sm:$0xff]  ;;  %v262_v13 = vld [vmem:[%s233_s27 + $0x38] sm:$0xff] }
  0x15   : > { %576 = vmatprep.mubr.msk.bf16.mxu0 %vm335_vm0, %v617_v3  ;;  %580 = vmatprep.mubr.msk.bf16.mxu1 %vm335_vm0, %v618_v4  ;;  %v260_v11 = vld [vmem:[%s233_s27 + $0x28] sm:$0xff]  ;;  %v261_v14 = vld [vmem:[%s233_s27 + $0x30] sm:$0xff] }
  0x16   : > { %275 = vperm.xlu1 %614, %v257_v7   ;;  %265 = vperm.xlu0 %613, %v255_v8  }
  0x17   : > { %575 = vmatpush3.bf16.msra.mxu0 %v616_v2  ;;  %587 = vmatpush3.bf16.msra.mxu1 %v616_v2 }
  0x1a   : > { %577 = vmatmul.mubr.msk.bf16.vlgmr.msra.gmra.mrb[0].mxu0 %vm335_vm0, %v619_v5  ;;  %581 = vmatmul.mubr.msk.bf16.vlgmr.msra.gmra.mrb[0].mxu1 %vm335_vm0, %v620_v6 }
  0x1b   : > { %280 = vperm.xlu1 %614, %v258_v9   ;;  %270 = vperm.xlu0 %613, %v256_v10  }
  0x1f   : > { %290 = vperm.xlu1 %614, %v260_v11   ;;  %285 = vperm.xlu0 %613, %v259_v12  }
  0x23   : > { %300 = vperm.xlu1 %614, %v262_v13   ;;  %295 = vperm.xlu0 %613, %v261_v14  }
  0x95   : > { %v276_v15 = vpop.permute.xlu1 %275  ;;  %v266_v16 = vpop.permute.xlu0 %265 }
  0x9a   : > { %v281_v17 = vpop.permute.xlu1 %280  ;;  %v271_v18 = vpop.permute.xlu0 %270 }
  0x9e   : > { %v291_v19 = vpop.permute.xlu1 %290  ;;  %v286_v20 = vpop.permute.xlu0 %285 }
  0xa2   : > { %v301_v21 = vpop.permute.xlu1 %300  ;;  %v296_v22 = vpop.permute.xlu0 %295 }
  0xed   : > { %v578_v23 = vpop.f32.mrb[0].mxu0  ;;  %v582_v24 = vpop.f32.mrb[0].mxu1 }
  0xee   : > { %v391_v25 = vadd.f32 %v578_v23, %v276_v15  ;;  %v407_v26 = vadd.f32 %v582_v24, %v296_v22  ;;  %v382_v27 = vpop.f32.mrb[1].mxu0  ;;  %v398_v28 = vpop.f32.mrb[1].mxu1 }
  0xef   : > { %v383_v29 = vadd.f32 %v382_v27, %v266_v16  ;;  %v399_v30 = vadd.f32 %v398_v28, %v286_v20  ;;  %v579_v31 = vpop.f32.mrb[2].mxu0  ;;  %v583_v32 = vpop.f32.mrb[2].mxu1 }
  0xf0   : > { %v415_v33 = vmul.f32 0.70710677, %v391_v25  ;;  %v419_v34 = vmul.f32 0.70710677, %v407_v26  ;;  %v394_v35 = vadd.f32 %v579_v31, %v281_v17  ;;  %v410_v36 = vadd.f32 %v583_v32, %v301_v21  ;;  %v385_v37 = vpop.f32.mrb[3].mxu0  ;;  %v401_v38 = vpop.f32.mrb[3].mxu1 }
  0xf1   : > { %v413_v39 = vmul.f32 0.70710677, %v383_v29  ;;  %v417_v40 = vmul.f32 0.70710677, %v399_v30  ;;  %v386_v41 = vadd.f32 %v385_v37, %v271_v18  ;;  %v402_v42 = vadd.f32 %v401_v38, %v291_v19 }
  0xf2   : > { %424 = vst.msk [vmem:[%s241_s30 + $0x10] sm:$0xff] %vm421_vm1, %v415_v33  ;;  %428 = vst.msk [vmem:[%s241_s30 + $0x30] sm:$0xff] %vm421_vm1, %v419_v34  ;;  %v416_v43 = vmul.f32 0.70710677, %v394_v35  ;;  %v420_v44 = vmul.f32 0.70710677, %v410_v36 }
  0xf3   : > { %422 = vst.msk [vmem:[%s241_s30] sm:$0xff] %vm421_vm1, %v413_v39  ;;  %426 = vst.msk [vmem:[%s241_s30 + $0x20] sm:$0xff] %vm421_vm1, %v417_v40  ;;  %v414_v45 = vmul.f32 0.70710677, %v386_v41  ;;  %v418_v46 = vmul.f32 0.70710677, %v402_v42 }
  0xf4   : > { %425 = vst.msk [vmem:[%s241_s30 + $0x18] sm:$0xff] %vm421_vm1, %v416_v43  ;;  %429 = vst.msk [vmem:[%s241_s30 + $0x38] sm:$0xff] %vm421_vm1, %v420_v44 }
  0xf5   : > { %423 = vst.msk [vmem:[%s241_s30 + $0x8] sm:$0xff] %vm421_vm1, %v414_v45  ;;  %427 = vst.msk [vmem:[%s241_s30 + $0x28] sm:$0xff] %vm421_vm1, %v418_v46 }
  0xf6 PF: > { %s13_s14 = sadd.s32 1, %s643_s14   ;;  %s730_s12 = smov %s639_s13 }
  0xf7   : > { %p10_p5 = scmp.ge.s32.totalorder %s13_s14, 4   ;;  %s731_s13 = smov %s733_s15 }
  0xf9   :  { %12 = sbr.rel (!%p10_p5) target bundleno = 2 (0x2), region = 68 }

// kernel: _forward.17
= control target key start
LH: loop header
LB: loop body
LE: loop exit
PB: predicated region body
PF: predicated region fallthrough
CT: control target
= control target key end

     0   :  { %s875_s12 = smov 0   ;;  %s877_s13 = smov 0   ;;  %s961_s0 = inlined_call_operand.vmem [shape: bf16[2,32,288], index: 0, kind: input, shape index: {}]   ;;  %s962_s1 = inlined_call_operand.vmem [shape: bf16[2,288,64], index: 1, kind: input, shape index: {}]   ;;  %s963_s2 = inlined_call_operand.vmem [shape: f32[2,32,1], index: 2, kind: input, shape index: {}]   ;;  %s964_s3 = inlined_call_operand.vmem [shape: f32[2,32,64], index: 3, kind: output, shape index: {}]  }
   0x1   :  { %s879_s14 = smov 0  }
   0x2 LB: > { %s25_s15 = sadd.s32 1, %s848_s13  ;;  %p694_p0 = scmp.ge.s32.totalorder %s852_s14, 1  ;;  %s852_s14 = sphi %s879_s14, %s13_s14   ;;  %s848_s13 = sphi %s877_s13, %s966_s13   ;;  %s844_s12 = sphi %s875_s12, %s965_s12  }
   0x3   : > { %p27_p1 = scmp.ge.s32.totalorder %s25_s15, 2  ;;  %p176_p2 = scmp.lt.s32.totalorder %s852_s14, 3 }
   0x5   : > { %s968_s15 = smov (%p27_p1, %s25_s15), 0  ;;  %p177_p3 = pnand %p694_p0, %p176_p2 }
   0x6   : > { %p216_p4 = scmp.lt.s32.totalorder (!%p177_p3), %s844_s12, 1  ;;  %v854_v0 = vmov (!%p177_p3), 0   ;;  %vm449_vm0 = vcmask (!%p177_p3), 261120   ;;  %vm578_vm3 = vcmask (!%p177_p3), 523264  }
   0x7   : > { %180 = sbr.rel (%p177_p3) target bundleno = 288 (0x120), region = 32  ;;  %802 = vset.pattern.permute.xlu0 (!%p177_p3), %v854_v0  ;;  %803 = vset.pattern.permute.xlu1 (!%p177_p3), %v854_v0 }
   0xe   : > { %s970_s12 = smov (!%p216_p4, %s844_s12), 1 }
   0xf   : > { %s776_s16 = smul.u32 144, %s970_s12  ;;  %s733_s17 = sshll.u32 %s970_s12, 5 }
  0x10   : > { %s902_s20 = scalar_lea.vmem %s963_s2, %s733_s17  ;;  %s775_s24 = smul.u32 48, %s970_s12 }
  0x11   : > { %s907_s23 = scalar_lea.vmem %s962_s1, %s776_s16  ;;  %v287_v1 = vld [vmem:[%s902_s20] sm:$0xff]  ;;  %v289_v2 = vld [vmem:[%s902_s20 + $0x10] sm:$0xff]  ;;  %v288_v3 = vld [vmem:[%s902_s20 + $0x8] sm:$0xff]  ;;  %s241_s30 = scalar_lea.vmem %s964_s3, %s733_s17 }
  0x12   : > { %v804_v4 = vld [vmem:[%s907_s23 + $0x40] sm:$0xff]   ;;  %293 = vperm.xlu0 %802, %v287_v1   ;;  %303 = vperm.xlu1 %803, %v289_v2   ;;  %v806_v6 = vld [vmem:[%s907_s23 + $0x48] sm:$0xff]   ;;  %v808_v8 = vld [vmem:[%s907_s23 + $0x50] sm:$0xff]   ;;  %s927_s27 = scalar_lea.vmem %s961_s0, %s775_s24 }
  0x13   : > { %v805_v5 = vld [vmem:[%s907_s23] sm:$0xff]   ;;  %735 = vmatprep.subr.bf16.mxu0 %v804_v4  ;;  %v807_v7 = vld [vmem:[%s907_s23 + $0x8] sm:$0xff]   ;;  %v809_v9 = vld [vmem:[%s907_s23 + $0x10] sm:$0xff]  }
  0x14   : > { %736 = vmatpush3.bf16.msra.mxu0 %v805_v5  ;;  %v810_v10 = vld [vmem:[%s907_s23 + $0x58] sm:$0xff]   ;;  %v812_v12 = vld [vmem:[%s907_s23 + $0x60] sm:$0xff]   ;;  %v814_v15 = vld [vmem:[%s907_s23 + $0x68] sm:$0xff]  }
  0x15   : > { %737 = vmatprep.subr.bf16.mxu0 %v806_v6  ;;  %v811_v11 = vld [vmem:[%s907_s23 + $0x18] sm:$0xff]   ;;  %v813_v13 = vld [vmem:[%s907_s23 + $0x20] sm:$0xff]   ;;  %v815_v16 = vld [vmem:[%s907_s23 + $0x28] sm:$0xff]  }
  0x16   : > { %298 = vperm.xlu0 %802, %v288_v3   ;;  %v819_v14 = vld [vmem:[%s907_s23 + $0x80] sm:$0xff]   ;;  %v816_v17 = vld [vmem:[%s907_s23 + $0x70] sm:$0xff]   ;;  %v824_v19 = vld [vmem:[%s907_s23 + $0x88] sm:$0xff]  }
  0x17   : > { %767 = vmatprep.subr.bf16.mxu1 %v819_v14  ;;  %v823_v18 = vld [vmem:[%s927_s27 + $0x4] ss:$12 sps:$4 sm:$0xff]   ;;  %v825_v20 = vld [vmem:[%s927_s27 + $0x8] ss:$12 sps:$4 sm:$0xff]   ;;  %v826_v21 = vld [vmem:[%s927_s27 + $0x20] ss:$12 sps:$4 sm:$0xff]  }
  0x18   : > { %738 = vmatpush3.bf16.msra.mxu0 %v807_v7  ;;  %768 = vmatpush3.bf16.msra.mxu1 %v819_v14  ;;  %v290_v22 = vld [vmem:[%s902_s20 + $0x18] sm:$0xff]  ;;  %v817_v23 = vld [vmem:[%s907_s23 + $0x30] sm:$0xff]   ;;  %v821_v26 = vld [vmem:[%s927_s27] ss:$12 sps:$4 sm:$0xff]  }
  0x19   : > { %739 = vmatprep.subr.bf16.mxu0 %v808_v8  ;;  %488 = vmatprep.mubr.bf16.mxu0 %v823_v18  ;;  %v818_v24 = vld [vmem:[%s907_s23 + $0x78] sm:$0xff]  }
  0x1a   : > { %769 = vmatprep.subr.bf16.mxu1 %v824_v19  ;;  %771 = vmatprep.mubr.msk.bf16.mxu1 %vm449_vm0, %v825_v20  ;;  %v820_v25 = vld [vmem:[%s907_s23 + $0x38] sm:$0xff]  }
  0x1b   : > { %308 = vperm.xlu1 %803, %v290_v22   ;;  %v827_v27 = vld [vmem:[%s927_s27 + $0x1c] ss:$12 sps:$4 sm:$0xff]   ;;  %v829_v28 = vld [vmem:[%s927_s27 + $0x18] ss:$12 sps:$4 sm:$0xff]  }
  0x1c   : > { %740 = vmatpush3.bf16.msra.mxu0 %v809_v9  ;;  %770 = vmatpush3.bf16.msra.mxu1 %v824_v19 }
  0x1d   : > { %741 = vmatprep.subr.bf16.mxu0 %v810_v10 }
  0x1f   : > { %772 = vmatmul.mubr.msk.bf16.vlgmr.msra.gmra.mrb[0].mxu1 %vm449_vm0, %v826_v21 }
  0x20   : > { %742 = vmatpush3.bf16.msra.mxu0 %v811_v11 }
  0x21   : > { %743 = vmatprep.subr.bf16.mxu0 %v812_v12 }
  0x24   : > { %744 = vmatpush3.bf16.msra.mxu0 %v813_v13 }
  0x25   : > { %745 = vmatprep.subr.bf16.mxu0 %v814_v15 }
  0x28   : > { %746 = vmatpush3.bf16.msra.mxu0 %v815_v16 }
  0x29   : > { %747 = vmatprep.subr.bf16.mxu0 %v816_v17 }
  0x2c   : > { %748 = vmatpush3.bf16.msra.mxu0 %v817_v23 }
  0x2d   : > { %749 = vmatprep.subr.bf16.mxu0 %v818_v24 }
  0x30   : > { %750 = vmatpush3.bf16.msra.mxu0 %v820_v25 }
  0x33   : > { %489 = vmatmul.mubr.bf16.vlgmr.msra.gmra.mrb[0].mxu0 %v821_v26 }
  0x34   : > { %496 = vmatprep.mubr.bf16.mxu0 %v827_v27 }
  0x3b   : > { %497 = vmatmul.mubr.bf16.gmra.mrb[4].mxu0 %v829_v28 }
  0x91   : > { %v294_v33 = vpop.permute.xlu0 %293  ;;  %v304_v44 = vpop.permute.xlu1 %303 }
  0x95   : > { %v299_v39 = vpop.permute.xlu0 %298 }
  0x9a   : > { %v309_v60 = vpop.permute.xlu1 %308 }
  0xf2   : > { %v773_v29 = vpop.f32.mrb[0].mxu1 }
  0xf3   : > { %v539_v30 = vpop.f32.mrb[1].mxu1 }
  0xf4   : > { %v774_v31 = vpop.f32.mrb[2].mxu1 }
  0xf5   : > { %v542_v32 = vpop.f32.mrb[3].mxu1 }
 0x106   : > { %v751_v34 = vpop.f32.mrb[0].mxu0 }
 0x107   : > { %v752_v35 = vpop.f32.mrb[1].mxu0 }
 0x108   : > { %v753_v36 = vadd.f32 %v752_v35, %v751_v34  ;;  %v754_v37 = vpop.f32.mrb[2].mxu0 }
 0x109   : > { %v755_v38 = vpop.f32.mrb[3].mxu0 }
 0x10a   : > { %v756_v40 = vadd.f32 %v755_v38, %v754_v37  ;;  %v491_v41 = vadd.f32 %v753_v36, %v294_v33 }
 0x10c   : > { %v494_v42 = vadd.f32 %v756_v40, %v299_v39  ;;  %v540_v43 = vadd.f32 %v539_v30, %v491_v41 }
 0x10e   : > { %vm554_vm1 = vcmp.ge.f32.partialorder %v540_v43, 0.0  ;;  %v558_v45 = vmul.f32 0.2, %v540_v43  ;;  %v543_v46 = vadd.f32 %v542_v32, %v494_v42  ;;  %v757_v47 = vpop.f32.mrb[4].mxu0 }
 0x10f   : > { %v758_v48 = vpop.f32.mrb[5].mxu0 }
 0x110   : > { %v562_v49 = vsel %vm554_vm1, %v540_v43, %v558_v45  ;;  %vm555_vm2 = vcmp.ge.f32.partialorder %v543_v46, 0.0  ;;  %v559_v50 = vmul.f32 0.2, %v543_v46  ;;  %v759_v51 = vadd.f32 %v758_v48, %v757_v47  ;;  %v760_v52 = vpop.f32.mrb[6].mxu0 }
 0x111   : > { %v566_v53 = vmul.f32 1.4142135, %v562_v49  ;;  %v761_v54 = vpop.f32.mrb[7].mxu0 }
 0x112   : > { %v563_v55 = vsel %vm555_vm2, %v543_v46, %v559_v50  ;;  %v499_v56 = vadd.f32 %v759_v51, %v304_v44  ;;  %v762_v57 = vadd.f32 %v761_v54, %v760_v52 }
 0x113   : > { %v727_v58 = vclamps-f32 %v566_v53, 256.0  ;;  %v567_v59 = vmul.f32 1.4142135, %v563_v55 }
 0x114   : > { %v548_v61 = vadd.f32 %v773_v29, %v499_v56  ;;  %v502_v62 = vadd.f32 %v762_v57, %v309_v60 }
 0x115   : > { %579 = vst.msk [vmem:[%s241_s30] sm:$0xff] %vm578_vm3, %v727_v58  ;;  %v728_v63 = vclamps-f32 %v567_v59, 256.0 }
 0x116   : > { %vm556_vm4 = vcmp.ge.f32.partialorder %v548_v61, 0.0  ;;  %v560_v0 = vmul.f32 0.2, %v548_v61  ;;  %v551_v1 = vadd.f32 %v774_v31, %v502_v62 }
 0x117   : > { %580 = vst.msk [vmem:[%s241_s30 + $0x8] sm:$0xff] %vm578_vm3, %v728_v63 }
 0x118   : > { %v564_v2 = vsel %vm556_vm4, %v548_v61, %v560_v0  ;;  %vm557_vm5 = vcmp.ge.f32.partialorder %v551_v1, 0.0  ;;  %v561_v3 = vmul.f32 0.2, %v551_v1 }
 0x119   : > { %v568_v4 = vmul.f32 1.4142135, %v564_v2 }
 0x11a   : > { %v565_v5 = vsel %vm557_vm5, %v551_v1, %v561_v3 }
 0x11b   : > { %v729_v6 = vclamps-f32 %v568_v4, 256.0  ;;  %v569_v7 = vmul.f32 1.4142135, %v565_v5 }
 0x11d   : > { %581 = vst.msk [vmem:[%s241_s30 + $0x10] sm:$0xff] %vm578_vm3, %v729_v6  ;;  %v730_v8 = vclamps-f32 %v569_v7, 256.0 }
 0x11f   : > { %582 = vst.msk [vmem:[%s241_s30 + $0x18] sm:$0xff] %vm578_vm3, %v730_v8 }
 0x120 PF: > { %s13_s14 = sadd.s32 1, %s852_s14   ;;  %s965_s12 = smov %s848_s13 }
 0x121   : > { %p10_p5 = scmp.ge.s32.totalorder %s13_s14, 4   ;;  %s966_s13 = smov %s968_s15 }
 0x123   :  { %12 = sbr.rel (!%p10_p5) target bundleno = 2 (0x2), region = 68 }

// kernel: _forward.18
= control target key start
LH: loop header
LB: loop body
LE: loop exit
PB: predicated region body
PF: predicated region fallthrough
CT: control target
= control target key end

     0   :  { %s1049_s12 = smov 0   ;;  %s1051_s13 = smov 0   ;;  %s1166_s0 = inlined_call_operand.vmem [shape: bf16[2,64,288], index: 0, kind: input, shape index: {}]   ;;  %s1167_s1 = inlined_call_operand.vmem [shape: bf16[2,288,16], index: 1, kind: input, shape index: {}]   ;;  %s1168_s2 = inlined_call_operand.vmem [shape: f32[2,64,1], index: 2, kind: input, shape index: {}]   ;;  %s1169_s3 = inlined_call_operand.vmem [shape: f32[2,64,16], index: 3, kind: output, shape index: {}]  }
   0x1   :  { %s1053_s14 = smov 0  }
   0x2 LB: > { %s25_s15 = sadd.s32 1, %s1022_s13  ;;  %p814_p0 = scmp.ge.s32.totalorder %s1026_s14, 1  ;;  %s1026_s14 = sphi %s1053_s14, %s13_s14   ;;  %s1022_s13 = sphi %s1051_s13, %s1171_s13   ;;  %s1018_s12 = sphi %s1049_s12, %s1170_s12  }
   0x3   : > { %p27_p1 = scmp.ge.s32.totalorder %s25_s15, 2  ;;  %p176_p2 = scmp.lt.s32.totalorder %s1026_s14, 3 }
   0x5   : > { %s1173_s15 = smov (%p27_p1, %s25_s15), 0  ;;  %p177_p3 = pnand %p814_p0, %p176_p2 }
   0x6   : > { %p216_p4 = scmp.lt.s32.totalorder (!%p177_p3), %s1018_s12, 1  ;;  %v1028_v0 = vmov (!%p177_p3), 0   ;;  %vm511_vm0 = vcmask (!%p177_p3), 261120   ;;  %vm694_vm2 = vcmask (!%p177_p3), 130048  }
   0x7   : > { %180 = sbr.rel (%p177_p3) target bundleno = 295 (0x127), region = 32  ;;  %969 = vset.pattern.permute.xlu1 (!%p177_p3), %v1028_v0  ;;  %968 = vset.pattern.permute.xlu0 (!%p177_p3), %v1028_v0 }
   0xe   : > { %s1175_s12 = smov (!%p216_p4, %s1018_s12), 1 }
   0xf   : > { %s942_s16 = smul.u32 144, %s1175_s12  ;;  %s865_s17 = sshll.u32 %s1175_s12, 6 }
  0x10   : > { %s1076_s20 = scalar_lea.vmem %s1168_s2, %s865_s17  ;;  %s941_s24 = smul.u32 96, %s1175_s12 }
  0x11   : > { %s1081_s23 = scalar_lea.vmem %s1167_s1, %s942_s16  ;;  %v297_v1 = vld [vmem:[%s1076_s20 + $0x10] sm:$0xff]  ;;  %v295_v2 = vld [vmem:[%s1076_s20] sm:$0xff]  ;;  %v298_v4 = vld [vmem:[%s1076_s20 + $0x18] sm:$0xff]  ;;  %s1138_s30 = scalar_lea.vmem %s1169_s3, %s865_s17 }
  0x12   : > { %v970_v3 = vld [vmem:[%s1081_s23 + $0x40] sm:$0xff]   ;;  %315 = vperm.xlu1 %969, %v297_v1   ;;  %305 = vperm.xlu0 %968, %v295_v2   ;;  %v972_v6 = vld [vmem:[%s1081_s23 + $0x48] sm:$0xff]   ;;  %v974_v8 = vld [vmem:[%s1081_s23 + $0x50] sm:$0xff]   ;;  %s1099_s27 = scalar_lea.vmem %s1166_s0, %s941_s24 }
  0x13   : > { %v971_v5 = vld [vmem:[%s1081_s23] sm:$0xff]   ;;  %867 = vmatprep.subr.bf16.mxu0 %v970_v3  ;;  %925 = vmatprep.subr.bf16.mxu1 %v970_v3  ;;  %v973_v7 = vld [vmem:[%s1081_s23 + $0x8] sm:$0xff]   ;;  %v975_v9 = vld [vmem:[%s1081_s23 + $0x10] sm:$0xff]  }
  0x14   : > { %868 = vmatpush3.bf16.msra.mxu0 %v971_v5  ;;  %933 = vmatpush3.bf16.msra.mxu1 %v971_v5  ;;  %v976_v10 = vld [vmem:[%s1081_s23 + $0x58] sm:$0xff]   ;;  %v978_v12 = vld [vmem:[%s1081_s23 + $0x60] sm:$0xff]   ;;  %v980_v14 = vld [vmem:[%s1081_s23 + $0x68] sm:$0xff]  }
  0x15   : > { %869 = vmatprep.subr.bf16.mxu0 %v972_v6  ;;  %926 = vmatprep.subr.bf16.mxu1 %v972_v6  ;;  %v977_v11 = vld [vmem:[%s1081_s23 + $0x18] sm:$0xff]   ;;  %v979_v13 = vld [vmem:[%s1081_s23 + $0x20] sm:$0xff]   ;;  %v981_v17 = vld [vmem:[%s1081_s23 + $0x28] sm:$0xff]  }
  0x16   : > { %320 = vperm.xlu1 %969, %v298_v4   ;;  %v988_v15 = vld [vmem:[%s1099_s27 + $0x4] ss:$12 sps:$4 sm:$0xff]   ;;  %v991_v16 = vld [vmem:[%s1099_s27 + $0x4c] ss:$12 sps:$4 sm:$0xff]   ;;  %v989_v26 = vld [vmem:[%s1099_s27 + $0x48] ss:$12 sps:$4 sm:$0xff]  }
  0x17   : > { %v982_v18 = vld [vmem:[%s1081_s23 + $0x70] sm:$0xff]   ;;  %556 = vmatprep.mubr.bf16.mxu0 %v988_v15  ;;  %580 = vmatprep.mubr.bf16.mxu1 %v991_v16  ;;  %v984_v20 = vld [vmem:[%s1081_s23 + $0x78] sm:$0xff]   ;;  %v296_v22 = vld [vmem:[%s1076_s20 + $0x8] sm:$0xff] }
  0x18   : > { %870 = vmatpush3.bf16.msra.mxu0 %v973_v7  ;;  %934 = vmatpush3.bf16.msra.mxu1 %v973_v7  ;;  %v983_v19 = vld [vmem:[%s1081_s23 + $0x30] sm:$0xff]   ;;  %v985_v21 = vld [vmem:[%s1081_s23 + $0x38] sm:$0xff]   ;;  %v300_v23 = vld [vmem:[%s1076_s20 + $0x28] sm:$0xff] }
  0x19   : > { %871 = vmatprep.subr.bf16.mxu0 %v974_v8  ;;  %927 = vmatprep.subr.bf16.mxu1 %v974_v8  ;;  %v992_v24 = vld [vmem:[%s1081_s23 + $0x80] sm:$0xff]   ;;  %v302_v28 = vld [vmem:[%s1076_s20 + $0x38] sm:$0xff]  ;;  %v993_v30 = vld [vmem:[%s1081_s23 + $0x88] sm:$0xff]  }
  0x1a   : > { %v986_v25 = vld [vmem:[%s1099_s27] ss:$12 sps:$4 sm:$0xff]   ;;  %310 = vperm.xlu0 %968, %v296_v22   ;;  %330 = vperm.xlu1 %969, %v300_v23   ;;  %v994_v29 = vld [vmem:[%s1099_s27 + $0x1c] ss:$12 sps:$4 sm:$0xff]   ;;  %v301_v32 = vld [vmem:[%s1076_s20 + $0x30] sm:$0xff] }
  0x1b   : > { %v299_v27 = vld [vmem:[%s1076_s20 + $0x20] sm:$0xff]  ;;  %v996_v31 = vld [vmem:[%s1099_s27 + $0x8] ss:$12 sps:$4 sm:$0xff]   ;;  %v1002_v37 = vld [vmem:[%s1099_s27 + $0x30] ss:$12 sps:$4 sm:$0xff]  }
  0x1c   : > { %872 = vmatpush3.bf16.msra.mxu0 %v975_v9  ;;  %935 = vmatpush3.bf16.msra.mxu1 %v975_v9  ;;  %v997_v33 = vld [vmem:[%s1099_s27 + $0x18] ss:$12 sps:$4 sm:$0xff]   ;;  %v998_v34 = vld [vmem:[%s1099_s27 + $0x20] ss:$12 sps:$4 sm:$0xff]   ;;  %v1003_v38 = vld [vmem:[%s1099_s27 + $0x50] ss:$12 sps:$4 sm:$0xff]  }
  0x1d   : > { %873 = vmatprep.subr.bf16.mxu0 %v976_v10  ;;  %928 = vmatprep.subr.bf16.mxu1 %v976_v10  ;;  %v999_v35 = vld [vmem:[%s1099_s27 + $0x34] ss:$12 sps:$4 sm:$0xff]   ;;  %v1001_v36 = vld [vmem:[%s1099_s27 + $0x38] ss:$12 sps:$4 sm:$0xff]  }
  0x1e   : > { %325 = vperm.xlu0 %968, %v299_v27   ;;  %340 = vperm.xlu1 %969, %v302_v28  }
  0x20   : > { %874 = vmatpush3.bf16.msra.mxu0 %v977_v11  ;;  %936 = vmatpush3.bf16.msra.mxu1 %v977_v11 }
  0x21   : > { %875 = vmatprep.subr.bf16.mxu0 %v978_v12  ;;  %929 = vmatprep.subr.bf16.mxu1 %v978_v12 }
  0x22   : > { %335 = vperm.xlu0 %968, %v301_v32  }
  0x24   : > { %876 = vmatpush3.bf16.msra.mxu0 %v979_v13  ;;  %937 = vmatpush3.bf16.msra.mxu1 %v979_v13 }
  0x25   : > { %877 = vmatprep.subr.bf16.mxu0 %v980_v14  ;;  %930 = vmatprep.subr.bf16.mxu1 %v980_v14 }
  0x28   : > { %878 = vmatpush3.bf16.msra.mxu0 %v981_v17  ;;  %938 = vmatpush3.bf16.msra.mxu1 %v981_v17 }
  0x29   : > { %879 = vmatprep.subr.bf16.mxu0 %v982_v18  ;;  %931 = vmatprep.subr.bf16.mxu1 %v982_v18 }
  0x2c   : > { %880 = vmatpush3.bf16.msra.mxu0 %v983_v19  ;;  %939 = vmatpush3.bf16.msra.mxu1 %v983_v19 }
  0x2d   : > { %881 = vmatprep.subr.bf16.mxu0 %v984_v20  ;;  %932 = vmatprep.subr.bf16.mxu1 %v984_v20 }
  0x30   : > { %882 = vmatpush3.bf16.msra.mxu0 %v985_v21  ;;  %940 = vmatpush3.bf16.msra.mxu1 %v985_v21 }
  0x31   : > { %913 = vmatprep.subr.bf16.mxu1 %v992_v24 }
  0x33   : > { %557 = vmatmul.mubr.bf16.vlgmr.msra.gmra.mrb[0].mxu0 %v986_v25  ;;  %581 = vmatmul.mubr.bf16.vlgmr.msra.gmra.mrb[0].mxu1 %v989_v26 }
  0x34   : > { %914 = vmatpush3.bf16.msra.mxu1 %v992_v24  ;;  %564 = vmatprep.mubr.bf16.mxu0 %v994_v29 }
  0x35   : > { %915 = vmatprep.subr.bf16.mxu1 %v993_v30  ;;  %917 = vmatprep.mubr.msk.bf16.mxu1 %vm511_vm0, %v996_v31 }
  0x38   : > { %916 = vmatpush3.bf16.msra.mxu1 %v993_v30 }
  0x3b   : > { %565 = vmatmul.mubr.bf16.gmra.mrb[4].mxu0 %v997_v33  ;;  %918 = vmatmul.mubr.msk.bf16.vlgmr.msra.gmra.mrb[4].mxu1 %vm511_vm0, %v998_v34 }
  0x3c   : > { %572 = vmatprep.mubr.bf16.mxu0 %v999_v35  ;;  %921 = vmatprep.mubr.msk.bf16.mxu1 %vm511_vm0, %v1001_v36 }
  0x43   : > { %573 = vmatmul.mubr.bf16.gmra.mrb[8].mxu0 %v1002_v37  ;;  %922 = vmatmul.mubr.msk.bf16.gmra.mrb[8].mxu1 %vm511_vm0, %v1003_v38 }
  0x91   : > { %v316_v39 = vpop.permute.xlu1 %315  ;;  %v306_v40 = vpop.permute.xlu0 %305 }
  0x95   : > { %v321_v41 = vpop.permute.xlu1 %320 }
  0x99   : > { %v311_v42 = vpop.permute.xlu0 %310  ;;  %v1131_v56 = vpop.permute.xlu1 %330 }
  0x9d   : > { %v326_v55 = vpop.permute.xlu0 %325  ;;  %v341_v10 = vpop.permute.xlu1 %340 }
  0xa1   : > { %v336_v5 = vpop.permute.xlu0 %335 }
 0x106   : > { %v883_v43 = vpop.f32.mrb[0].mxu0  ;;  %v901_v44 = vpop.f32.mrb[0].mxu1 }
 0x107   : > { %v884_v45 = vpop.f32.mrb[1].mxu0  ;;  %v902_v46 = vpop.f32.mrb[1].mxu1 }
 0x108   : > { %v885_v47 = vadd.f32 %v884_v45, %v883_v43  ;;  %v886_v48 = vpop.f32.mrb[2].mxu0  ;;  %v903_v49 = vadd.f32 %v902_v46, %v901_v44  ;;  %v904_v50 = vpop.f32.mrb[2].mxu1 }
 0x109   : > { %v887_v51 = vpop.f32.mrb[3].mxu0  ;;  %v905_v52 = vpop.f32.mrb[3].mxu1 }
 0x10a   : > { %v888_v53 = vadd.f32 %v887_v51, %v886_v48  ;;  %v906_v54 = vadd.f32 %v905_v52, %v904_v50  ;;  %v559_v59 = vadd.f32 %v885_v47, %v306_v40  ;;  %v583_v14 = vadd.f32 %v903_v49, %v336_v5 }
 0x10c   : > { %v562_v3 = vadd.f32 %v888_v53, %v311_v42  ;;  %v586_v21 = vadd.f32 %v906_v54, %v341_v10 }
 0x10e   : > { %v889_v57 = vpop.f32.mrb[4].mxu0  ;;  %v919_v58 = vpop.f32.mrb[4].mxu1 }
 0x10f   : > { %v890_v60 = vpop.f32.mrb[5].mxu0  ;;  %v623_v61 = vpop.f32.mrb[5].mxu1 }
 0x110   : > { %v891_v62 = vadd.f32 %v890_v60, %v889_v57  ;;  %v624_v63 = vadd.f32 %v623_v61, %v559_v59  ;;  %v892_v0 = vpop.f32.mrb[6].mxu0  ;;  %v920_v1 = vpop.f32.mrb[6].mxu1 }
 0x111   : > { %v893_v2 = vpop.f32.mrb[7].mxu0  ;;  %v626_v4 = vpop.f32.mrb[7].mxu1 }
 0x112   : > { %v567_v6 = vadd.f32 %v891_v62, %v316_v39  ;;  %vm654_vm1 = vcmp.ge.f32.partialorder %v624_v63, 0.0  ;;  %v662_v7 = vmul.f32 0.2, %v624_v63  ;;  %v894_v8 = vadd.f32 %v893_v2, %v892_v0 }
 0x113   : > { %v627_v9 = vadd.f32 %v626_v4, %v562_v3 }
 0x114   : > { %v632_v11 = vadd.f32 %v919_v58, %v567_v6  ;;  %v670_v12 = vsel %vm654_vm1, %v624_v63, %v662_v7  ;;  %v570_v13 = vadd.f32 %v894_v8, %v321_v41 }
 0x115   : > { %v855_v15 = vclamps-f32 %v670_v12, 181.01933  ;;  %vm655_vm3 = vcmp.ge.f32.partialorder %v627_v9, 0.0  ;;  %v663_v16 = vmul.f32 0.2, %v627_v9 }
 0x116   : > { %vm656_vm4 = vcmp.ge.f32.partialorder %v632_v11, 0.0  ;;  %v664_v17 = vmul.f32 0.2, %v632_v11  ;;  %v635_v18 = vadd.f32 %v920_v1, %v570_v13  ;;  %v895_v19 = vpop.f32.mrb[8].mxu0  ;;  %v923_v20 = vpop.f32.mrb[8].mxu1 }
 0x117   : > { %695 = vst.msk [vmem:[%s1138_s30] sm:$0xff] %vm694_vm2, %v855_v15  ;;  %v671_v22 = vsel %vm655_vm3, %v627_v9, %v663_v16  ;;  %v648_v23 = vadd.f32 %v923_v20, %v583_v14  ;;  %v896_v24 = vpop.f32.mrb[9].mxu0  ;;  %v639_v25 = vpop.f32.mrb[9].mxu1 }
 0x118   : > { %v672_v26 = vsel %vm656_vm4, %v632_v11, %v664_v17  ;;  %vm657_vm5 = vcmp.ge.f32.partialorder %v635_v18, 0.0  ;;  %v665_v27 = vmul.f32 0.2, %v635_v18  ;;  %v856_v28 = vclamps-f32 %v671_v22, 181.01933  ;;  %v898_v29 = vpop.f32.mrb[10].mxu0 }
 0x119   : > { %v857_v30 = vclamps-f32 %v672_v26, 181.01933  ;;  %vm660_vm6 = vcmp.ge.f32.partialorder %v648_v23, 0.0  ;;  %v668_v31 = vmul.f32 0.2, %v648_v23  ;;  %v897_v32 = vadd.f32 %v896_v24, %v895_v19  ;;  %v924_v33 = vpop.f32.mrb[10].mxu1 }
 0x11a   : > { %v673_v34 = vsel %vm657_vm5, %v635_v18, %v665_v27  ;;  %696 = vst.msk [vmem:[%s1138_s30 + $0x8] sm:$0xff] %vm694_vm2, %v856_v28  ;;  %v651_v35 = vadd.f32 %v924_v33, %v586_v21  ;;  %v899_v36 = vpop.f32.mrb[11].mxu0  ;;  %v642_v37 = vpop.f32.mrb[11].mxu1 }
 0x11b   : > { %697 = vst.msk [vmem:[%s1138_s30 + $0x10] sm:$0xff] %vm694_vm2, %v857_v30  ;;  %v858_v38 = vclamps-f32 %v673_v34, 181.01933  ;;  %v676_v39 = vsel %vm660_vm6, %v648_v23, %v668_v31  ;;  %v575_v40 = vadd.f32 %v897_v32, %v326_v55  ;;  %v900_v41 = vadd.f32 %v899_v36, %v898_v29 }
 0x11c   : > { %v861_v42 = vclamps-f32 %v676_v39, 181.01933  ;;  %vm661_vm7 = vcmp.ge.f32.partialorder %v651_v35, 0.0  ;;  %v669_v43 = vmul.f32 0.2, %v651_v35 }
 0x11d   : > { %698 = vst.msk [vmem:[%s1138_s30 + $0x18] sm:$0xff] %vm694_vm2, %v858_v38  ;;  %v640_v44 = vadd.f32 %v639_v25, %v575_v40  ;;  %v578_v45 = vadd.f32 %v900_v41, %v1131_v56 }
 0x11e   : > { %701 = vst.msk [vmem:[%s1138_s30 + $0x30] sm:$0xff] %vm694_vm2, %v861_v42  ;;  %v677_v46 = vsel %vm661_vm7, %v651_v35, %v669_v43 }
 0x11f   : > { %vm658_vm8 = vcmp.ge.f32.partialorder %v640_v44, 0.0  ;;  %v666_v47 = vmul.f32 0.2, %v640_v44  ;;  %v862_v48 = vclamps-f32 %v677_v46, 181.01933  ;;  %v643_v49 = vadd.f32 %v642_v37, %v578_v45 }
 0x121   : > { %v674_v50 = vsel %vm658_vm8, %v640_v44, %v666_v47  ;;  %702 = vst.msk [vmem:[%s1138_s30 + $0x38] sm:$0xff] %vm694_vm2, %v862_v48  ;;  %vm659_vm9 = vcmp.ge.f32.partialorder %v643_v49, 0.0  ;;  %v667_v51 = vmul.f32 0.2, %v643_v49 }
 0x122   : > { %v859_v52 = vclamps-f32 %v674_v50, 181.01933 }
 0x123   : > { %v675_v53 = vsel %vm659_vm9, %v643_v49, %v667_v51 }
 0x124   : > { %699 = vst.msk [vmem:[%s1138_s30 + $0x20] sm:$0xff] %vm694_vm2, %v859_v52  ;;  %v860_v54 = vclamps-f32 %v675_v53, 181.01933 }
 0x126   : > { %700 = vst.msk [vmem:[%s1138_s30 + $0x28] sm:$0xff] %vm694_vm2, %v860_v54 }
 0x127 PF: > { %s13_s14 = sadd.s32 1, %s1026_s14   ;;  %s1170_s12 = smov %s1022_s13 }
 0x128   : > { %p10_p5 = scmp.ge.s32.totalorder %s13_s14, 4   ;;  %s1171_s13 = smov %s1173_s15 }
 0x12a   :  { %12 = sbr.rel (!%p10_p5) target bundleno = 2 (0x2), region = 68 }

// kernel: _forward.20
= control target key start
LH: loop header
LB: loop body
LE: loop exit
PB: predicated region body
PF: predicated region fallthrough
CT: control target
= control target key end

     0   :  { %v1013_v4 = vmov 0   ;;  %vm495_vm0 = vcmask 1043456   ;;  %vm496_vm1 = vcmask 1044480   ;;  %v1014_v47 = vmov 65535   ;;  %s1272_s1 = inlined_call_operand.vmem [shape: bf16[1,585,16], index: 1, kind: input, shape index: {}]   ;;  %s1273_s0 = inlined_call_operand.vmem [shape: bf16[1,64,585], index: 0, kind: input, shape index: {}]   ;;  %s1274_s2 = inlined_call_operand.vmem [shape: f32[1,64,1], index: 2, kind: input, shape index: {}]   ;;  %s1275_s3 = inlined_call_operand.vmem [shape: f32[1,64,16], index: 3, kind: output, shape index: {}]  }
   0x1   :  { %v948_v0 = vld [vmem:[%s1272_s1 + $0x40] sm:$0xff]   ;;  %946 = vset.pattern.permute.xlu0 %v1013_v4  ;;  %v952_v5 = vld [vmem:[%s1272_s1 + $0x48] sm:$0xff]   ;;  %947 = vset.pattern.permute.xlu1 %v1013_v4  ;;  %v956_v9 = vld [vmem:[%s1272_s1 + $0x50] sm:$0xff]   ;;  %v497_v48 = vsel %vm495_vm0, 4294967295, %v1014_v47  ;;  %vm482_vm2 = vcmask 596992   ;;  %vm745_vm3 = vcmask 130048  }
   0x2   :  { %v949_v1 = vld [vmem:[%s1272_s1 + $0xc0] sm:$0xff]   ;;  %827 = vmatprep.subr.bf16.mxu0 %v948_v0  ;;  %v953_v6 = vld [vmem:[%s1272_s1 + $0xc8] sm:$0xff]   ;;  %v957_v10 = vld [vmem:[%s1272_s1 + $0xd0] sm:$0xff]   ;;  %v498_v50 = vsel %vm496_vm1, %v497_v48, 0 }
   0x3   :  { %v950_v2 = vld [vmem:[%s1272_s1] sm:$0xff]   ;;  %867 = vmatprep.subr.bf16.mxu1 %v949_v1  ;;  %v954_v7 = vld [vmem:[%s1272_s1 + $0x8] sm:$0xff]   ;;  %v958_v11 = vld [vmem:[%s1272_s1 + $0x10] sm:$0xff]  }
   0x4   :  { %v951_v3 = vld [vmem:[%s1272_s1 + $0x80] sm:$0xff]   ;;  %828 = vmatpush3.bf16.msra.mxu0 %v950_v2  ;;  %v955_v8 = vld [vmem:[%s1272_s1 + $0x88] sm:$0xff]   ;;  %v959_v12 = vld [vmem:[%s1272_s1 + $0x90] sm:$0xff]  }
   0x5   :  { %868 = vmatpush3.bf16.msra.mxu1 %v951_v3  ;;  %829 = vmatprep.subr.bf16.mxu0 %v952_v5  ;;  %v960_v13 = vld [vmem:[%s1272_s1 + $0x58] sm:$0xff]   ;;  %v964_v17 = vld [vmem:[%s1272_s1 + $0x60] sm:$0xff]   ;;  %v968_v21 = vld [vmem:[%s1272_s1 + $0x68] sm:$0xff]  }
   0x6   :  { %869 = vmatprep.subr.bf16.mxu1 %v953_v6  ;;  %v961_v14 = vld [vmem:[%s1272_s1 + $0xd8] sm:$0xff]   ;;  %v965_v18 = vld [vmem:[%s1272_s1 + $0xe0] sm:$0xff]   ;;  %v969_v22 = vld [vmem:[%s1272_s1 + $0xe8] sm:$0xff]  }
   0x7   :  { %v962_v15 = vld [vmem:[%s1272_s1 + $0x18] sm:$0xff]   ;;  %v966_v19 = vld [vmem:[%s1272_s1 + $0x20] sm:$0xff]   ;;  %v970_v23 = vld [vmem:[%s1272_s1 + $0x28] sm:$0xff]  }
   0x8   :  { %830 = vmatpush3.bf16.msra.mxu0 %v954_v7  ;;  %v963_v16 = vld [vmem:[%s1272_s1 + $0x98] sm:$0xff]   ;;  %v967_v20 = vld [vmem:[%s1272_s1 + $0xa0] sm:$0xff]   ;;  %v971_v24 = vld [vmem:[%s1272_s1 + $0xa8] sm:$0xff]  }
   0x9   :  { %870 = vmatpush3.bf16.msra.mxu1 %v955_v8  ;;  %831 = vmatprep.subr.bf16.mxu0 %v956_v9  ;;  %v972_v25 = vld [vmem:[%s1272_s1 + $0x70] sm:$0xff]   ;;  %v976_v29 = vld [vmem:[%s1272_s1 + $0x78] sm:$0xff]   ;;  %v985_v36 = vld [vmem:[%s1273_s0 + $0xc] ss:$20 sps:$4 sm:$0xff]  }
   0xa   :  { %871 = vmatprep.subr.bf16.mxu1 %v957_v10  ;;  %v973_v26 = vld [vmem:[%s1272_s1 + $0xf0] sm:$0xff]   ;;  %v977_v30 = vld [vmem:[%s1272_s1 + $0xf8] sm:$0xff]   ;;  %v986_v37 = vld [vmem:[%s1272_s1 + $0x100] sm:$0xff]   ;;  %599 = vmatprep.mubr.bf16.mxu1 %v985_v36 }
   0xb   :  { %v974_v27 = vld [vmem:[%s1272_s1 + $0x30] sm:$0xff]   ;;  %v978_v31 = vld [vmem:[%s1272_s1 + $0x38] sm:$0xff]   ;;  %v987_v38 = vld [vmem:[%s1273_s0 + $0x2c] ss:$20 sps:$4 sm:$0xff]  }
   0xc   :  { %832 = vmatpush3.bf16.msra.mxu0 %v958_v11  ;;  %v975_v28 = vld [vmem:[%s1272_s1 + $0xb0] sm:$0xff]   ;;  %v979_v32 = vld [vmem:[%s1272_s1 + $0xb8] sm:$0xff]   ;;  %v991_v40 = vld [vmem:[%s1272_s1 + $0x108] sm:$0xff]  }
   0xd   :  { %872 = vmatpush3.bf16.msra.mxu1 %v959_v12  ;;  %833 = vmatprep.subr.bf16.mxu0 %v960_v13  ;;  %v980_v33 = vld [vmem:[%s1273_s0] ss:$20 sps:$4 sm:$0xff]   ;;  %v982_v34 = vld [vmem:[%s1273_s0 + $0x4] ss:$20 sps:$4 sm:$0xff]   ;;  %v983_v35 = vld [vmem:[%s1273_s0 + $0x8] ss:$20 sps:$4 sm:$0xff]  }
   0xe   :  { %873 = vmatprep.subr.bf16.mxu1 %v961_v14  ;;  %534 = vmatprep.mubr.bf16.mxu0 %v982_v34  ;;  %v989_v39 = vld [vmem:[%s1273_s0 + $0x34] ss:$20 sps:$4 sm:$0xff]   ;;  %v993_v42 = vld [vmem:[%s1273_s0 + $0x30] ss:$20 sps:$4 sm:$0xff]   ;;  %v1001_v46 = vld [vmem:[%s1272_s1 + $0x118] sm:$0xff]  }
   0xf   :  { %v992_v41 = vld [vmem:[%s1273_s0 + $0x28] ss:$20 sps:$4 sm:$0xff]   ;;  %v994_v43 = vld [vmem:[%s1272_s1 + $0x110] sm:$0xff]   ;;  %v1008_v51 = vld [vmem:[%s1272_s1 + $0x120] sm:$0x1f]  }
  0x10   :  { %834 = vmatpush3.bf16.msra.mxu0 %v962_v15  ;;  %v995_v44 = vld [vmem:[%s1273_s0 + $0x54] ss:$20 sps:$4 sm:$0xff]   ;;  %v997_v45 = vld [vmem:[%s1273_s0 + $0x5c] ss:$20 sps:$4 sm:$0xff]   ;;  %v1000_v52 = vld [vmem:[%s1273_s0 + $0x58] ss:$20 sps:$4 sm:$0xff]   ;;  %v500_v54 = vand.u32 %v1008_v51, %v498_v50 }
  0x11   :  { %874 = vmatpush3.bf16.msra.mxu1 %v963_v16  ;;  %835 = vmatprep.subr.bf16.mxu0 %v964_v17  ;;  %v999_v49 = vld [vmem:[%s1273_s0 + $0x50] ss:$20 sps:$4 sm:$0xff]   ;;  %v1006_v58 = vld [vmem:[%s1273_s0 + $0x78] ss:$20 sps:$4 sm:$0xff]   ;;  %v1007_v60 = vld [vmem:[%s1273_s0 + $0x80] ss:$20 sps:$4 sm:$0xff]  }
  0x12   :  { %875 = vmatprep.subr.bf16.mxu1 %v965_v18  ;;  %v1002_v53 = vld [vmem:[%s1273_s0 + $0x7c] ss:$20 sps:$4 sm:$0xff]   ;;  %v1004_v55 = vld [vmem:[%s1273_s0 + $0x84] ss:$20 sps:$4 sm:$0xff]   ;;  %v114_v59 = vld [vmem:[%s1274_s2 + $0x8] sm:$0xff] }
  0x13   :  { %v113_v56 = vld [vmem:[%s1274_s2] sm:$0xff]  ;;  %v115_v57 = vld [vmem:[%s1274_s2 + $0x10] sm:$0xff]  ;;  %v116_v62 = vld [vmem:[%s1274_s2 + $0x18] sm:$0xff] }
  0x14   :  { %836 = vmatpush3.bf16.msra.mxu0 %v966_v19  ;;  %123 = vperm.xlu0 %946, %v113_v56   ;;  %v1009_v61 = vld [vmem:[%s1273_s0 + $0x10] ss:$20 sps:$4 sm:$0xff]   ;;  %v1010_v63 = vld [vmem:[%s1273_s0 + $0x60] ss:$20 sps:$4 sm:$0xff]   ;;  %v118_v1 = vld [vmem:[%s1274_s2 + $0x28] sm:$0xff] }
  0x15   :  { %876 = vmatpush3.bf16.msra.mxu1 %v967_v20  ;;  %837 = vmatprep.subr.bf16.mxu0 %v968_v21  ;;  %v117_v0 = vld [vmem:[%s1274_s2 + $0x20] sm:$0xff]  ;;  %v1011_v2 = vld [vmem:[%s1273_s0 + $0x38] ss:$20 sps:$4 sm:$0xff]   ;;  %v119_v3 = vld [vmem:[%s1274_s2 + $0x30] sm:$0xff] }
  0x16   :  { %877 = vmatprep.subr.bf16.mxu1 %v969_v22  ;;  %133 = vperm.xlu1 %947, %v115_v57   ;;  %v1012_v4 = vld [vmem:[%s1273_s0 + $0x88] ss:$20 sps:$4 sm:$0xff]  }
  0x17   :  { %v120_v5 = vld [vmem:[%s1274_s2 + $0x38] sm:$0xff] }
  0x18   :  { %838 = vmatpush3.bf16.msra.mxu0 %v970_v23  ;;  %128 = vperm.xlu0 %946, %v114_v59  }
  0x19   :  { %878 = vmatpush3.bf16.msra.mxu1 %v971_v24  ;;  %839 = vmatprep.subr.bf16.mxu0 %v972_v25 }
  0x1a   :  { %879 = vmatprep.subr.bf16.mxu1 %v973_v26  ;;  %138 = vperm.xlu1 %947, %v116_v62  }
  0x1c   :  { %840 = vmatpush3.bf16.msra.mxu0 %v974_v27  ;;  %143 = vperm.xlu0 %946, %v117_v0  }
  0x1d   :  { %880 = vmatpush3.bf16.msra.mxu1 %v975_v28  ;;  %841 = vmatprep.subr.bf16.mxu0 %v976_v29 }
  0x1e   :  { %881 = vmatprep.subr.bf16.mxu1 %v977_v30  ;;  %148 = vperm.xlu1 %947, %v118_v1  }
  0x20   :  { %842 = vmatpush3.bf16.msra.mxu0 %v978_v31  ;;  %153 = vperm.xlu0 %946, %v119_v3  }
  0x21   :  { %882 = vmatpush3.bf16.msra.mxu1 %v979_v32  ;;  %916 = vmatprep.subr.bf16.mxu0 %v986_v37 }
  0x22   :  { %934 = vmatprep.subr.bf16.mxu1 %v986_v37  ;;  %158 = vperm.xlu1 %947, %v120_v5  }
  0x23   :  { %535 = vmatmul.mubr.bf16.vlgmr.msra.gmra.mrb[0].mxu0 %v980_v33 }
  0x24   :  { %600 = vmatmul.mubr.bf16.vlgmr.msra.gmra.mrb[0].mxu1 %v983_v35  ;;  %917 = vmatpush3.bf16.msra.mxu0 %v986_v37 }
  0x25   :  { %939 = vmatpush3.bf16.msra.mxu1 %v986_v37  ;;  %542 = vmatprep.mubr.bf16.mxu0 %v987_v38 }
  0x26   :  { %607 = vmatprep.mubr.bf16.mxu1 %v989_v39  ;;  %918 = vmatprep.subr.bf16.mxu0 %v991_v40 }
  0x27   :  { %935 = vmatprep.subr.bf16.mxu1 %v991_v40 }
  0x28   :  { %919 = vmatpush3.bf16.msra.mxu0 %v991_v40 }
  0x29   :  { %940 = vmatpush3.bf16.msra.mxu1 %v991_v40  ;;  %920 = vmatprep.subr.bf16.mxu0 %v994_v43 }
  0x2a   :  { %936 = vmatprep.subr.bf16.mxu1 %v994_v43 }
  0x2b   :  { %543 = vmatmul.mubr.bf16.gmra.mrb[4].mxu0 %v992_v41 }
  0x2c   :  { %608 = vmatmul.mubr.bf16.gmra.mrb[4].mxu1 %v993_v42  ;;  %550 = vmatprep.mubr.bf16.mxu0 %v995_v44 }
  0x2d   :  { %921 = vmatpush3.bf16.msra.mxu0 %v994_v43  ;;  %615 = vmatprep.mubr.bf16.mxu1 %v997_v45 }
  0x2e   :  { %941 = vmatpush3.bf16.msra.mxu1 %v994_v43  ;;  %922 = vmatprep.subr.bf16.mxu0 %v1001_v46 }
  0x2f   :  { %937 = vmatprep.subr.bf16.mxu1 %v1001_v46 }
  0x31   :  { %923 = vmatpush3.bf16.msra.mxu0 %v1001_v46 }
  0x32   :  { %942 = vmatpush3.bf16.msra.mxu1 %v1001_v46  ;;  %924 = vmatprep.subr.bf16.mxu0 %v500_v54 }
  0x33   :  { %551 = vmatmul.mubr.bf16.gmra.mrb[8].mxu0 %v999_v49  ;;  %938 = vmatprep.subr.bf16.mxu1 %v500_v54 }
  0x34   :  { %616 = vmatmul.mubr.bf16.gmra.mrb[8].mxu1 %v1000_v52  ;;  %558 = vmatprep.mubr.bf16.mxu0 %v1002_v53 }
  0x35   :  { %623 = vmatprep.mubr.bf16.mxu1 %v1004_v55  ;;  %925 = vmatpush3.bf16.msra.mxu0 %v500_v54 }
  0x36   :  { %943 = vmatpush3.bf16.msra.mxu1 %v500_v54 }
  0x3b   :  { %559 = vmatmul.mubr.bf16.gmra.mrb[12].mxu0 %v1006_v58 }
  0x3c   :  { %624 = vmatmul.mubr.bf16.gmra.mrb[12].mxu1 %v1007_v60  ;;  %926 = vmatprep.mubr.msk.bf16.mxu0 %vm482_vm2, %v1009_v61 }
  0x3d   :  { %930 = vmatprep.mubr.msk.bf16.mxu1 %vm482_vm2, %v1010_v63 }
  0x43   :  { %927 = vmatmul.mubr.msk.bf16.vlgmr.msra.gmra.mrb[16].mxu0 %vm482_vm2, %v1011_v2 }
  0x44   :  { %931 = vmatmul.mubr.msk.bf16.vlgmr.msra.gmra.mrb[16].mxu1 %vm482_vm2, %v1012_v4 }
  0x93   :  { %v124_v6 = vpop.permute.xlu0 %123 }
  0x95   :  { %v134_v23 = vpop.permute.xlu1 %133 }
  0x97   :  { %v129_v8 = vpop.permute.xlu0 %128 }
  0x99   :  { %v139_v38 = vpop.permute.xlu1 %138 }
  0x9b   :  { %v144_v41 = vpop.permute.xlu0 %143 }
  0x9d   :  { %v149_v55 = vpop.permute.xlu1 %148 }
  0x9f   :  { %v154_v59 = vpop.permute.xlu0 %153 }
  0xf6   :  { %v843_v7 = vpop.f32.mrb[0].mxu0 }
  0xf7   :  { %v883_v9 = vpop.f32.mrb[0].mxu1  ;;  %v844_v10 = vpop.f32.mrb[1].mxu0 }
  0xf8   :  { %v845_v11 = vadd.f32 %v844_v10, %v843_v7  ;;  %v884_v12 = vpop.f32.mrb[1].mxu1  ;;  %v846_v13 = vpop.f32.mrb[2].mxu0 }
  0xf9   :  { %v885_v14 = vadd.f32 %v884_v12, %v883_v9  ;;  %v886_v15 = vpop.f32.mrb[2].mxu1  ;;  %v847_v16 = vpop.f32.mrb[3].mxu0 }
  0xfa   :  { %v537_v17 = vadd.f32 %v845_v11, %v124_v6  ;;  %v848_v18 = vadd.f32 %v847_v16, %v846_v13  ;;  %v887_v19 = vpop.f32.mrb[3].mxu1  ;;  %v159_v9 = vpop.permute.xlu1 %158 }
  0xfb   :  { %v888_v20 = vadd.f32 %v887_v19, %v886_v15 }
  0xfc   :  { %v540_v21 = vadd.f32 %v848_v18, %v129_v8  ;;  %v602_v22 = vadd.f32 %v885_v14, %v537_v17 }
  0xfe   :  { %v849_v24 = vpop.f32.mrb[4].mxu0  ;;  %v1234_v25 = vadd.f32 %v888_v20, %v540_v21 }
  0xff   :  { %v889_v26 = vpop.f32.mrb[4].mxu1  ;;  %v850_v27 = vpop.f32.mrb[5].mxu0 }
 0x100   :  { %v851_v28 = vadd.f32 %v850_v27, %v849_v24  ;;  %v890_v29 = vpop.f32.mrb[5].mxu1  ;;  %v852_v30 = vpop.f32.mrb[6].mxu0 }
 0x101   :  { %v891_v31 = vadd.f32 %v890_v29, %v889_v26  ;;  %v892_v32 = vpop.f32.mrb[6].mxu1  ;;  %v853_v33 = vpop.f32.mrb[7].mxu0 }
 0x102   :  { %v545_v34 = vadd.f32 %v851_v28, %v134_v23  ;;  %v854_v35 = vadd.f32 %v853_v33, %v852_v30  ;;  %v893_v36 = vpop.f32.mrb[7].mxu1 }
 0x103   :  { %v894_v37 = vadd.f32 %v893_v36, %v892_v32 }
 0x104   :  { %v548_v39 = vadd.f32 %v854_v35, %v139_v38  ;;  %v610_v40 = vadd.f32 %v891_v31, %v545_v34 }
 0x106   :  { %v855_v42 = vpop.f32.mrb[8].mxu0  ;;  %v613_v43 = vadd.f32 %v894_v37, %v548_v39 }
 0x107   :  { %v895_v44 = vpop.f32.mrb[8].mxu1  ;;  %v856_v45 = vpop.f32.mrb[9].mxu0 }
 0x108   :  { %v857_v46 = vadd.f32 %v856_v45, %v855_v42  ;;  %v896_v47 = vpop.f32.mrb[9].mxu1  ;;  %v858_v48 = vpop.f32.mrb[10].mxu0 }
 0x109   :  { %v897_v49 = vadd.f32 %v896_v47, %v895_v44  ;;  %v898_v50 = vpop.f32.mrb[10].mxu1  ;;  %v859_v51 = vpop.f32.mrb[11].mxu0 }
 0x10a   :  { %v553_v52 = vadd.f32 %v857_v46, %v144_v41  ;;  %v860_v53 = vadd.f32 %v859_v51, %v858_v48  ;;  %v899_v54 = vpop.f32.mrb[11].mxu1 }
 0x10b   :  { %v900_v56 = vadd.f32 %v899_v54, %v898_v50 }
 0x10c   :  { %v556_v57 = vadd.f32 %v860_v53, %v149_v55  ;;  %v618_v58 = vadd.f32 %v897_v49, %v553_v52 }
 0x10e   :  { %v861_v60 = vpop.f32.mrb[12].mxu0  ;;  %v1236_v61 = vadd.f32 %v900_v56, %v556_v57 }
 0x10f   :  { %v901_v62 = vpop.f32.mrb[12].mxu1  ;;  %v862_v63 = vpop.f32.mrb[13].mxu0 }
 0x110   :  { %v863_v0 = vadd.f32 %v862_v63, %v861_v60  ;;  %v902_v1 = vpop.f32.mrb[13].mxu1  ;;  %v864_v2 = vpop.f32.mrb[14].mxu0 }
 0x111   :  { %v903_v3 = vadd.f32 %v902_v1, %v901_v62  ;;  %v904_v4 = vpop.f32.mrb[14].mxu1  ;;  %v865_v5 = vpop.f32.mrb[15].mxu0 }
 0x112   :  { %v561_v6 = vadd.f32 %v863_v0, %v154_v59  ;;  %v866_v7 = vadd.f32 %v865_v5, %v864_v2  ;;  %v905_v8 = vpop.f32.mrb[15].mxu1 }
 0x113   :  { %v906_v10 = vadd.f32 %v905_v8, %v904_v4 }
 0x114   :  { %v564_v11 = vadd.f32 %v866_v7, %v159_v9  ;;  %v626_v12 = vadd.f32 %v903_v3, %v561_v6 }
 0x116   :  { %v928_v13 = vpop.f32.mrb[16].mxu0  ;;  %v629_v14 = vadd.f32 %v906_v10, %v564_v11 }
 0x117   :  { %v675_v15 = vadd.f32 %v928_v13, %v610_v40  ;;  %v932_v16 = vpop.f32.mrb[16].mxu1  ;;  %v666_v17 = vpop.f32.mrb[17].mxu0 }
 0x118   :  { %v691_v18 = vadd.f32 %v932_v16, %v626_v12  ;;  %v667_v19 = vadd.f32 %v666_v17, %v602_v22  ;;  %v682_v20 = vpop.f32.mrb[17].mxu1  ;;  %v929_v21 = vpop.f32.mrb[18].mxu0 }
 0x119   :  { %vm699_vm4 = vcmp.ge.f32.partialorder %v675_v15, 0.0  ;;  %v707_v23 = vmul.f32 0.2, %v675_v15  ;;  %v683_v24 = vadd.f32 %v682_v20, %v618_v58  ;;  %v678_v26 = vadd.f32 %v929_v21, %v613_v43  ;;  %v933_v27 = vpop.f32.mrb[18].mxu1  ;;  %v669_v28 = vpop.f32.mrb[19].mxu0 }
 0x11a   :  { %vm703_vm5 = vcmp.ge.f32.partialorder %v691_v18, 0.0  ;;  %v711_v29 = vmul.f32 0.2, %v691_v18  ;;  %vm697_vm6 = vcmp.ge.f32.partialorder %v667_v19, 0.0  ;;  %v705_v30 = vmul.f32 0.2, %v667_v19 }
 0x11b   :  { %v715_v31 = vsel %vm699_vm4, %v675_v15, %v707_v23  ;;  %vm701_vm7 = vcmp.ge.f32.partialorder %v683_v24, 0.0  ;;  %v709_v32 = vmul.f32 0.2, %v683_v24  ;;  %vm700_vm8 = vcmp.ge.f32.partialorder %v678_v26, 0.0  ;;  %v685_v33 = vpop.f32.mrb[19].mxu1 }
 0x11c   :  { %v723_v34 = vmul.f32 1.4142135, %v715_v31  ;;  %v719_v35 = vsel %vm703_vm5, %v691_v18, %v711_v29  ;;  %v713_v22 = vsel %vm697_vm6, %v667_v19, %v705_v30  ;;  %v708_v36 = vmul.f32 0.2, %v678_v26 }
 0x11d   :  { %v727_v37 = vmul.f32 1.4142135, %v719_v35  ;;  %v721_v38 = vmul.f32 1.4142135, %v713_v22  ;;  %v717_v39 = vsel %vm701_vm7, %v683_v24, %v709_v32  ;;  %v694_v40 = vadd.f32 %v933_v27, %v629_v14 }
 0x11e   :  { %v821_v41 = vclamps-f32 %v723_v34, 256.0  ;;  %v725_v42 = vmul.f32 1.4142135, %v717_v39  ;;  %v716_v43 = vsel %vm700_vm8, %v678_v26, %v708_v36  ;;  %v670_v44 = vadd.f32 %v669_v28, %v1234_v25 }
 0x11f   :  { %v825_v45 = vclamps-f32 %v727_v37, 256.0  ;;  %v819_v46 = vclamps-f32 %v721_v38, 256.0  ;;  %v724_v47 = vmul.f32 1.4142135, %v716_v43  ;;  %vm704_vm9 = vcmp.ge.f32.partialorder %v694_v40, 0.0 }
 0x120   :  { %748 = vst.msk [vmem:[%s1275_s3 + $0x10] sm:$0xff] %vm745_vm3, %v821_v41  ;;  %v823_v48 = vclamps-f32 %v725_v42, 256.0  ;;  %v712_v49 = vmul.f32 0.2, %v694_v40  ;;  %vm698_vm10 = vcmp.ge.f32.partialorder %v670_v44, 0.0  ;;  %v686_v51 = vadd.f32 %v685_v33, %v1236_v61 }
 0x121   :  { %v706_v50 = vmul.f32 0.2, %v670_v44  ;;  %752 = vst.msk [vmem:[%s1275_s3 + $0x30] sm:$0xff] %vm745_vm3, %v825_v45  ;;  %746 = vst.msk [vmem:[%s1275_s3] sm:$0xff] %vm745_vm3, %v819_v46  ;;  %v822_v25 = vclamps-f32 %v724_v47, 256.0 }
 0x122   :  { %750 = vst.msk [vmem:[%s1275_s3 + $0x20] sm:$0xff] %vm745_vm3, %v823_v48  ;;  %v720_v52 = vsel %vm704_vm9, %v694_v40, %v712_v49  ;;  %vm702_vm11 = vcmp.ge.f32.partialorder %v686_v51, 0.0  ;;  %v710_v56 = vmul.f32 0.2, %v686_v51 }
 0x123   :  { %v714_v53 = vsel %vm698_vm10, %v670_v44, %v706_v50  ;;  %749 = vst.msk [vmem:[%s1275_s3 + $0x18] sm:$0xff] %vm745_vm3, %v822_v25  ;;  %v728_v54 = vmul.f32 1.4142135, %v720_v52 }
 0x124   :  { %v722_v55 = vmul.f32 1.4142135, %v714_v53  ;;  %v718_v59 = vsel %vm702_vm11, %v686_v51, %v710_v56 }
 0x125   :  { %v826_v57 = vclamps-f32 %v728_v54, 256.0  ;;  %v726_v60 = vmul.f32 1.4142135, %v718_v59 }
 0x126   :  { %v820_v58 = vclamps-f32 %v722_v55, 256.0 }
 0x127   :  { %753 = vst.msk [vmem:[%s1275_s3 + $0x38] sm:$0xff] %vm745_vm3, %v826_v57  ;;  %v824_v61 = vclamps-f32 %v726_v60, 256.0 }
 0x128   :  { %747 = vst.msk [vmem:[%s1275_s3 + $0x8] sm:$0xff] %vm745_vm3, %v820_v58 }
 0x129   :  { %751 = vst.msk [vmem:[%s1275_s3 + $0x28] sm:$0xff] %vm745_vm3, %v824_v61 }

// kernel: _forward.19
= control target key start
LH: loop header
LB: loop body
LE: loop exit
PB: predicated region body
PF: predicated region fallthrough
CT: control target
= control target key end

     0   :  { %vm39_vm0 = vcmask 1043456   ;;  %vm35_vm1 = vcmask 31744   ;;  %v412_v0 = vmov 0.0   ;;  %vm413_vm2 = vmmov 0   ;;  %s525_s1 = inlined_call_operand.vmem [shape: f32[4,64], index: 1, kind: input, shape index: {}]   ;;  %s526_s0 = inlined_call_operand.vmem [shape: f32[2,4], index: 0, kind: input, shape index: {}]   ;;  %s527_s2 = inlined_call_operand.vmem [shape: f32[1,64], index: 2, kind: input, shape index: {}]   ;;  %s528_s3 = inlined_call_operand.vmem [shape: f32[64,64], index: 3, kind: input, shape index: {}]   ;;  %s529_s5 = inlined_call_operand.vmem [shape: f32[64,64], index: 5, kind: input, shape index: {}]   ;;  %s530_s4 = inlined_call_operand.vmem [shape: f32[1,64], index: 4, kind: input, shape index: {}]   ;;  %s531_s6 = inlined_call_operand.vmem [shape: f32[1,64], index: 6, kind: input, shape index: {}]   ;;  %s532_s7 = inlined_call_operand.vmem [shape: f32[2,64], index: 7, kind: output, shape index: {}]  }
   0x1   :  { %340 = vmatprep.subr.mxu0 %v412_v0  ;;  %v27_v1 = vld [vmem:[%s525_s1] sm:$0xf]  ;;  %342 = vmatprep.mubr.msk.f32.mxu0 %vm413_vm2, %v412_v0  ;;  %vm114_vm3 = vcmask 517120   ;;  %v124_v10 = vld [vmem:[%s528_s3 + $0x8] sm:$0xff]  ;;  %v414_v12 = vmov 0.0|0.0   ;;  %v125_v13 = vld [vmem:[%s528_s3 + $0x10] sm:$0xff] }
   0x2   :  { %v26_v2 = vld [vmem:[%s526_s0] sm:$0x3]  ;;  %341 = vmatpush3.msk.msra.mxu0 %vm39_vm0, %v27_v1  ;;  %361 = vmatprep.mubr.msk.f32.mxu1 %vm413_vm2, %v412_v0  ;;  %v126_v14 = vld [vmem:[%s528_s3 + $0x18] sm:$0xff]  ;;  %v128_v17 = vld [vmem:[%s528_s3 + $0x28] sm:$0xff]  ;;  %vm138_vm4 = vcmask 523264  }
   0x3   :  { %343 = vmatmul.mubr.msk.f32.vlgmr.msra.gmra.mrb[0].mxu0 %vm35_vm1, %v26_v2  ;;  %v313_v3 = vld [vmem:[%s527_s2] ss:$0 sm:$0xff]  ;;  %383 = vmatprep.subr.bf16.mxu1 %v414_v12  ;;  %v387_v15 = vpack.c.bf16 %v126_v14, %v125_v13  ;;  %v129_v19 = vld [vmem:[%s528_s3 + $0x30] sm:$0xff]  ;;  %v130_v20 = vld [vmem:[%s528_s3 + $0x38] sm:$0xff] }
   0x4   :  { %380 = vmatprep.mubr.msk.f32.mxu0 %vm413_vm2, %v412_v0  ;;  %v123_v9 = vld [vmem:[%s528_s3] sm:$0xff]  ;;  %395 = vmatprep.subr.bf16.mxu0 %v414_v12  ;;  %v393_v21 = vpack.c.bf16 %v130_v20, %v129_v19  ;;  %v217_v23 = vld [vmem:[%s529_s5 + $0x8] sm:$0xff]  ;;  %v218_v24 = vld [vmem:[%s529_s5 + $0x10] sm:$0xff] }
   0x5   :  { %v384_v11 = vpack.c.bf16 %v124_v10, %v123_v9  ;;  %v127_v16 = vld [vmem:[%s528_s3 + $0x20] sm:$0xff]  ;;  %v219_v26 = vld [vmem:[%s529_s5 + $0x18] sm:$0xff]  ;;  %v221_v34 = vld [vmem:[%s529_s5 + $0x28] sm:$0xff] }
   0x6   :  { %v390_v18 = vpack.c.bf16 %v128_v17, %v127_v16  ;;  %v216_v22 = vld [vmem:[%s529_s5] sm:$0xff]  ;;  %v399_v27 = vpack.c.bf16 %v219_v26, %v218_v24  ;;  %v222_v36 = vld [vmem:[%s529_s5 + $0x30] sm:$0xff]  ;;  %v223_v37 = vld [vmem:[%s529_s5 + $0x38] sm:$0xff] }
   0x7   :  { %385 = vmatpush3.bf16.msra.mxu1 %v384_v11  ;;  %v396_v25 = vpack.c.bf16 %v217_v23, %v216_v22  ;;  %v220_v33 = vld [vmem:[%s529_s5 + $0x20] sm:$0xff]  ;;  %v405_v38 = vpack.c.bf16 %v223_v37, %v222_v36 }
   0x8   :  { %386 = vmatprep.subr.bf16.mxu1 %v414_v12  ;;  %v402_v35 = vpack.c.bf16 %v221_v34, %v220_v33  ;;  %v316_v39 = vld [vmem:[%s530_s4] ss:$0 sm:$0xff] }
   0x9   :  { %397 = vmatpush3.bf16.msra.mxu0 %v396_v25  ;;  %v318_v46 = vld [vmem:[%s531_s6] ss:$0 sm:$0xff] }
   0xa   :  { %398 = vmatprep.subr.bf16.mxu0 %v414_v12 }
   0xb   :  { %388 = vmatpush3.bf16.msra.mxu1 %v387_v15 }
   0xc   :  { %389 = vmatprep.subr.bf16.mxu1 %v414_v12 }
   0xd   :  { %400 = vmatpush3.bf16.msra.mxu0 %v399_v27 }
   0xe   :  { %401 = vmatprep.subr.bf16.mxu0 %v414_v12 }
   0xf   :  { %391 = vmatpush3.bf16.msra.mxu1 %v390_v18 }
  0x10   :  { %392 = vmatprep.subr.bf16.mxu1 %v414_v12 }
  0x11   :  { %403 = vmatpush3.bf16.msra.mxu0 %v402_v35 }
  0x12   :  { %404 = vmatprep.subr.bf16.mxu0 %v414_v12 }
  0x13   :  { %394 = vmatpush3.bf16.msra.mxu1 %v393_v21 }
  0x15   :  { %406 = vmatpush3.bf16.msra.mxu0 %v405_v38 }
  0xd6   :  { %v109_v4 = vpop.f32.mrb[0].mxu0 }
  0xd7   :  { %v110_v5 = vadd.f32 %v313_v3, %v109_v4  ;;  %v344_v6 = vpop.f32.mrb[1].mxu0 }
  0xd9   :  { %v113_v7 = vmul.f32 %v110_v5, %v110_v5 }
  0xdb   :  { %v115_v8 = vsel %vm114_vm3, %v113_v7, 0.0 }
  0xdc   :  { %116 = vadd.xlane.f32.xlu0 %v115_v8 }
 0x169   :  { %v117_v28 = vpop.xlane.xlu0 %116 }
 0x16a   :  { %v119_v29 = vmul.f32 0.015625, %v117_v28 }
 0x16c   :  { %v120_v30 = vadd.f32 1e-08, %v119_v29 }
 0x16e   :  { %410 = vrsqrt.f32 %v120_v30 }
 0x178   :  { %v411_v31 = vpop.eup %410 }
 0x179   :  { %v122_v32 = vmul.f32 %v411_v31, %v110_v5 }
 0x17b   :  { %362 = vmatmul.mubr.msk.f32.vlgmr.msra.gmra.mrb[0].mxu1 %vm138_vm4, %v122_v32 }
 0x24e   :  { %v208_v40 = vpop.f32.mrb[0].mxu1 }
 0x24f   :  { %v209_v41 = vadd.f32 %v316_v39, %v208_v40  ;;  %v363_v42 = vpop.f32.mrb[1].mxu1 }
 0x251   :  { %vm212_vm5 = vcmp.ge.f32.partialorder %v209_v41, 0.0  ;;  %v213_v43 = vmul.f32 0.2, %v209_v41 }
 0x253   :  { %v214_v44 = vsel %vm212_vm5, %v209_v41, %v213_v43 }
 0x254   :  { %v215_v45 = vmul.f32 1.4142135, %v214_v44 }
 0x256   :  { %381 = vmatmul.mubr.msk.f32.vlgmr.msra.gmra.mrb[2].mxu0 %vm138_vm4, %v215_v45 }
 0x329   :  { %v300_v47 = vpop.f32.mrb[2].mxu0 }
 0x32a   :  { %v301_v48 = vadd.f32 %v318_v46, %v300_v47  ;;  %v382_v49 = vpop.f32.mrb[3].mxu0 }
 0x32c   :  { %vm304_vm6 = vcmp.ge.f32.partialorder %v301_v48, 0.0  ;;  %v305_v50 = vmul.f32 0.2, %v301_v48 }
 0x32e   :  { %v306_v51 = vsel %vm304_vm6, %v301_v48, %v305_v50 }
 0x32f   :  { %v307_v52 = vmul.f32 1.4142135, %v306_v51 }
 0x331   :  { %308 = vst.msk [vmem:[%s532_s7] sm:$0x3] %vm114_vm3, %v307_v52 }

// kernel: _forward.21
= control target key start
LH: loop header
LB: loop body
LE: loop exit
PB: predicated region body
PF: predicated region fallthrough
CT: control target
= control target key end

     0   :  { %v545_v47 = vmov 1983009808   ;;  %v100_v49 = vlaneseq  ;;  %vm547_vm0 = vmmov 0   ;;  %vm276_vm2 = vcmask 523264   ;;  %s815_s1 = inlined_call_operand.vmem [shape: f32[512,64], index: 1, kind: input, shape index: {}]   ;;  %s816_s0 = inlined_call_operand.vmem [shape: f32[2,512], index: 0, kind: input, shape index: {}]   ;;  %s817_s3 = inlined_call_operand.vmem [shape: f32[64,64], index: 3, kind: input, shape index: {}]   ;;  %s818_s2 = inlined_call_operand.vmem [shape: f32[1,64], index: 2, kind: input, shape index: {}]   ;;  %s819_s4 = inlined_call_operand.vmem [shape: f32[1,64], index: 4, kind: input, shape index: {}]   ;;  %s820_s5 = inlined_call_operand.vmem [shape: f32[2,64], index: 5, kind: input, shape index: {}]   ;;  %s821_s6 = inlined_call_operand.vmem [shape: f32[2,1], index: 6, kind: output, shape index: {}]  }
   0x1   :  { %v40_v0 = vld [vmem:[%s815_s1 + $0x80] sm:$0xff]  ;;  %v41_v1 = vld [vmem:[%s815_s1 + $0x88] sm:$0xff]  ;;  %v42_v11 = vld [vmem:[%s815_s1 + $0x90] sm:$0xff]  ;;  %v98_v48 = vunpack.c.l.s4 %v545_v47  ;;  %v546_v47 = vmov 0.0|0.0   ;;  %vm352_vm3 = vcmask 517120   ;;  %vm357_vm4 = vcmask 1024  }
   0x2   :  { %v24_v2 = vld [vmem:[%s815_s1] sm:$0xff]  ;;  %v464_v3 = vpack.c.bf16 %v41_v1, %v40_v0  ;;  %v25_v4 = vld [vmem:[%s815_s1 + $0x8] sm:$0xff]  ;;  %v43_v13 = vld [vmem:[%s815_s1 + $0x98] sm:$0xff]  ;;  %v101_v0 = vshrl.u32 %v100_v49, 7 }
   0x3   :  { %v72_v5 = vld [vmem:[%s815_s1 + $0x180] sm:$0xff]  ;;  %v73_v6 = vld [vmem:[%s815_s1 + $0x188] sm:$0xff]  ;;  %v466_v7 = vpack.c.bf16 %v25_v4, %v24_v2  ;;  %v26_v14 = vld [vmem:[%s815_s1 + $0x10] sm:$0xff]  ;;  %v468_v16 = vpack.c.bf16 %v43_v13, %v42_v11  ;;  %v99_v63 = vunpack.c.0.s8 %v98_v48 }
   0x4   :  { %v496_v8 = vpack.c.bf16 %v73_v6, %v72_v5  ;;  %v56_v9 = vld [vmem:[%s815_s1 + $0x100] sm:$0xff]  ;;  %v57_v10 = vld [vmem:[%s815_s1 + $0x108] sm:$0xff]  ;;  %465 = vmatprep.subr.bf16.mxu0 %v464_v3  ;;  %v27_v15 = vld [vmem:[%s815_s1 + $0x18] sm:$0xff] }
   0x5   :  { %v498_v12 = vpack.c.bf16 %v57_v10, %v56_v9  ;;  %467 = vmatpush3.bf16.msra.mxu0 %v466_v7  ;;  %v470_v17 = vpack.c.bf16 %v27_v15, %v26_v14  ;;  %v74_v18 = vld [vmem:[%s815_s1 + $0x190] sm:$0xff]  ;;  %v75_v19 = vld [vmem:[%s815_s1 + $0x198] sm:$0xff]  ;;  %v44_v23 = vld [vmem:[%s815_s1 + $0xa0] sm:$0xff]  ;;  %v102_v13 = vsub.s32 %v99_v63, %v101_v0 }
   0x6   :  { %497 = vmatprep.subr.bf16.mxu1 %v496_v8  ;;  %v58_v20 = vld [vmem:[%s815_s1 + $0x110] sm:$0xff]  ;;  %v500_v21 = vpack.c.bf16 %v75_v19, %v74_v18  ;;  %v59_v22 = vld [vmem:[%s815_s1 + $0x118] sm:$0xff]  ;;  %v45_v24 = vld [vmem:[%s815_s1 + $0xa8] sm:$0xff]  ;;  %469 = vmatprep.subr.bf16.mxu0 %v468_v16 }
   0x7   :  { %499 = vmatpush3.bf16.msra.mxu1 %v498_v12  ;;  %v502_v25 = vpack.c.bf16 %v59_v22, %v58_v20  ;;  %v472_v26 = vpack.c.bf16 %v45_v24, %v44_v23  ;;  %v28_v27 = vld [vmem:[%s815_s1 + $0x20] sm:$0xff]  ;;  %v29_v28 = vld [vmem:[%s815_s1 + $0x28] sm:$0xff]  ;;  %v46_v35 = vld [vmem:[%s815_s1 + $0xb0] sm:$0xff] }
   0x8   :  { %v76_v29 = vld [vmem:[%s815_s1 + $0x1a0] sm:$0xff]  ;;  %501 = vmatprep.subr.bf16.mxu1 %v500_v21  ;;  %v77_v30 = vld [vmem:[%s815_s1 + $0x1a8] sm:$0xff]  ;;  %v474_v33 = vpack.c.bf16 %v29_v28, %v28_v27  ;;  %v47_v36 = vld [vmem:[%s815_s1 + $0xb8] sm:$0xff] }
   0x9   :  { %v60_v31 = vld [vmem:[%s815_s1 + $0x120] sm:$0xff]  ;;  %v61_v32 = vld [vmem:[%s815_s1 + $0x128] sm:$0xff]  ;;  %471 = vmatpush3.bf16.msra.mxu0 %v470_v17  ;;  %v504_v34 = vpack.c.bf16 %v77_v30, %v76_v29  ;;  %v30_v37 = vld [vmem:[%s815_s1 + $0x30] sm:$0xff]  ;;  %v476_v39 = vpack.c.bf16 %v47_v36, %v46_v35 }
   0xa   :  { %473 = vmatprep.subr.bf16.mxu0 %v472_v26  ;;  %v506_v38 = vpack.c.bf16 %v61_v32, %v60_v31  ;;  %v31_v40 = vld [vmem:[%s815_s1 + $0x38] sm:$0xff]  ;;  %v78_v41 = vld [vmem:[%s815_s1 + $0x1b0] sm:$0xff]  ;;  %v48_v46 = vld [vmem:[%s815_s1 + $0xc0] sm:$0xff] }
   0xb   :  { %503 = vmatpush3.bf16.msra.mxu1 %v502_v25  ;;  %v79_v42 = vld [vmem:[%s815_s1 + $0x1b8] sm:$0xff]  ;;  %v62_v44 = vld [vmem:[%s815_s1 + $0x130] sm:$0xff]  ;;  %v49_v50 = vld [vmem:[%s815_s1 + $0xc8] sm:$0xff]  ;;  %v478_v51 = vpack.c.bf16 %v31_v40, %v30_v37 }
   0xc   :  { %505 = vmatprep.subr.bf16.mxu1 %v504_v34  ;;  %v508_v43 = vpack.c.bf16 %v79_v42, %v78_v41  ;;  %v63_v45 = vld [vmem:[%s815_s1 + $0x138] sm:$0xff]  ;;  %v80_v52 = vld [vmem:[%s815_s1 + $0x1c0] sm:$0xff]  ;;  %v81_v53 = vld [vmem:[%s815_s1 + $0x1c8] sm:$0xff]  ;;  %v480_v55 = vpack.c.bf16 %v49_v50, %v48_v46 }
   0xd   :  { %475 = vmatpush3.bf16.msra.mxu0 %v474_v33  ;;  %v510_v54 = vpack.c.bf16 %v63_v45, %v62_v44  ;;  %v32_v56 = vld [vmem:[%s815_s1 + $0x40] sm:$0xff]  ;;  %v33_v57 = vld [vmem:[%s815_s1 + $0x48] sm:$0xff]  ;;  %v512_v59 = vpack.c.bf16 %v81_v53, %v80_v52  ;;  %v50_v61 = vld [vmem:[%s815_s1 + $0xd0] sm:$0xff] }
   0xe   :  { %477 = vmatprep.subr.bf16.mxu0 %v476_v39  ;;  %v64_v58 = vld [vmem:[%s815_s1 + $0x140] sm:$0xff]  ;;  %v65_v60 = vld [vmem:[%s815_s1 + $0x148] sm:$0xff]  ;;  %v51_v62 = vld [vmem:[%s815_s1 + $0xd8] sm:$0xff]  ;;  %v482_v3 = vpack.c.bf16 %v33_v57, %v32_v56  ;;  %v548_v57 = vmov 0.0  }
   0xf   :  { %507 = vmatpush3.bf16.msra.mxu1 %v506_v38  ;;  %v82_v1 = vld [vmem:[%s815_s1 + $0x1d0] sm:$0xff]  ;;  %v83_v2 = vld [vmem:[%s815_s1 + $0x1d8] sm:$0xff]  ;;  %v514_v4 = vpack.c.bf16 %v65_v60, %v64_v58  ;;  %v484_v5 = vpack.c.bf16 %v51_v62, %v50_v61  ;;  %v52_v11 = vld [vmem:[%s815_s1 + $0xe0] sm:$0xff] }
  0x10   :  { %509 = vmatprep.subr.bf16.mxu1 %v508_v43  ;;  %v34_v6 = vld [vmem:[%s815_s1 + $0x50] sm:$0xff]  ;;  %v35_v7 = vld [vmem:[%s815_s1 + $0x58] sm:$0xff]  ;;  %v516_v9 = vpack.c.bf16 %v83_v2, %v82_v1  ;;  %v53_v12 = vld [vmem:[%s815_s1 + $0xe8] sm:$0xff] }
  0x11   :  { %479 = vmatpush3.bf16.msra.mxu0 %v478_v51  ;;  %v66_v8 = vld [vmem:[%s815_s1 + $0x150] sm:$0xff]  ;;  %v67_v10 = vld [vmem:[%s815_s1 + $0x158] sm:$0xff]  ;;  %v84_v14 = vld [vmem:[%s815_s1 + $0x1e0] sm:$0xff]  ;;  %v486_v16 = vpack.c.bf16 %v35_v7, %v34_v6  ;;  %v488_v19 = vpack.c.bf16 %v53_v12, %v52_v11 }
  0x12   :  { %481 = vmatprep.subr.bf16.mxu0 %v480_v55  ;;  %v85_v15 = vld [vmem:[%s815_s1 + $0x1e8] sm:$0xff]  ;;  %v36_v17 = vld [vmem:[%s815_s1 + $0x60] sm:$0xff]  ;;  %v518_v18 = vpack.c.bf16 %v67_v10, %v66_v8  ;;  %v54_v25 = vld [vmem:[%s815_s1 + $0xf0] sm:$0xff] }
  0x13   :  { %511 = vmatpush3.bf16.msra.mxu1 %v510_v54  ;;  %v37_v20 = vld [vmem:[%s815_s1 + $0x68] sm:$0xff]  ;;  %v68_v21 = vld [vmem:[%s815_s1 + $0x160] sm:$0xff]  ;;  %v520_v23 = vpack.c.bf16 %v85_v15, %v84_v14  ;;  %v55_v26 = vld [vmem:[%s815_s1 + $0xf8] sm:$0xff] }
  0x14   :  { %513 = vmatprep.subr.bf16.mxu1 %v512_v59  ;;  %v23_v22 = vld [vmem:[%s816_s0] sm:$0xff]  ;;  %v69_v24 = vld [vmem:[%s815_s1 + $0x168] sm:$0xff]  ;;  %v86_v29 = vld [vmem:[%s815_s1 + $0x1f0] sm:$0xff]  ;;  %v490_v31 = vpack.c.bf16 %v37_v20, %v36_v17  ;;  %v492_v35 = vpack.c.bf16 %v55_v26, %v54_v25 }
  0x15   :  { %483 = vmatpush3.bf16.msra.mxu0 %v482_v3  ;;  %v103_v27 = vrot.slane %v23_v22, %v102_v13  ;;  %v96_v28 = vcombine.high %v23_v22, %v23_v22  ;;  %v87_v30 = vld [vmem:[%s815_s1 + $0x1f8] sm:$0xff]  ;;  %v522_v34 = vpack.c.bf16 %v69_v24, %v68_v21  ;;  %v38_v36 = vld [vmem:[%s815_s1 + $0x70] sm:$0xff]  ;;  %v261_v44 = vld [vmem:[%s817_s3] sm:$0xff] }
  0x16   :  { %485 = vmatprep.subr.bf16.mxu0 %v484_v5  ;;  %v39_v37 = vld [vmem:[%s815_s1 + $0x78] sm:$0xff]  ;;  %v524_v38 = vpack.c.bf16 %v87_v30, %v86_v29  ;;  %v70_v39 = vld [vmem:[%s815_s1 + $0x170] sm:$0xff]  ;;  %v262_v45 = vld [vmem:[%s817_s3 + $0x8] sm:$0xff] }
  0x17   :  { %515 = vmatpush3.bf16.msra.mxu1 %v514_v4  ;;  %v111_v32 = vcombine.high %v103_v27, %v103_v27  ;;  %v110_v33 = vrot.slane %v96_v28, %v102_v13  ;;  %v71_v40 = vld [vmem:[%s815_s1 + $0x178] sm:$0xff]  ;;  %v494_v42 = vpack.c.bf16 %v39_v37, %v38_v36  ;;  %v529_v46 = vpack.c.bf16 %v262_v45, %v261_v44  ;;  %v263_v48 = vld [vmem:[%s817_s3 + $0x10] sm:$0xff]  ;;  %v265_v51 = vld [vmem:[%s817_s3 + $0x20] sm:$0xff] }
  0x18   :  { %517 = vmatprep.subr.bf16.mxu1 %v516_v9  ;;  %v526_v43 = vpack.c.bf16 %v71_v40, %v70_v39  ;;  %v264_v49 = vld [vmem:[%s817_s3 + $0x18] sm:$0xff]  ;;  %v266_v52 = vld [vmem:[%s817_s3 + $0x28] sm:$0xff]  ;;  %v267_v54 = vld [vmem:[%s817_s3 + $0x30] sm:$0xff] }
  0x19   :  { %487 = vmatpush3.bf16.msra.mxu0 %v486_v16  ;;  %181 = vmatprep.mubr.f32.mxu0 %v111_v32  ;;  %v112_v41 = vcombine.high %v110_v33, %v110_v33  ;;  %v532_v50 = vpack.c.bf16 %v264_v49, %v263_v48  ;;  %v535_v53 = vpack.c.bf16 %v266_v52, %v265_v51  ;;  %v268_v55 = vld [vmem:[%s817_s3 + $0x38] sm:$0xff]  ;;  %v363_v59 = vld [vmem:[%s818_s2] ss:$0 sm:$0xff] }
  0x1a   :  { %489 = vmatprep.subr.bf16.mxu0 %v488_v19  ;;  %v538_v56 = vpack.c.bf16 %v268_v55, %v267_v54  ;;  %v364_v6 = vld [vmem:[%s819_s4] ss:$0 sm:$0xff] }
  0x1b   :  { %519 = vmatpush3.bf16.msra.mxu1 %v518_v18  ;;  %251 = vmatprep.mubr.f32.mxu1 %v112_v41  ;;  %v350_v8 = vld [vmem:[%s820_s5] sm:$0x3] }
  0x1c   :  { %521 = vmatprep.subr.bf16.mxu1 %v520_v23 }
  0x1d   :  { %491 = vmatpush3.bf16.msra.mxu0 %v490_v31 }
  0x1e   :  { %493 = vmatprep.subr.bf16.mxu0 %v492_v35 }
  0x1f   :  { %523 = vmatpush3.bf16.msra.mxu1 %v522_v34 }
  0x20   :  { %525 = vmatprep.subr.bf16.mxu1 %v524_v38 }
  0x21   :  { %495 = vmatpush3.bf16.msra.mxu0 %v494_v42 }
  0x22   :  { %528 = vmatprep.subr.bf16.mxu0 %v546_v47 }
  0x23   :  { %527 = vmatpush3.bf16.msra.mxu1 %v526_v43 }
  0x24   :  { %182 = vmatmul.mubr.f32.vlgmr.msra.gmra.mrb[0].mxu0 %v103_v27 }
  0x25   :  { %530 = vmatpush3.bf16.msra.mxu0 %v529_v46  ;;  %461 = vmatprep.mubr.msk.f32.mxu0 %vm547_vm0, %v548_v57 }
  0x26   :  { %252 = vmatmul.mubr.f32.vlgmr.msra.gmra.mrb[0].mxu1 %v110_v33  ;;  %531 = vmatprep.subr.bf16.mxu0 %v546_v47 }
  0x29   :  { %533 = vmatpush3.bf16.msra.mxu0 %v532_v50 }
  0x2a   :  { %534 = vmatprep.subr.bf16.mxu0 %v546_v47 }
  0x2d   :  { %536 = vmatpush3.bf16.msra.mxu0 %v535_v53 }
  0x2e   :  { %537 = vmatprep.subr.bf16.mxu0 %v546_v47 }
  0x31   :  { %539 = vmatpush3.bf16.msra.mxu0 %v538_v56 }
  0xf7   :  { %v398_v58 = vpop.f32.mrb[0].mxu0 }
  0xf8   :  { %v399_v60 = vpop.f32.mrb[1].mxu0 }
  0xf9   :  { %v433_v61 = vpop.f32.mrb[0].mxu1  ;;  %v400_v62 = vadd.f32 %v399_v60, %v398_v58 }
  0xfa   :  { %v434_v63 = vpop.f32.mrb[1].mxu1 }
  0xfb   :  { %v435_v0 = vadd.f32 %v434_v63, %v433_v61  ;;  %v184_v1 = vadd.f32 %v400_v62, %v363_v59 }
  0xfd   :  { %v254_v2 = vadd.f32 %v435_v0, %v184_v1 }
  0xff   :  { %vm257_vm1 = vcmp.ge.f32.partialorder %v254_v2, 0.0  ;;  %v258_v3 = vmul.f32 0.2, %v254_v2 }
 0x101   :  { %v259_v4 = vsel %vm257_vm1, %v254_v2, %v258_v3 }
 0x102   :  { %v260_v5 = vmul.f32 1.4142135, %v259_v4 }
 0x104   :  { %462 = vmatmul.mubr.msk.f32.vlgmr.msra.gmra.mrb[2].mxu0 %vm276_vm2, %v260_v5 }
 0x1d7   :  { %v346_v7 = vpop.f32.mrb[2].mxu0 }
 0x1d8   :  { %v347_v9 = vadd.f32 %v364_v6, %v346_v7  ;;  %v463_v10 = vpop.f32.mrb[3].mxu0 }
 0x1da   :  { %v351_v11 = vmul.f32 %v350_v8, %v347_v9 }
 0x1dc   :  { %v353_v12 = vsel %vm352_vm3, %v351_v11, 0.0 }
 0x1dd   :  { %354 = vadd.xlane.f32.xlu0 %v353_v12 }
 0x26a   :  { %v355_v13 = vpop.xlane.xlu0 %354 }
 0x26b   :  { %v356_v14 = vmul.f32 0.125, %v355_v13 }
 0x26d   :  { %358 = vst.msk [vmem:[%s821_s6] sm:$0x3] %vm357_vm4, %v356_v14 }

</bundles_post_ra>
